<compile_context>
chip_gen: v7x
topology: tpu7x:2x2x1
jax: 0.10.0
libtpu: 0.0.40
codegen_flags: <defaults>
</compile_context>

<pallas_src>
import functools

import jax
import jax.numpy as jnp
from jax import lax
from jax.experimental import pallas as pl
from jax.experimental.pallas import tpu as pltpu

BN_EPS = 1e-5
_VMEM_LIMIT = 48 * 1024 * 1024


# ----------------------------- Pallas kernels -----------------------------

def _maxpool_kernel(x_ref, o_ref):
    # x_ref: (bm, 8, Wp*C) -- the 8 elements of each 2x2x2 window along the sublane axis.
    o_ref[...] = jnp.max(x_ref[...], axis=1).astype(o_ref.dtype)


def _conv_pass_kernel(x_ref, w_ref, b_ref, y_ref, stats_ref, *, hp, r_out):
    # x_ref:     (1, r_in, (wp+2)*cin)    bf16  padded input slab, rows = (d, h) flattened
    # w_ref:     (9, (wp+2)*cin, wp*cout) bf16  banded weights, one matrix per (kd, kh) tap
    # b_ref:     (1, wp*cout)             f32   bias tiled over w
    # y_ref:     (1, r_out, wp*cout)      f32   pre-BN conv output (includes junk h-halo rows)
    # stats_ref: (1, 8, wp*cout)          f32   row0 = sum, row1 = sumsq over valid rows
    n_out = y_ref.shape[-1]
    acc = jnp.zeros((r_out, n_out), jnp.float32)
    for kd in range(3):
        for kh in range(3):
            s = kd * (hp + 2) + kh
            acc = acc + jnp.dot(x_ref[0, s:s + r_out, :], w_ref[kd * 3 + kh],
                                preferred_element_type=jnp.float32)
    acc = acc + b_ref[...]

    # Rows with (r mod (hp+2)) >= hp are h-halo junk: exclude them from the BN statistics.
    row = lax.broadcasted_iota(jnp.int32, (r_out, n_out), 0)
    valid = (row % (hp + 2)) < hp
    accv = jnp.where(valid, acc, 0.0)
    stats_ref[0, 0:1, :] = jnp.sum(accv, axis=0, keepdims=True)
    stats_ref[0, 1:2, :] = jnp.sum(accv * accv, axis=0, keepdims=True)
    stats_ref[0, 2:8, :] = jnp.zeros((6, n_out), jnp.float32)

    y_ref[0] = acc


def _bn_relu_kernel(y_ref, a_ref, c_ref, o_ref):
    # y_ref: (bm, n_out) f32; a/c: (1, n_out) f32 (per-channel affine tiled over w).
    y = y_ref[...].astype(jnp.float32)
    o_ref[...] = jnp.maximum(y * a_ref[...] + c_ref[...], 0.0).astype(o_ref.dtype)


# ----------------------------- helpers -----------------------------

def _largest_divisor_leq(n, cap):
    for t in range(min(n, cap), 0, -1):
        if n % t == 0:
            return t
    return 1


def _parallel_params():
    return pltpu.CompilerParams(dimension_semantics=("parallel",),
                                vmem_limit_bytes=_VMEM_LIMIT)


# ----------------------------- wrappers -----------------------------

def _maxpool3d_2x(x_ncdhw):
    """2x2x2 max pool, stride 2, NCDHW in -> (N, Dp, Hp, Wp, C) bf16 out."""
    n, c, d, h, w = x_ncdhw.shape
    dp, hp, wp = d // 2, h // 2, w // 2
    # (N, C, Dp, 2, Hp, 2, Wp, 2) -> window-last, channels-last: (N, Dp, Hp, d2, h2, w2, Wp, C)
    xr = x_ncdhw.reshape(n, c, dp, 2, hp, 2, wp, 2)
    xt = jnp.transpose(xr, (0, 2, 4, 3, 5, 7, 6, 1))
    rows = n * dp * hp
    wc = wp * c
    xt = xt.reshape(rows, 8, wc)

    bm = min(rows, 64)
    pooled = pl.pallas_call(
        _maxpool_kernel,
        grid=(pl.cdiv(rows, bm),),
        in_specs=[pl.BlockSpec((bm, 8, wc), lambda i: (i, 0, 0))],
        out_specs=pl.BlockSpec((bm, wc), lambda i: (i, 0)),
        out_shape=jax.ShapeDtypeStruct((rows, wc), jnp.bfloat16),
        compiler_params=_parallel_params(),
    )(xt)
    return pooled.reshape(n, dp, hp, wp, c)


def _conv_bn_relu_layer(x_act, w, b, gamma, beta, out_dtype):
    """Conv3d(k=3, pad=1) + BatchNorm3d(batch stats) + ReLU.

    x_act: (N, Dp, Hp, Wp, Cin) channels-last; w: (Cout, Cin, 3, 3, 3) PyTorch layout.
    Returns (N, Dp, Hp, Wp, Cout) with dtype `out_dtype`.
    """
    n, dp, hp, wp, cin = x_act.shape
    cout = w.shape[0]
    td = _largest_divisor_leq(dp, 8)          # depth tile
    ndb = dp // td
    g = n * ndb                               # number of conv tiles (grid size)
    k_in = (wp + 2) * cin
    n_out = wp * cout
    r_out = td * (hp + 2)
    r_in = (td + 2) * (hp + 2) + 2            # +2 guard rows so halo-row slices stay in bounds

    # ---- glue (XLA): zero-pad, bf16, build halo'd depth slabs, flatten rows=(d,h), cols=(w,c)
    xpad = jnp.pad(x_act, ((0, 0), (1, 1), (1, 1), (1, 1), (0, 0))).astype(jnp.bfloat16)
    slabs = jnp.stack([xpad[:, i * td: i * td + td + 2] for i in range(ndb)], axis=1)
    slabs = slabs.reshape(g, (td + 2) * (hp + 2), k_in)
    slabs = jnp.pad(slabs, ((0, 0), (0, 2), (0, 0)))          # guard rows

    # ---- banded weights: B[kd*3+kh][(w+kw)*cin+ci, w*cout+co] = W[co, ci, kd, kh, kw]
    w_t = jnp.transpose(w, (2, 3, 4, 1, 0)).astype(jnp.float32)   # (3,3,3,cin,cout)
    w_flat = w_t.reshape(3, 3, 3 * cin, cout)
    band = jnp.zeros((3, 3, k_in, n_out), jnp.float32)
    for wo in range(wp):
        band = band.at[:, :, wo * cin: wo * cin + 3 * cin,
                       wo * cout: (wo + 1) * cout].set(w_flat)
    band = band.reshape(9, k_in, n_out).astype(jnp.bfloat16)
    b_full = jnp.tile(b, wp).reshape(1, n_out).astype(jnp.float32)

    # ---- pass 1: conv + bias, emit pre-BN output and per-tile (sum, sumsq) partials
    conv_kernel = functools.partial(_conv_pass_kernel, hp=hp, r_out=r_out)
    y_pre, stats = pl.pallas_call(
        conv_kernel,
        grid=(g,),
        in_specs=[
            pl.BlockSpec((1, r_in, k_in), lambda i: (i, 0, 0)),
            pl.BlockSpec((9, k_in, n_out), lambda i: (0, 0, 0)),   # resident weights
            pl.BlockSpec((1, n_out), lambda i: (0, 0)),            # resident bias
        ],
        out_specs=(
            pl.BlockSpec((1, r_out, n_out), lambda i: (i, 0, 0)),
            pl.BlockSpec((1, 8, n_out), lambda i: (i, 0, 0)),
        ),
        out_shape=(
            jax.ShapeDtypeStruct((g, r_out, n_out), jnp.float32),
            jax.ShapeDtypeStruct((g, 8, n_out), jnp.float32),
        ),
        compiler_params=_parallel_params(),
    )(slabs, band, b_full)

    # ---- tiny XLA reduction of the partials -> per-channel affine (a, c)
    m_count = float(n * dp * hp * wp)
    s1 = stats[:, 0, :].sum(axis=0).reshape(wp, cout).sum(axis=0)
    s2 = stats[:, 1, :].sum(axis=0).reshape(wp, cout).sum(axis=0)
    mean = s1 / m_count
    var = jnp.maximum(s2 / m_count - mean * mean, 0.0)
    a = gamma * lax.rsqrt(var + BN_EPS)
    c = beta - mean * a
    a_full = jnp.tile(a, wp).reshape(1, n_out).astype(jnp.float32)
    c_full = jnp.tile(c, wp).reshape(1, n_out).astype(jnp.float32)

    # ---- pass 2: y*a + c, ReLU (tiled, lane-dense elementwise)
    total_rows = g * r_out
    bm = min(total_rows, 256)
    y_act = pl.pallas_call(
        _bn_relu_kernel,
        grid=(pl.cdiv(total_rows, bm),),
        in_specs=[
            pl.BlockSpec((bm, n_out), lambda i: (i, 0)),
            pl.BlockSpec((1, n_out), lambda i: (0, 0)),
            pl.BlockSpec((1, n_out), lambda i: (0, 0)),
        ],
        out_specs=pl.BlockSpec((bm, n_out), lambda i: (i, 0)),
        out_shape=jax.ShapeDtypeStruct((total_rows, n_out), out_dtype),
        compiler_params=_parallel_params(),
    )(y_pre.reshape(total_rows, n_out), a_full, c_full)

    # drop the h-halo junk rows and restore (N, Dp, Hp, Wp, Cout)
    y_act = y_act.reshape(n, ndb, td, hp + 2, wp, cout)[:, :, :, :hp]
    return y_act.reshape(n, dp, hp, wp, cout)


@jax.jit
def down3d_forward(x_ncdhw, params):
    """Down3D forward. x: (N, Cin, D, H, W) f32 -> (N, Cout, D/2, H/2, W/2) f32."""
    xp = _maxpool3d_2x(x_ncdhw)
    y = _conv_bn_relu_layer(xp, params["w1"], params["b1"], params["g1"], params["bt1"],
                            out_dtype=jnp.bfloat16)
    y = _conv_bn_relu_layer(y, params["w2"], params["b2"], params["g2"], params["bt2"],
                            out_dtype=jnp.float32)
    return jnp.transpose(y, (0, 4, 1, 2, 3))


# ----------------------------- params & reference -----------------------------

def init_params(key, in_channels, out_channels):
    def conv_init(k, cout, cin):
        kw, kb = jax.random.split(k)
        fan_in = cin * 27
        bound = 1.0 / jnp.sqrt(fan_in)
        w = jax.random.uniform(kw, (cout, cin, 3, 3, 3), jnp.float32, -bound, bound)
        b = jax.random.uniform(kb, (cout,), jnp.float32, -bound, bound)
        return w, b

    k1, k2 = jax.random.split(key)
    w1, b1 = conv_init(k1, out_channels, in_channels)
    w2, b2 = conv_init(k2, out_channels, out_channels)
    return {
        "w1": w1, "b1": b1,
        "g1": jnp.ones((out_channels,), jnp.float32),
        "bt1": jnp.zeros((out_channels,), jnp.float32),
        "w2": w2, "b2": b2,
        "g2": jnp.ones((out_channels,), jnp.float32),
        "bt2": jnp.zeros((out_channels,), jnp.float32),
    }


def _ref_forward(x, params):
    """Pure-JAX f32 reference (NCDHW) mirroring the PyTorch forward (training-mode BN)."""
    n, c, d, h, w = x.shape
    xp = x.reshape(n, c, d // 2, 2, h // 2, 2, w // 2, 2).max(axis=(3, 5, 7))

    def conv_bn_relu(x, wgt, b, g, bt):
        y = lax.conv_general_dilated(
            x, wgt, window_strides=(1, 1, 1),
            padding=((1, 1), (1, 1), (1, 1)),
            dimension_numbers=("NCDHW", "OIDHW", "NCDHW"),
            precision=lax.Precision.HIGHEST,
        )
        y = y + b[None, :, None, None, None]
        mean = y.mean(axis=(0, 2, 3, 4), keepdims=True)
        var = ((y - mean) ** 2).mean(axis=(0, 2, 3, 4), keepdims=True)
        y = (y - mean) * lax.rsqrt(var + BN_EPS)
        y = y * g[None, :, None, None, None] + bt[None, :, None, None, None]
        return jnp.maximum(y, 0.0)

    y = conv_bn_relu(xp, params["w1"], params["b1"], params["g1"], params["bt1"])
    y = conv_bn_relu(y, params["w2"], params["b2"], params["g2"], params["bt2"])
    return y


# ----------------------------- main -----------------------------

if __name__ == "__main__":
    key = jax.random.PRNGKey(0)
    k_x, k_p = jax.random.split(key)

    N, CIN, COUT, D, H, W = 2, 4, 8, 16, 16, 16
    x = jax.random.normal(k_x, (N, CIN, D, H, W), jnp.float32)
    params = init_params(k_p, CIN, COUT)

    out = jax.block_until_ready(down3d_forward(x, params))
    assert out.shape == (N, COUT, D // 2, H // 2, W // 2), out.shape

    ref = jax.block_until_ready(_ref_forward(x, params))
    err = float(jnp.max(jnp.abs(out - ref)))
    # bf16 MXU operands (per the perf guidance); compare against the pure-f32 reference at a
    # correspondingly relaxed tolerance.  BN renormalization keeps the error small.
    assert jnp.allclose(out, ref, atol=5e-2, rtol=5e-2), err

    print("KERNEL_OK")
</pallas_src>

<mosaic_0001>
module attributes {stable_mosaic.version = 11 : i64} {
  func.func @_maxpool_kernel(%arg0: i32, %arg1: memref<64x8x32xf32, #tpu.memory_space<vmem>>, %arg2: memref<64x32xbf16, #tpu.memory_space<vmem>>) attributes {dimension_semantics = [#tpu.dimension_semantics<parallel>], iteration_bounds = array<i64: 2>, scalar_prefetch = 0 : i64, scratch_operands = 0 : i64, tpu.core_type = #tpu.core_type<tc>, window_params = [{transform_indices = @transform_0, window_bounds = array<i64: 64, 8, 32>}, {transform_indices = @transform_1, window_bounds = array<i64: 64, 32>}]} {
    %c0 = arith.constant 0 : index
    %c0_0 = arith.constant 0 : index
    %c0_1 = arith.constant 0 : index
    %0 = vector.load %arg1[%c0, %c0_0, %c0_1] : memref<64x8x32xf32, #tpu.memory_space<vmem>>, vector<64x8x32xf32>
    %cst = arith.constant dense<0xFF800000> : vector<64x32xf32>
    %1 = vector.multi_reduction <maximumf>, %0, %cst [1] : vector<64x8x32xf32> to vector<64x32xf32>
    %2 = arith.truncf %1 : vector<64x32xf32> to vector<64x32xbf16>
    %c0_2 = arith.constant 0 : index
    %c0_3 = arith.constant 0 : index
    %3 = vector.load %arg2[%c0_2, %c0_3] : memref<64x32xbf16, #tpu.memory_space<vmem>>, vector<64x32xbf16>
    tpu.vector_store %arg2[%c0_2, %c0_3], %2 {strides = array<i32>} : memref<64x32xbf16, #tpu.memory_space<vmem>>, vector<64x32xbf16>,
    return
  }
  func.func @transform_0(%arg0: i32) -> (i32, i32, i32) {
    %c0_i32 = arith.constant 0 : i32
    %c0_i32_0 = arith.constant 0 : i32
    %c0_i32_1 = arith.constant 0 : i32
    return %arg0, %c0_i32, %c0_i32_0 : i32, i32, i32
  }
  func.func @transform_1(%arg0: i32) -> (i32, i32) {
    %c0_i32 = arith.constant 0 : i32
    %c0_i32_0 = arith.constant 0 : i32
    return %arg0, %c0_i32 : i32, i32
  }
}

module attributes {stable_mosaic.version = 11 : i64} {
  func.func @_conv_pass_kernel(%arg0: i32, %arg1: memref<1x102x40xbf16, #tpu.memory_space<vmem>>, %arg2: memref<9x40x64xbf16, #tpu.memory_space<vmem>>, %arg3: memref<1x64xf32, #tpu.memory_space<vmem>>, %arg4: memref<1x80x64xf32, #tpu.memory_space<vmem>>, %arg5: memref<1x8x64xf32, #tpu.memory_space<vmem>>) attributes {dimension_semantics = [#tpu.dimension_semantics<parallel>], iteration_bounds = array<i64: 2>, scalar_prefetch = 0 : i64, scratch_operands = 0 : i64, tpu.core_type = #tpu.core_type<tc>, window_params = [{transform_indices = @transform_0, window_bounds = array<i64: 1, 102, 40>}, {pipeline_mode = #tpu.pipeline_mode<synchronous>, transform_indices = @transform_1, window_bounds = array<i64: 9, 40, 64>}, {pipeline_mode = #tpu.pipeline_mode<synchronous>, transform_indices = @transform_2, window_bounds = array<i64: 1, 64>}, {transform_indices = @transform_3, window_bounds = array<i64: 1, 80, 64>}, {transform_indices = @transform_4, window_bounds = array<i64: 1, 8, 64>}]} {
    %cst = arith.constant 0.000000e+00 : f32
    %0 = vector.broadcast %cst : f32 to vector<80x64xf32>
    %c0 = arith.constant 0 : index
    %c0_0 = arith.constant 0 : index
    %c0_1 = arith.constant 0 : index
    %1 = vector.load %arg1[%c0, %c0_0, %c0_1] : memref<1x102x40xbf16, #tpu.memory_space<vmem>>, vector<1x80x40xbf16>
    %2 = vector.shape_cast %1 : vector<1x80x40xbf16> to vector<80x40xbf16>
    %c0_2 = arith.constant 0 : index
    %c0_3 = arith.constant 0 : index
    %c0_4 = arith.constant 0 : index
    %3 = vector.load %arg2[%c0_2, %c0_3, %c0_4] : memref<9x40x64xbf16, #tpu.memory_space<vmem>>, vector<1x40x64xbf16>
    %4 = vector.shape_cast %3 : vector<1x40x64xbf16> to vector<40x64xbf16>
    %cst_5 = arith.constant dense<0.000000e+00> : vector<80x64xf32>
    %5 = tpu.matmul %2, %4, %cst_5 {dimension_numbers = #tpu.dot_dimension_numbers<[1], [0], [0], [1], [0, 0, 1, 1], [], []>} : vector<80x40xbf16>, vector<40x64xbf16>, vector<80x64xf32> -> vector<80x64xf32>
    %6 = arith.addf %0, %5 : vector<80x64xf32>
    %c0_6 = arith.constant 0 : index
    %c1 = arith.constant 1 : index
    %c0_7 = arith.constant 0 : index
    %7 = vector.load %arg1[%c0_6, %c1, %c0_7] : memref<1x102x40xbf16, #tpu.memory_space<vmem>>, vector<1x80x40xbf16>
    %8 = vector.shape_cast %7 : vector<1x80x40xbf16> to vector<80x40xbf16>
    %c1_8 = arith.constant 1 : index
    %c0_9 = arith.constant 0 : index
    %c0_10 = arith.constant 0 : index
    %9 = vector.load %arg2[%c1_8, %c0_9, %c0_10] : memref<9x40x64xbf16, #tpu.memory_space<vmem>>, vector<1x40x64xbf16>
    %10 = vector.shape_cast %9 : vector<1x40x64xbf16> to vector<40x64xbf16>
    %cst_11 = arith.constant dense<0.000000e+00> : vector<80x64xf32>
    %11 = tpu.matmul %8, %10, %cst_11 {dimension_numbers = #tpu.dot_dimension_numbers<[1], [0], [0], [1], [0, 0, 1, 1], [], []>} : vector<80x40xbf16>, vector<40x64xbf16>, vector<80x64xf32> -> vector<80x64xf32>
    %12 = arith.addf %6, %11 : vector<80x64xf32>
    %c0_12 = arith.constant 0 : index
    %c2 = arith.constant 2 : index
    %c0_13 = arith.constant 0 : index
    %13 = vector.load %arg1[%c0_12, %c2, %c0_13] : memref<1x102x40xbf16, #tpu.memory_space<vmem>>, vector<1x80x40xbf16>
    %14 = vector.shape_cast %13 : vector<1x80x40xbf16> to vector<80x40xbf16>
    %c2_14 = arith.constant 2 : index
    %c0_15 = arith.constant 0 : index
    %c0_16 = arith.constant 0 : index
    %15 = vector.load %arg2[%c2_14, %c0_15, %c0_16] : memref<9x40x64xbf16, #tpu.memory_space<vmem>>, vector<1x40x64xbf16>
    %16 = vector.shape_cast %15 : vector<1x40x64xbf16> to vector<40x64xbf16>
    %cst_17 = arith.constant dense<0.000000e+00> : vector<80x64xf32>
    %17 = tpu.matmul %14, %16, %cst_17 {dimension_numbers = #tpu.dot_dimension_numbers<[1], [0], [0], [1], [0, 0, 1, 1], [], []>} : vector<80x40xbf16>, vector<40x64xbf16>, vector<80x64xf32> -> vector<80x64xf32>
    %18 = arith.addf %12, %17 : vector<80x64xf32>
    %c0_18 = arith.constant 0 : index
    %c10 = arith.constant 10 : index
    %c0_19 = arith.constant 0 : index
    %19 = vector.load %arg1[%c0_18, %c10, %c0_19] : memref<1x102x40xbf16, #tpu.memory_space<vmem>>, vector<1x80x40xbf16>
    %20 = vector.shape_cast %19 : vector<1x80x40xbf16> to vector<80x40xbf16>
    %c3 = arith.constant 3 : index
    %c0_20 = arith.constant 0 : index
    %c0_21 = arith.constant 0 : index
    %21 = vector.load %arg2[%c3, %c0_20, %c0_21] : memref<9x40x64xbf16, #tpu.memory_space<vmem>>, vector<1x40x64xbf16>
    %22 = vector.shape_cast %21 : vector<1x40x64xbf16> to vector<40x64xbf16>
    %cst_22 = arith.constant dense<0.000000e+00> : vector<80x64xf32>
    %23 = tpu.matmul %20, %22, %cst_22 {dimension_numbers = #tpu.dot_dimension_numbers<[1], [0], [0], [1], [0, 0, 1, 1], [], []>} : vector<80x40xbf16>, vector<40x64xbf16>, vector<80x64xf32> -> vector<80x64xf32>
    %24 = arith.addf %18, %23 : vector<80x64xf32>
    %c0_23 = arith.constant 0 : index
    %c11 = arith.constant 11 : index
    %c0_24 = arith.constant 0 : index
    %25 = vector.load %arg1[%c0_23, %c11, %c0_24] : memref<1x102x40xbf16, #tpu.memory_space<vmem>>, vector<1x80x40xbf16>
    %26 = vector.shape_cast %25 : vector<1x80x40xbf16> to vector<80x40xbf16>
    %c4 = arith.constant 4 : index
    %c0_25 = arith.constant 0 : index
    %c0_26 = arith.constant 0 : index
    %27 = vector.load %arg2[%c4, %c0_25, %c0_26] : memref<9x40x64xbf16, #tpu.memory_space<vmem>>, vector<1x40x64xbf16>
    %28 = vector.shape_cast %27 : vector<1x40x64xbf16> to vector<40x64xbf16>
    %cst_27 = arith.constant dense<0.000000e+00> : vector<80x64xf32>
    %29 = tpu.matmul %26, %28, %cst_27 {dimension_numbers = #tpu.dot_dimension_numbers<[1], [0], [0], [1], [0, 0, 1, 1], [], []>} : vector<80x40xbf16>, vector<40x64xbf16>, vector<80x64xf32> -> vector<80x64xf32>
    %30 = arith.addf %24, %29 : vector<80x64xf32>
    %c0_28 = arith.constant 0 : index
    %c12 = arith.constant 12 : index
    %c0_29 = arith.constant 0 : index
    %31 = vector.load %arg1[%c0_28, %c12, %c0_29] : memref<1x102x40xbf16, #tpu.memory_space<vmem>>, vector<1x80x40xbf16>
    %32 = vector.shape_cast %31 : vector<1x80x40xbf16> to vector<80x40xbf16>
    %c5 = arith.constant 5 : index
    %c0_30 = arith.constant 0 : index
    %c0_31 = arith.constant 0 : index
    %33 = vector.load %arg2[%c5, %c0_30, %c0_31] : memref<9x40x64xbf16, #tpu.memory_space<vmem>>, vector<1x40x64xbf16>
    %34 = vector.shape_cast %33 : vector<1x40x64xbf16> to vector<40x64xbf16>
    %cst_32 = arith.constant dense<0.000000e+00> : vector<80x64xf32>
    %35 = tpu.matmul %32, %34, %cst_32 {dimension_numbers = #tpu.dot_dimension_numbers<[1], [0], [0], [1], [0, 0, 1, 1], [], []>} : vector<80x40xbf16>, vector<40x64xbf16>, vector<80x64xf32> -> vector<80x64xf32>
    %36 = arith.addf %30, %35 : vector<80x64xf32>
    %c0_33 = arith.constant 0 : index
    %c20 = arith.constant 20 : index
    %c0_34 = arith.constant 0 : index
    %37 = vector.load %arg1[%c0_33, %c20, %c0_34] : memref<1x102x40xbf16, #tpu.memory_space<vmem>>, vector<1x80x40xbf16>
    %38 = vector.shape_cast %37 : vector<1x80x40xbf16> to vector<80x40xbf16>
    %c6 = arith.constant 6 : index
    %c0_35 = arith.constant 0 : index
    %c0_36 = arith.constant 0 : index
    %39 = vector.load %arg2[%c6, %c0_35, %c0_36] : memref<9x40x64xbf16, #tpu.memory_space<vmem>>, vector<1x40x64xbf16>
    %40 = vector.shape_cast %39 : vector<1x40x64xbf16> to vector<40x64xbf16>
    %cst_37 = arith.constant dense<0.000000e+00> : vector<80x64xf32>
    %41 = tpu.matmul %38, %40, %cst_37 {dimension_numbers = #tpu.dot_dimension_numbers<[1], [0], [0], [1], [0, 0, 1, 1], [], []>} : vector<80x40xbf16>, vector<40x64xbf16>, vector<80x64xf32> -> vector<80x64xf32>
    %42 = arith.addf %36, %41 : vector<80x64xf32>
    %c0_38 = arith.constant 0 : index
    %c21 = arith.constant 21 : index
    %c0_39 = arith.constant 0 : index
    %43 = vector.load %arg1[%c0_38, %c21, %c0_39] : memref<1x102x40xbf16, #tpu.memory_space<vmem>>, vector<1x80x40xbf16>
    %44 = vector.shape_cast %43 : vector<1x80x40xbf16> to vector<80x40xbf16>
    %c7 = arith.constant 7 : index
    %c0_40 = arith.constant 0 : index
    %c0_41 = arith.constant 0 : index
    %45 = vector.load %arg2[%c7, %c0_40, %c0_41] : memref<9x40x64xbf16, #tpu.memory_space<vmem>>, vector<1x40x64xbf16>
    %46 = vector.shape_cast %45 : vector<1x40x64xbf16> to vector<40x64xbf16>
    %cst_42 = arith.constant dense<0.000000e+00> : vector<80x64xf32>
    %47 = tpu.matmul %44, %46, %cst_42 {dimension_numbers = #tpu.dot_dimension_numbers<[1], [0], [0], [1], [0, 0, 1, 1], [], []>} : vector<80x40xbf16>, vector<40x64xbf16>, vector<80x64xf32> -> vector<80x64xf32>
    %48 = arith.addf %42, %47 : vector<80x64xf32>
    %c0_43 = arith.constant 0 : index
    %c22 = arith.constant 22 : index
    %c0_44 = arith.constant 0 : index
    %49 = vector.load %arg1[%c0_43, %c22, %c0_44] : memref<1x102x40xbf16, #tpu.memory_space<vmem>>, vector<1x80x40xbf16>
    %50 = vector.shape_cast %49 : vector<1x80x40xbf16> to vector<80x40xbf16>
    %c8 = arith.constant 8 : index
    %c0_45 = arith.constant 0 : index
    %c0_46 = arith.constant 0 : index
    %51 = vector.load %arg2[%c8, %c0_45, %c0_46] : memref<9x40x64xbf16, #tpu.memory_space<vmem>>, vector<1x40x64xbf16>
    %52 = vector.shape_cast %51 : vector<1x40x64xbf16> to vector<40x64xbf16>
    %cst_47 = arith.constant dense<0.000000e+00> : vector<80x64xf32>
    %53 = tpu.matmul %50, %52, %cst_47 {dimension_numbers = #tpu.dot_dimension_numbers<[1], [0], [0], [1], [0, 0, 1, 1], [], []>} : vector<80x40xbf16>, vector<40x64xbf16>, vector<80x64xf32> -> vector<80x64xf32>
    %54 = arith.addf %48, %53 : vector<80x64xf32>
    %c0_48 = arith.constant 0 : index
    %c0_49 = arith.constant 0 : index
    %55 = vector.load %arg3[%c0_48, %c0_49] : memref<1x64xf32, #tpu.memory_space<vmem>>, vector<1x64xf32>
    %56 = vector.broadcast %55 : vector<1x64xf32> to vector<80x64xf32>
    %57 = arith.addf %54, %56 : vector<80x64xf32>
    %58 = tpu.iota {dimensions = array<i32: 0>} : vector<80x64xi32>
    %c10_i32 = arith.constant 10 : i32
    %c0_i32 = arith.constant 0 : i32
    %59 = arith.cmpi eq, %c10_i32, %c0_i32 : i32
    %c1_i32 = arith.constant 1 : i32
    %60 = arith.select %59, %c1_i32, %c10_i32 : i32
    %61 = vector.broadcast %60 : i32 to vector<80x64xi32>
    %62 = arith.remsi %58, %61 : vector<80x64xi32>
    %c0_i32_50 = arith.constant 0 : i32
    %63 = vector.broadcast %c0_i32_50 : i32 to vector<80x64xi32>
    %64 = arith.cmpi ne, %62, %63 : vector<80x64xi32>
    %c0_i32_51 = arith.constant 0 : i32
    %65 = vector.broadcast %c0_i32_51 : i32 to vector<80x64xi32>
    %66 = arith.cmpi slt, %62, %65 : vector<80x64xi32>
    %c0_i32_52 = arith.constant 0 : i32
    %67 = arith.cmpi slt, %60, %c0_i32_52 : i32
    %68 = vector.broadcast %67 : i1 to vector<80x64xi1>
    %69 = vector.broadcast %68 : vector<80x64xi1> to vector<80x64xi1>
    %70 = arith.xori %66, %69 : vector<80x64xi1>
    %71 = arith.andi %70, %64 : vector<80x64xi1>
    %72 = vector.broadcast %60 : i32 to vector<80x64xi32>
    %73 = arith.addi %62, %72 : vector<80x64xi32>
    %74 = arith.select %71, %73, %62 : vector<80x64xi1>, vector<80x64xi32>
    %c8_i32 = arith.constant 8 : i32
    %75 = vector.broadcast %c8_i32 : i32 to vector<80x64xi32>
    %76 = arith.cmpi slt, %74, %75 : vector<80x64xi32>
    %cst_53 = arith.constant 0.000000e+00 : f32
    %77 = vector.broadcast %cst_53 : f32 to vector<80x64xf32>
    %78 = arith.select %76, %57, %77 : vector<80x64xi1>, vector<80x64xf32>
    %cst_54 = arith.constant dense<0.000000e+00> : vector<64xf32>
    %79 = vector.multi_reduction <add>, %78, %cst_54 [0] : vector<80x64xf32> to vector<64xf32>
    %80 = vector.shape_cast %79 : vector<64xf32> to vector<1x64xf32>
    %c0_55 = arith.constant 0 : index
    %c0_56 = arith.constant 0 : index
    %c0_57 = arith.constant 0 : index
    %81 = vector.load %arg5[%c0_55, %c0_56, %c0_57] : memref<1x8x64xf32, #tpu.memory_space<vmem>>, vector<1x1x64xf32>
    %82 = vector.shape_cast %81 : vector<1x1x64xf32> to vector<1x64xf32>
    %83 = vector.shape_cast %80 : vector<1x64xf32> to vector<1x1x64xf32>
    tpu.vector_store %arg5[%c0_55, %c0_56, %c0_57], %83 {strides = array<i32>} : memref<1x8x64xf32, #tpu.memory_space<vmem>>, vector<1x1x64xf32>,
    %84 = arith.mulf %78, %78 : vector<80x64xf32>
    %cst_58 = arith.constant dense<0.000000e+00> : vector<64xf32>
    %85 = vector.multi_reduction <add>, %84, %cst_58 [0] : vector<80x64xf32> to vector<64xf32>
    %86 = vector.shape_cast %85 : vector<64xf32> to vector<1x64xf32>
    %c0_59 = arith.constant 0 : index
    %c1_60 = arith.constant 1 : index
    %c0_61 = arith.constant 0 : index
    %87 = vector.load %arg5[%c0_59, %c1_60, %c0_61] : memref<1x8x64xf32, #tpu.memory_space<vmem>>, vector<1x1x64xf32>
    %88 = vector.shape_cast %87 : vector<1x1x64xf32> to vector<1x64xf32>
    %89 = vector.shape_cast %86 : vector<1x64xf32> to vector<1x1x64xf32>
    tpu.vector_store %arg5[%c0_59, %c1_60, %c0_61], %89 {strides = array<i32>} : memref<1x8x64xf32, #tpu.memory_space<vmem>>, vector<1x1x64xf32>,
    %cst_62 = arith.constant 0.000000e+00 : f32
    %90 = vector.broadcast %cst_62 : f32 to vector<6x64xf32>
    %c0_63 = arith.constant 0 : index
    %c2_64 = arith.constant 2 : index
    %c0_65 = arith.constant 0 : index
    %91 = vector.load %arg5[%c0_63, %c2_64, %c0_65] : memref<1x8x64xf32, #tpu.memory_space<vmem>>, vector<1x6x64xf32>
    %92 = vector.shape_cast %91 : vector<1x6x64xf32> to vector<6x64xf32>
    %93 = vector.shape_cast %90 : vector<6x64xf32> to vector<1x6x64xf32>
    tpu.vector_store %arg5[%c0_63, %c2_64, %c0_65], %93 {strides = array<i32>} : memref<1x8x64xf32, #tpu.memory_space<vmem>>, vector<1x6x64xf32>,
    %c0_66 = arith.constant 0 : index
    %c0_67 = arith.constant 0 : index
    %c0_68 = arith.constant 0 : index
    %94 = vector.load %arg4[%c0_66, %c0_67, %c0_68] : memref<1x80x64xf32, #tpu.memory_space<vmem>>, vector<1x80x64xf32>
    %95 = vector.shape_cast %94 : vector<1x80x64xf32> to vector<80x64xf32>
    %96 = vector.shape_cast %57 : vector<80x64xf32> to vector<1x80x64xf32>
    tpu.vector_store %arg4[%c0_66, %c0_67, %c0_68], %96 {strides = array<i32>} : memref<1x80x64xf32, #tpu.memory_space<vmem>>, vector<1x80x64xf32>,
    return
  }
  func.func @transform_0(%arg0: i32) -> (i32, i32, i32) {
    %c0_i32 = arith.constant 0 : i32
    %c0_i32_0 = arith.constant 0 : i32
    %c0_i32_1 = arith.constant 0 : i32
    return %arg0, %c0_i32, %c0_i32_0 : i32, i32, i32
  }
  func.func @transform_1(%arg0: i32) -> (i32, i32, i32) {
    %c0_i32 = arith.constant 0 : i32
    %c0_i32_0 = arith.constant 0 : i32
    %c0_i32_1 = arith.constant 0 : i32
    %c0_i32_2 = arith.constant 0 : i32
    return %c0_i32, %c0_i32_0, %c0_i32_1 : i32, i32, i32
  }
  func.func @transform_2(%arg0: i32) -> (i32, i32) {
    %c0_i32 = arith.constant 0 : i32
    %c0_i32_0 = arith.constant 0 : i32
    %c0_i32_1 = arith.constant 0 : i32
    return %c0_i32, %c0_i32_0 : i32, i32
  }
  func.func @transform_3(%arg0: i32) -> (i32, i32, i32) {
    %c0_i32 = arith.constant 0 : i32
    %c0_i32_0 = arith.constant 0 : i32
    %c0_i32_1 = arith.constant 0 : i32
    return %arg0, %c0_i32, %c0_i32_0 : i32, i32, i32
  }
  func.func @transform_4(%arg0: i32) -> (i32, i32, i32) {
    %c0_i32 = arith.constant 0 : i32
    %c0_i32_0 = arith.constant 0 : i32
    %c0_i32_1 = arith.constant 0 : i32
    return %arg0, %c0_i32, %c0_i32_0 : i32, i32, i32
  }
}

module attributes {stable_mosaic.version = 11 : i64} {
  func.func @_bn_relu_kernel(%arg0: i32, %arg1: memref<160x64xf32, #tpu.memory_space<vmem>>, %arg2: memref<1x64xf32, #tpu.memory_space<vmem>>, %arg3: memref<1x64xf32, #tpu.memory_space<vmem>>, %arg4: memref<160x64xbf16, #tpu.memory_space<vmem>>) attributes {dimension_semantics = [#tpu.dimension_semantics<parallel>], iteration_bounds = array<i64: 1>, scalar_prefetch = 0 : i64, scratch_operands = 0 : i64, tpu.core_type = #tpu.core_type<tc>, window_params = [{transform_indices = @transform_0, window_bounds = array<i64: 160, 64>}, {pipeline_mode = #tpu.pipeline_mode<synchronous>, transform_indices = @transform_1, window_bounds = array<i64: 1, 64>}, {pipeline_mode = #tpu.pipeline_mode<synchronous>, transform_indices = @transform_2, window_bounds = array<i64: 1, 64>}, {transform_indices = @transform_3, window_bounds = array<i64: 160, 64>}]} {
    %c0 = arith.constant 0 : index
    %c0_0 = arith.constant 0 : index
    %0 = vector.load %arg1[%c0, %c0_0] : memref<160x64xf32, #tpu.memory_space<vmem>>, vector<160x64xf32>
    %c0_1 = arith.constant 0 : index
    %c0_2 = arith.constant 0 : index
    %1 = vector.load %arg2[%c0_1, %c0_2] : memref<1x64xf32, #tpu.memory_space<vmem>>, vector<1x64xf32>
    %2 = vector.broadcast %1 : vector<1x64xf32> to vector<160x64xf32>
    %3 = arith.mulf %0, %2 : vector<160x64xf32>
    %c0_3 = arith.constant 0 : index
    %c0_4 = arith.constant 0 : index
    %4 = vector.load %arg3[%c0_3, %c0_4] : memref<1x64xf32, #tpu.memory_space<vmem>>, vector<1x64xf32>
    %5 = vector.broadcast %4 : vector<1x64xf32> to vector<160x64xf32>
    %6 = arith.addf %3, %5 : vector<160x64xf32>
    %cst = arith.constant 0.000000e+00 : f32
    %7 = vector.broadcast %cst : f32 to vector<160x64xf32>
    %8 = arith.maximumf %6, %7 : vector<160x64xf32>
    %9 = arith.truncf %8 : vector<160x64xf32> to vector<160x64xbf16>
    %c0_5 = arith.constant 0 : index
    %c0_6 = arith.constant 0 : index
    %10 = vector.load %arg4[%c0_5, %c0_6] : memref<160x64xbf16, #tpu.memory_space<vmem>>, vector<160x64xbf16>
    tpu.vector_store %arg4[%c0_5, %c0_6], %9 {strides = array<i32>} : memref<160x64xbf16, #tpu.memory_space<vmem>>, vector<160x64xbf16>,
    return
  }
  func.func @transform_0(%arg0: i32) -> (i32, i32) {
    %c0_i32 = arith.constant 0 : i32
    %c0_i32_0 = arith.constant 0 : i32
    return %arg0, %c0_i32 : i32, i32
  }
  func.func @transform_1(%arg0: i32) -> (i32, i32) {
    %c0_i32 = arith.constant 0 : i32
    %c0_i32_0 = arith.constant 0 : i32
    %c0_i32_1 = arith.constant 0 : i32
    return %c0_i32, %c0_i32_0 : i32, i32
  }
  func.func @transform_2(%arg0: i32) -> (i32, i32) {
    %c0_i32 = arith.constant 0 : i32
    %c0_i32_0 = arith.constant 0 : i32
    %c0_i32_1 = arith.constant 0 : i32
    return %c0_i32, %c0_i32_0 : i32, i32
  }
  func.func @transform_3(%arg0: i32) -> (i32, i32) {
    %c0_i32 = arith.constant 0 : i32
    %c0_i32_0 = arith.constant 0 : i32
    return %arg0, %c0_i32 : i32, i32
  }
}

module attributes {stable_mosaic.version = 11 : i64} {
  func.func @_bn_relu_kernel(%arg0: i32, %arg1: memref<160x64xf32, #tpu.memory_space<vmem>>, %arg2: memref<1x64xf32, #tpu.memory_space<vmem>>, %arg3: memref<1x64xf32, #tpu.memory_space<vmem>>, %arg4: memref<160x64xf32, #tpu.memory_space<vmem>>) attributes {dimension_semantics = [#tpu.dimension_semantics<parallel>], iteration_bounds = array<i64: 1>, scalar_prefetch = 0 : i64, scratch_operands = 0 : i64, tpu.core_type = #tpu.core_type<tc>, window_params = [{transform_indices = @transform_0, window_bounds = array<i64: 160, 64>}, {pipeline_mode = #tpu.pipeline_mode<synchronous>, transform_indices = @transform_1, window_bounds = array<i64: 1, 64>}, {pipeline_mode = #tpu.pipeline_mode<synchronous>, transform_indices = @transform_2, window_bounds = array<i64: 1, 64>}, {transform_indices = @transform_3, window_bounds = array<i64: 160, 64>}]} {
    %c0 = arith.constant 0 : index
    %c0_0 = arith.constant 0 : index
    %0 = vector.load %arg1[%c0, %c0_0] : memref<160x64xf32, #tpu.memory_space<vmem>>, vector<160x64xf32>
    %c0_1 = arith.constant 0 : index
    %c0_2 = arith.constant 0 : index
    %1 = vector.load %arg2[%c0_1, %c0_2] : memref<1x64xf32, #tpu.memory_space<vmem>>, vector<1x64xf32>
    %2 = vector.broadcast %1 : vector<1x64xf32> to vector<160x64xf32>
    %3 = arith.mulf %0, %2 : vector<160x64xf32>
    %c0_3 = arith.constant 0 : index
    %c0_4 = arith.constant 0 : index
    %4 = vector.load %arg3[%c0_3, %c0_4] : memref<1x64xf32, #tpu.memory_space<vmem>>, vector<1x64xf32>
    %5 = vector.broadcast %4 : vector<1x64xf32> to vector<160x64xf32>
    %6 = arith.addf %3, %5 : vector<160x64xf32>
    %cst = arith.constant 0.000000e+00 : f32
    %7 = vector.broadcast %cst : f32 to vector<160x64xf32>
    %8 = arith.maximumf %6, %7 : vector<160x64xf32>
    %c0_5 = arith.constant 0 : index
    %c0_6 = arith.constant 0 : index
    %9 = vector.load %arg4[%c0_5, %c0_6] : memref<160x64xf32, #tpu.memory_space<vmem>>, vector<160x64xf32>
    tpu.vector_store %arg4[%c0_5, %c0_6], %8 {strides = array<i32>} : memref<160x64xf32, #tpu.memory_space<vmem>>, vector<160x64xf32>,
    return
  }
  func.func @transform_0(%arg0: i32) -> (i32, i32) {
    %c0_i32 = arith.constant 0 : i32
    %c0_i32_0 = arith.constant 0 : i32
    return %arg0, %c0_i32 : i32, i32
  }
  func.func @transform_1(%arg0: i32) -> (i32, i32) {
    %c0_i32 = arith.constant 0 : i32
    %c0_i32_0 = arith.constant 0 : i32
    %c0_i32_1 = arith.constant 0 : i32
    return %c0_i32, %c0_i32_0 : i32, i32
  }
  func.func @transform_2(%arg0: i32) -> (i32, i32) {
    %c0_i32 = arith.constant 0 : i32
    %c0_i32_0 = arith.constant 0 : i32
    %c0_i32_1 = arith.constant 0 : i32
    return %c0_i32, %c0_i32_0 : i32, i32
  }
  func.func @transform_3(%arg0: i32) -> (i32, i32) {
    %c0_i32 = arith.constant 0 : i32
    %c0_i32_0 = arith.constant 0 : i32
    return %arg0, %c0_i32 : i32, i32
  }
}

module attributes {stable_mosaic.version = 11 : i64} {
  func.func @_conv_pass_kernel(%arg0: i32, %arg1: memref<1x102x80xbf16, #tpu.memory_space<vmem>>, %arg2: memref<9x80x64xbf16, #tpu.memory_space<vmem>>, %arg3: memref<1x64xf32, #tpu.memory_space<vmem>>, %arg4: memref<1x80x64xf32, #tpu.memory_space<vmem>>, %arg5: memref<1x8x64xf32, #tpu.memory_space<vmem>>) attributes {dimension_semantics = [#tpu.dimension_semantics<parallel>], iteration_bounds = array<i64: 2>, scalar_prefetch = 0 : i64, scratch_operands = 0 : i64, tpu.core_type = #tpu.core_type<tc>, window_params = [{transform_indices = @transform_0, window_bounds = array<i64: 1, 102, 80>}, {pipeline_mode = #tpu.pipeline_mode<synchronous>, transform_indices = @transform_1, window_bounds = array<i64: 9, 80, 64>}, {pipeline_mode = #tpu.pipeline_mode<synchronous>, transform_indices = @transform_2, window_bounds = array<i64: 1, 64>}, {transform_indices = @transform_3, window_bounds = array<i64: 1, 80, 64>}, {transform_indices = @transform_4, window_bounds = array<i64: 1, 8, 64>}]} {
    %cst = arith.constant 0.000000e+00 : f32
    %0 = vector.broadcast %cst : f32 to vector<80x64xf32>
    %c0 = arith.constant 0 : index
    %c0_0 = arith.constant 0 : index
    %c0_1 = arith.constant 0 : index
    %1 = vector.load %arg1[%c0, %c0_0, %c0_1] : memref<1x102x80xbf16, #tpu.memory_space<vmem>>, vector<1x80x80xbf16>
    %2 = vector.shape_cast %1 : vector<1x80x80xbf16> to vector<80x80xbf16>
    %c0_2 = arith.constant 0 : index
    %c0_3 = arith.constant 0 : index
    %c0_4 = arith.constant 0 : index
    %3 = vector.load %arg2[%c0_2, %c0_3, %c0_4] : memref<9x80x64xbf16, #tpu.memory_space<vmem>>, vector<1x80x64xbf16>
    %4 = vector.shape_cast %3 : vector<1x80x64xbf16> to vector<80x64xbf16>
    %cst_5 = arith.constant dense<0.000000e+00> : vector<80x64xf32>
    %5 = tpu.matmul %2, %4, %cst_5 {dimension_numbers = #tpu.dot_dimension_numbers<[1], [0], [0], [1], [0, 0, 1, 1], [], []>} : vector<80x80xbf16>, vector<80x64xbf16>, vector<80x64xf32> -> vector<80x64xf32>
    %6 = arith.addf %0, %5 : vector<80x64xf32>
    %c0_6 = arith.constant 0 : index
    %c1 = arith.constant 1 : index
    %c0_7 = arith.constant 0 : index
    %7 = vector.load %arg1[%c0_6, %c1, %c0_7] : memref<1x102x80xbf16, #tpu.memory_space<vmem>>, vector<1x80x80xbf16>
    %8 = vector.shape_cast %7 : vector<1x80x80xbf16> to vector<80x80xbf16>
    %c1_8 = arith.constant 1 : index
    %c0_9 = arith.constant 0 : index
    %c0_10 = arith.constant 0 : index
    %9 = vector.load %arg2[%c1_8, %c0_9, %c0_10] : memref<9x80x64xbf16, #tpu.memory_space<vmem>>, vector<1x80x64xbf16>
    %10 = vector.shape_cast %9 : vector<1x80x64xbf16> to vector<80x64xbf16>
    %cst_11 = arith.constant dense<0.000000e+00> : vector<80x64xf32>
    %11 = tpu.matmul %8, %10, %cst_11 {dimension_numbers = #tpu.dot_dimension_numbers<[1], [0], [0], [1], [0, 0, 1, 1], [], []>} : vector<80x80xbf16>, vector<80x64xbf16>, vector<80x64xf32> -> vector<80x64xf32>
    %12 = arith.addf %6, %11 : vector<80x64xf32>
    %c0_12 = arith.constant 0 : index
    %c2 = arith.constant 2 : index
    %c0_13 = arith.constant 0 : index
    %13 = vector.load %arg1[%c0_12, %c2, %c0_13] : memref<1x102x80xbf16, #tpu.memory_space<vmem>>, vector<1x80x80xbf16>
    %14 = vector.shape_cast %13 : vector<1x80x80xbf16> to vector<80x80xbf16>
    %c2_14 = arith.constant 2 : index
    %c0_15 = arith.constant 0 : index
    %c0_16 = arith.constant 0 : index
    %15 = vector.load %arg2[%c2_14, %c0_15, %c0_16] : memref<9x80x64xbf16, #tpu.memory_space<vmem>>, vector<1x80x64xbf16>
    %16 = vector.shape_cast %15 : vector<1x80x64xbf16> to vector<80x64xbf16>
    %cst_17 = arith.constant dense<0.000000e+00> : vector<80x64xf32>
    %17 = tpu.matmul %14, %16, %cst_17 {dimension_numbers = #tpu.dot_dimension_numbers<[1], [0], [0], [1], [0, 0, 1, 1], [], []>} : vector<80x80xbf16>, vector<80x64xbf16>, vector<80x64xf32> -> vector<80x64xf32>
    %18 = arith.addf %12, %17 : vector<80x64xf32>
    %c0_18 = arith.constant 0 : index
    %c10 = arith.constant 10 : index
    %c0_19 = arith.constant 0 : index
    %19 = vector.load %arg1[%c0_18, %c10, %c0_19] : memref<1x102x80xbf16, #tpu.memory_space<vmem>>, vector<1x80x80xbf16>
    %20 = vector.shape_cast %19 : vector<1x80x80xbf16> to vector<80x80xbf16>
    %c3 = arith.constant 3 : index
    %c0_20 = arith.constant 0 : index
    %c0_21 = arith.constant 0 : index
    %21 = vector.load %arg2[%c3, %c0_20, %c0_21] : memref<9x80x64xbf16, #tpu.memory_space<vmem>>, vector<1x80x64xbf16>
    %22 = vector.shape_cast %21 : vector<1x80x64xbf16> to vector<80x64xbf16>
    %cst_22 = arith.constant dense<0.000000e+00> : vector<80x64xf32>
    %23 = tpu.matmul %20, %22, %cst_22 {dimension_numbers = #tpu.dot_dimension_numbers<[1], [0], [0], [1], [0, 0, 1, 1], [], []>} : vector<80x80xbf16>, vector<80x64xbf16>, vector<80x64xf32> -> vector<80x64xf32>
    %24 = arith.addf %18, %23 : vector<80x64xf32>
    %c0_23 = arith.constant 0 : index
    %c11 = arith.constant 11 : index
    %c0_24 = arith.constant 0 : index
    %25 = vector.load %arg1[%c0_23, %c11, %c0_24] : memref<1x102x80xbf16, #tpu.memory_space<vmem>>, vector<1x80x80xbf16>
    %26 = vector.shape_cast %25 : vector<1x80x80xbf16> to vector<80x80xbf16>
    %c4 = arith.constant 4 : index
    %c0_25 = arith.constant 0 : index
    %c0_26 = arith.constant 0 : index
    %27 = vector.load %arg2[%c4, %c0_25, %c0_26] : memref<9x80x64xbf16, #tpu.memory_space<vmem>>, vector<1x80x64xbf16>
    %28 = vector.shape_cast %27 : vector<1x80x64xbf16> to vector<80x64xbf16>
    %cst_27 = arith.constant dense<0.000000e+00> : vector<80x64xf32>
    %29 = tpu.matmul %26, %28, %cst_27 {dimension_numbers = #tpu.dot_dimension_numbers<[1], [0], [0], [1], [0, 0, 1, 1], [], []>} : vector<80x80xbf16>, vector<80x64xbf16>, vector<80x64xf32> -> vector<80x64xf32>
    %30 = arith.addf %24, %29 : vector<80x64xf32>
    %c0_28 = arith.constant 0 : index
    %c12 = arith.constant 12 : index
    %c0_29 = arith.constant 0 : index
    %31 = vector.load %arg1[%c0_28, %c12, %c0_29] : memref<1x102x80xbf16, #tpu.memory_space<vmem>>, vector<1x80x80xbf16>
    %32 = vector.shape_cast %31 : vector<1x80x80xbf16> to vector<80x80xbf16>
    %c5 = arith.constant 5 : index
    %c0_30 = arith.constant 0 : index
    %c0_31 = arith.constant 0 : index
    %33 = vector.load %arg2[%c5, %c0_30, %c0_31] : memref<9x80x64xbf16, #tpu.memory_space<vmem>>, vector<1x80x64xbf16>
    %34 = vector.shape_cast %33 : vector<1x80x64xbf16> to vector<80x64xbf16>
    %cst_32 = arith.constant dense<0.000000e+00> : vector<80x64xf32>
    %35 = tpu.matmul %32, %34, %cst_32 {dimension_numbers = #tpu.dot_dimension_numbers<[1], [0], [0], [1], [0, 0, 1, 1], [], []>} : vector<80x80xbf16>, vector<80x64xbf16>, vector<80x64xf32> -> vector<80x64xf32>
    %36 = arith.addf %30, %35 : vector<80x64xf32>
    %c0_33 = arith.constant 0 : index
    %c20 = arith.constant 20 : index
    %c0_34 = arith.constant 0 : index
    %37 = vector.load %arg1[%c0_33, %c20, %c0_34] : memref<1x102x80xbf16, #tpu.memory_space<vmem>>, vector<1x80x80xbf16>
    %38 = vector.shape_cast %37 : vector<1x80x80xbf16> to vector<80x80xbf16>
    %c6 = arith.constant 6 : index
    %c0_35 = arith.constant 0 : index
    %c0_36 = arith.constant 0 : index
    %39 = vector.load %arg2[%c6, %c0_35, %c0_36] : memref<9x80x64xbf16, #tpu.memory_space<vmem>>, vector<1x80x64xbf16>
    %40 = vector.shape_cast %39 : vector<1x80x64xbf16> to vector<80x64xbf16>
    %cst_37 = arith.constant dense<0.000000e+00> : vector<80x64xf32>
    %41 = tpu.matmul %38, %40, %cst_37 {dimension_numbers = #tpu.dot_dimension_numbers<[1], [0], [0], [1], [0, 0, 1, 1], [], []>} : vector<80x80xbf16>, vector<80x64xbf16>, vector<80x64xf32> -> vector<80x64xf32>
    %42 = arith.addf %36, %41 : vector<80x64xf32>
    %c0_38 = arith.constant 0 : index
    %c21 = arith.constant 21 : index
    %c0_39 = arith.constant 0 : index
    %43 = vector.load %arg1[%c0_38, %c21, %c0_39] : memref<1x102x80xbf16, #tpu.memory_space<vmem>>, vector<1x80x80xbf16>
    %44 = vector.shape_cast %43 : vector<1x80x80xbf16> to vector<80x80xbf16>
    %c7 = arith.constant 7 : index
    %c0_40 = arith.constant 0 : index
    %c0_41 = arith.constant 0 : index
    %45 = vector.load %arg2[%c7, %c0_40, %c0_41] : memref<9x80x64xbf16, #tpu.memory_space<vmem>>, vector<1x80x64xbf16>
    %46 = vector.shape_cast %45 : vector<1x80x64xbf16> to vector<80x64xbf16>
    %cst_42 = arith.constant dense<0.000000e+00> : vector<80x64xf32>
    %47 = tpu.matmul %44, %46, %cst_42 {dimension_numbers = #tpu.dot_dimension_numbers<[1], [0], [0], [1], [0, 0, 1, 1], [], []>} : vector<80x80xbf16>, vector<80x64xbf16>, vector<80x64xf32> -> vector<80x64xf32>
    %48 = arith.addf %42, %47 : vector<80x64xf32>
    %c0_43 = arith.constant 0 : index
    %c22 = arith.constant 22 : index
    %c0_44 = arith.constant 0 : index
    %49 = vector.load %arg1[%c0_43, %c22, %c0_44] : memref<1x102x80xbf16, #tpu.memory_space<vmem>>, vector<1x80x80xbf16>
    %50 = vector.shape_cast %49 : vector<1x80x80xbf16> to vector<80x80xbf16>
    %c8 = arith.constant 8 : index
    %c0_45 = arith.constant 0 : index
    %c0_46 = arith.constant 0 : index
    %51 = vector.load %arg2[%c8, %c0_45, %c0_46] : memref<9x80x64xbf16, #tpu.memory_space<vmem>>, vector<1x80x64xbf16>
    %52 = vector.shape_cast %51 : vector<1x80x64xbf16> to vector<80x64xbf16>
    %cst_47 = arith.constant dense<0.000000e+00> : vector<80x64xf32>
    %53 = tpu.matmul %50, %52, %cst_47 {dimension_numbers = #tpu.dot_dimension_numbers<[1], [0], [0], [1], [0, 0, 1, 1], [], []>} : vector<80x80xbf16>, vector<80x64xbf16>, vector<80x64xf32> -> vector<80x64xf32>
    %54 = arith.addf %48, %53 : vector<80x64xf32>
    %c0_48 = arith.constant 0 : index
    %c0_49 = arith.constant 0 : index
    %55 = vector.load %arg3[%c0_48, %c0_49] : memref<1x64xf32, #tpu.memory_space<vmem>>, vector<1x64xf32>
    %56 = vector.broadcast %55 : vector<1x64xf32> to vector<80x64xf32>
    %57 = arith.addf %54, %56 : vector<80x64xf32>
    %58 = tpu.iota {dimensions = array<i32: 0>} : vector<80x64xi32>
    %c10_i32 = arith.constant 10 : i32
    %c0_i32 = arith.constant 0 : i32
    %59 = arith.cmpi eq, %c10_i32, %c0_i32 : i32
    %c1_i32 = arith.constant 1 : i32
    %60 = arith.select %59, %c1_i32, %c10_i32 : i32
    %61 = vector.broadcast %60 : i32 to vector<80x64xi32>
    %62 = arith.remsi %58, %61 : vector<80x64xi32>
    %c0_i32_50 = arith.constant 0 : i32
    %63 = vector.broadcast %c0_i32_50 : i32 to vector<80x64xi32>
    %64 = arith.cmpi ne, %62, %63 : vector<80x64xi32>
    %c0_i32_51 = arith.constant 0 : i32
    %65 = vector.broadcast %c0_i32_51 : i32 to vector<80x64xi32>
    %66 = arith.cmpi slt, %62, %65 : vector<80x64xi32>
    %c0_i32_52 = arith.constant 0 : i32
    %67 = arith.cmpi slt, %60, %c0_i32_52 : i32
    %68 = vector.broadcast %67 : i1 to vector<80x64xi1>
    %69 = vector.broadcast %68 : vector<80x64xi1> to vector<80x64xi1>
    %70 = arith.xori %66, %69 : vector<80x64xi1>
    %71 = arith.andi %70, %64 : vector<80x64xi1>
    %72 = vector.broadcast %60 : i32 to vector<80x64xi32>
    %73 = arith.addi %62, %72 : vector<80x64xi32>
    %74 = arith.select %71, %73, %62 : vector<80x64xi1>, vector<80x64xi32>
    %c8_i32 = arith.constant 8 : i32
    %75 = vector.broadcast %c8_i32 : i32 to vector<80x64xi32>
    %76 = arith.cmpi slt, %74, %75 : vector<80x64xi32>
    %cst_53 = arith.constant 0.000000e+00 : f32
    %77 = vector.broadcast %cst_53 : f32 to vector<80x64xf32>
    %78 = arith.select %76, %57, %77 : vector<80x64xi1>, vector<80x64xf32>
    %cst_54 = arith.constant dense<0.000000e+00> : vector<64xf32>
    %79 = vector.multi_reduction <add>, %78, %cst_54 [0] : vector<80x64xf32> to vector<64xf32>
    %80 = vector.shape_cast %79 : vector<64xf32> to vector<1x64xf32>
    %c0_55 = arith.constant 0 : index
    %c0_56 = arith.constant 0 : index
    %c0_57 = arith.constant 0 : index
    %81 = vector.load %arg5[%c0_55, %c0_56, %c0_57] : memref<1x8x64xf32, #tpu.memory_space<vmem>>, vector<1x1x64xf32>
    %82 = vector.shape_cast %81 : vector<1x1x64xf32> to vector<1x64xf32>
    %83 = vector.shape_cast %80 : vector<1x64xf32> to vector<1x1x64xf32>
    tpu.vector_store %arg5[%c0_55, %c0_56, %c0_57], %83 {strides = array<i32>} : memref<1x8x64xf32, #tpu.memory_space<vmem>>, vector<1x1x64xf32>,
    %84 = arith.mulf %78, %78 : vector<80x64xf32>
    %cst_58 = arith.constant dense<0.000000e+00> : vector<64xf32>
    %85 = vector.multi_reduction <add>, %84, %cst_58 [0] : vector<80x64xf32> to vector<64xf32>
    %86 = vector.shape_cast %85 : vector<64xf32> to vector<1x64xf32>
    %c0_59 = arith.constant 0 : index
    %c1_60 = arith.constant 1 : index
    %c0_61 = arith.constant 0 : index
    %87 = vector.load %arg5[%c0_59, %c1_60, %c0_61] : memref<1x8x64xf32, #tpu.memory_space<vmem>>, vector<1x1x64xf32>
    %88 = vector.shape_cast %87 : vector<1x1x64xf32> to vector<1x64xf32>
    %89 = vector.shape_cast %86 : vector<1x64xf32> to vector<1x1x64xf32>
    tpu.vector_store %arg5[%c0_59, %c1_60, %c0_61], %89 {strides = array<i32>} : memref<1x8x64xf32, #tpu.memory_space<vmem>>, vector<1x1x64xf32>,
    %cst_62 = arith.constant 0.000000e+00 : f32
    %90 = vector.broadcast %cst_62 : f32 to vector<6x64xf32>
    %c0_63 = arith.constant 0 : index
    %c2_64 = arith.constant 2 : index
    %c0_65 = arith.constant 0 : index
    %91 = vector.load %arg5[%c0_63, %c2_64, %c0_65] : memref<1x8x64xf32, #tpu.memory_space<vmem>>, vector<1x6x64xf32>
    %92 = vector.shape_cast %91 : vector<1x6x64xf32> to vector<6x64xf32>
    %93 = vector.shape_cast %90 : vector<6x64xf32> to vector<1x6x64xf32>
    tpu.vector_store %arg5[%c0_63, %c2_64, %c0_65], %93 {strides = array<i32>} : memref<1x8x64xf32, #tpu.memory_space<vmem>>, vector<1x6x64xf32>,
    %c0_66 = arith.constant 0 : index
    %c0_67 = arith.constant 0 : index
    %c0_68 = arith.constant 0 : index
    %94 = vector.load %arg4[%c0_66, %c0_67, %c0_68] : memref<1x80x64xf32, #tpu.memory_space<vmem>>, vector<1x80x64xf32>
    %95 = vector.shape_cast %94 : vector<1x80x64xf32> to vector<80x64xf32>
    %96 = vector.shape_cast %57 : vector<80x64xf32> to vector<1x80x64xf32>
    tpu.vector_store %arg4[%c0_66, %c0_67, %c0_68], %96 {strides = array<i32>} : memref<1x80x64xf32, #tpu.memory_space<vmem>>, vector<1x80x64xf32>,
    return
  }
  func.func @transform_0(%arg0: i32) -> (i32, i32, i32) {
    %c0_i32 = arith.constant 0 : i32
    %c0_i32_0 = arith.constant 0 : i32
    %c0_i32_1 = arith.constant 0 : i32
    return %arg0, %c0_i32, %c0_i32_0 : i32, i32, i32
  }
  func.func @transform_1(%arg0: i32) -> (i32, i32, i32) {
    %c0_i32 = arith.constant 0 : i32
    %c0_i32_0 = arith.constant 0 : i32
    %c0_i32_1 = arith.constant 0 : i32
    %c0_i32_2 = arith.constant 0 : i32
    return %c0_i32, %c0_i32_0, %c0_i32_1 : i32, i32, i32
  }
  func.func @transform_2(%arg0: i32) -> (i32, i32) {
    %c0_i32 = arith.constant 0 : i32
    %c0_i32_0 = arith.constant 0 : i32
    %c0_i32_1 = arith.constant 0 : i32
    return %c0_i32, %c0_i32_0 : i32, i32
  }
  func.func @transform_3(%arg0: i32) -> (i32, i32, i32) {
    %c0_i32 = arith.constant 0 : i32
    %c0_i32_0 = arith.constant 0 : i32
    %c0_i32_1 = arith.constant 0 : i32
    return %arg0, %c0_i32, %c0_i32_0 : i32, i32, i32
  }
  func.func @transform_4(%arg0: i32) -> (i32, i32, i32) {
    %c0_i32 = arith.constant 0 : i32
    %c0_i32_0 = arith.constant 0 : i32
    %c0_i32_1 = arith.constant 0 : i32
    return %arg0, %c0_i32, %c0_i32_0 : i32, i32, i32
  }
}

</mosaic_0001>

<bundles_post_ra>
// kernel: down3d_forward.5
= control target key start
LH: loop header
LB: loop body
LE: loop exit
PB: predicated region body
PF: predicated region fallthrough
CT: control target
= control target key end

     0   :  { %s1262_s6 = smov 0   ;;  %s2070_s0 = inlined_call_operand.vmem [shape: f32[128,8,32], index: 0, kind: input, shape index: {}]   ;;  %s2071_s1 = inlined_call_operand.vmem [shape: bf16[128,32], index: 1, kind: output, shape index: {}]  }
   0x1 LB: > { %s1097_s7 = sadd.s32 4294967295, %s1250_s6   ;;  %p1101_p0 = scmp.ge.s32.totalorder %s1250_s6, 1  ;;  %s1250_s6 = sphi %s1262_s6, %s11_s6  }
   0x2   : > { %p88_p1 = scmp.lt.s32.totalorder %s1250_s6, 3 }
   0x4   : > { %p89_p2 = pnand %p1101_p0, %p88_p1 }
   0x6   : > { %92 = sbr.rel (%p89_p2) target bundleno = 187 (0xbb), region = 24 }
   0xd   : > { %s1102_s8 = sshll.u32 %s1097_s7, 6  ;;  %vm184_vm0 = vcmask 261120   ;;  %vm953_vm1 = vcmask 1041409   ;;  %vm955_vm2 = vcmask 1042434   ;;  %vm957_vm3 = vcmask 1043459   ;;  %s1951_s13 = sshll.u32 %s1097_s7, 3 }
   0xe   : > { %p109_p3 = scmp.lt.s32.totalorder %s1102_s8, 127  ;;  %vm959_vm4 = vcmask 1044484   ;;  %vm961_vm5 = vcmask 1045509   ;;  %vm963_vm6 = vcmask 1046534   ;;  %vm965_vm7 = vcmask 1047559   ;;  %p115_p4 = scmp.lt.s32.totalorder %s1951_s13, 15 }
   0xf   : > { %vm1032_vm8 = vcmask 257024  }
  0x10   : > { %s2239_s8 = smov (!%p109_p3, %s1102_s8), 127  ;;  %s2241_s13 = smov (!%p115_p4, %s1951_s13), 15 }
  0x11   : > { %s1103_s9 = sshll.u32 %s2239_s8, 3  ;;  %s1105_s14 = sshll.u32 %s2241_s13, 2 }
  0x12   : > { %s1275_s12 = scalar_lea.vmem %s2070_s0, %s1103_s9  ;;  %s118_s17 = scalar_lea.vmem %s2071_s1, %s1105_s14 }
  0x13   : > { %v120_v0 = vld [vmem:[%s1275_s12] sm:$0xff]  ;;  %v121_v1 = vld [vmem:[%s1275_s12 + $0x8] sm:$0xff]  ;;  %v122_v2 = vld [vmem:[%s1275_s12 + $0x10] sm:$0xff] }
  0x14   : > { %v123_v3 = vld [vmem:[%s1275_s12 + $0x18] sm:$0xff]  ;;  %v124_v4 = vld [vmem:[%s1275_s12 + $0x20] sm:$0xff]  ;;  %v125_v5 = vld [vmem:[%s1275_s12 + $0x28] sm:$0xff]  ;;  %v185_v6 = vsel %vm184_vm0, %v120_v0, -inf  ;;  %v192_v7 = vsel %vm184_vm0, %v121_v1, -inf  ;;  %v199_v8 = vsel %vm184_vm0, %v122_v2, -inf }
  0x15   : > { %v126_v9 = vld [vmem:[%s1275_s12 + $0x30] sm:$0xff]  ;;  %v186_v10 = vrot.slane %v185_v6, 4  ;;  %v193_v11 = vrot.slane %v192_v7, 4  ;;  %v200_v12 = vrot.slane %v199_v8, 4  ;;  %v206_v13 = vsel %vm184_vm0, %v123_v3, -inf  ;;  %v127_v16 = vld [vmem:[%s1275_s12 + $0x38] sm:$0xff] }
  0x16   : > { %v213_v14 = vsel %vm184_vm0, %v124_v4, -inf  ;;  %v220_v15 = vsel %vm184_vm0, %v125_v5, -inf  ;;  %v207_v20 = vrot.slane %v206_v13, 4  ;;  %v227_v23 = vsel %vm184_vm0, %v126_v9, -inf  ;;  %v128_v44 = vld [vmem:[%s1275_s12 + $0x40] sm:$0xff]  ;;  %v129_v45 = vld [vmem:[%s1275_s12 + $0x48] sm:$0xff] }
  0x17   : > { %v187_v17 = vmax.f32 %v185_v6, %v186_v10  ;;  %v194_v18 = vmax.f32 %v192_v7, %v193_v11  ;;  %v201_v19 = vmax.f32 %v199_v8, %v200_v12  ;;  %v214_v21 = vrot.slane %v213_v14, 4  ;;  %v130_v46 = vld [vmem:[%s1275_s12 + $0x50] sm:$0xff]  ;;  %v131_v59 = vld [vmem:[%s1275_s12 + $0x58] sm:$0xff]  ;;  %v132_v60 = vld [vmem:[%s1275_s12 + $0x60] sm:$0xff] }
  0x18   : > { %v221_v22 = vrot.slane %v220_v15, 4  ;;  %v208_v27 = vmax.f32 %v206_v13, %v207_v20  ;;  %v228_v30 = vrot.slane %v227_v23, 4  ;;  %v234_v31 = vsel %vm184_vm0, %v127_v16, -inf  ;;  %v133_v5 = vld [vmem:[%s1275_s12 + $0x68] sm:$0xff]  ;;  %v134_v6 = vld [vmem:[%s1275_s12 + $0x70] sm:$0xff] }
  0x19   : > { %v188_v24 = vrot.slane %v187_v17, 2  ;;  %v195_v25 = vrot.slane %v194_v18, 2  ;;  %v202_v26 = vrot.slane %v201_v19, 2  ;;  %v215_v28 = vmax.f32 %v213_v14, %v214_v21 }
  0x1a   : > { %v222_v29 = vmax.f32 %v220_v15, %v221_v22  ;;  %v209_v35 = vrot.slane %v208_v27, 2  ;;  %v229_v38 = vmax.f32 %v227_v23, %v228_v30  ;;  %v235_v39 = vrot.slane %v234_v31, 4  ;;  %v135_v15 = vld [vmem:[%s1275_s12 + $0x78] sm:$0xff] }
  0x1b   : > { %v189_v32 = vmax.f32 %v187_v17, %v188_v24  ;;  %v196_v33 = vmax.f32 %v194_v18, %v195_v25  ;;  %v203_v34 = vmax.f32 %v201_v19, %v202_v26  ;;  %v216_v36 = vrot.slane %v215_v28, 2 }
  0x1c   : > { %v223_v37 = vrot.slane %v222_v29, 2  ;;  %v210_v43 = vmax.f32 %v208_v27, %v209_v35  ;;  %v230_v49 = vrot.slane %v229_v38, 2  ;;  %v236_v50 = vmax.f32 %v234_v31, %v235_v39 }
  0x1d   : > { %v190_v40 = vrot.slane %v189_v32, 1  ;;  %v197_v41 = vrot.slane %v196_v33, 1  ;;  %v204_v42 = vrot.slane %v203_v34, 1  ;;  %v217_v47 = vmax.f32 %v215_v28, %v216_v36 }
  0x1e   : > { %v224_v48 = vmax.f32 %v222_v29, %v223_v37  ;;  %v211_v54 = vrot.slane %v210_v43, 1  ;;  %v231_v57 = vmax.f32 %v229_v38, %v230_v49  ;;  %v237_v58 = vrot.slane %v236_v50, 2 }
  0x1f   : > { %v1296_v51 = vmax.f32 %v189_v32, %v190_v40  ;;  %v1298_v52 = vmax.f32 %v196_v33, %v197_v41  ;;  %v1300_v53 = vmax.f32 %v203_v34, %v204_v42  ;;  %v218_v55 = vrot.slane %v217_v47, 1 }
  0x20   : > { %v225_v56 = vrot.slane %v224_v48, 1  ;;  %v1304_v61 = vmax.f32 %v210_v43, %v211_v54  ;;  %v241_v62 = vsel %vm184_vm0, %v128_v44, -inf  ;;  %v248_v63 = vsel %vm184_vm0, %v129_v45, -inf  ;;  %v136_v44 = vld [vmem:[%s1275_s12 + $0x80] sm:$0xff]  ;;  %v137_v45 = vld [vmem:[%s1275_s12 + $0x88] sm:$0xff] }
  0x21   : > { %2100 = vst [vmem:[#allocation2_spill] sm:$0xff] %v1296_v51  ;;  %v255_v0 = vsel %vm184_vm0, %v130_v46, -inf  ;;  %v1309_v1 = vmax.f32 %v217_v47, %v218_v55  ;;  %v232_v3 = vrot.slane %v231_v57, 1  ;;  %v238_v4 = vmax.f32 %v236_v50, %v237_v58  ;;  %v138_v46 = vld [vmem:[%s1275_s12 + $0x90] sm:$0xff]  ;;  %v139_v58 = vld [vmem:[%s1275_s12 + $0x98] sm:$0xff] }
  0x22   : > { %v1311_v2 = vmax.f32 %v224_v48, %v225_v56  ;;  %v242_v7 = vrot.slane %v241_v62, 4  ;;  %v249_v8 = vrot.slane %v248_v63, 4  ;;  %v256_v9 = vrot.slane %v255_v0, 4 }
  0x23   : > { %v1317_v11 = vmax.f32 %v231_v57, %v232_v3  ;;  %v239_v12 = vrot.slane %v238_v4, 1  ;;  %v262_v13 = vsel %vm184_vm0, %v131_v59, -inf  ;;  %v269_v14 = vsel %vm184_vm0, %v132_v60, -inf }
  0x24   : > { %v243_v16 = vmax.f32 %v241_v62, %v242_v7  ;;  %v250_v17 = vmax.f32 %v248_v63, %v249_v8  ;;  %v257_v18 = vmax.f32 %v255_v0, %v256_v9  ;;  %v263_v19 = vrot.slane %v262_v13, 4 }
  0x25   : > { %v1322_v20 = vmax.f32 %v238_v4, %v239_v12  ;;  %v270_v21 = vrot.slane %v269_v14, 4  ;;  %v276_v22 = vsel %vm184_vm0, %v133_v5, -inf  ;;  %v283_v23 = vsel %vm184_vm0, %v134_v6, -inf  ;;  %v140_v6 = vld [vmem:[%s1275_s12 + $0xa0] sm:$0xff] }
  0x26   : > { %v244_v24 = vrot.slane %v243_v16, 2  ;;  %v251_v25 = vrot.slane %v250_v17, 2  ;;  %v258_v26 = vrot.slane %v257_v18, 2  ;;  %v264_v27 = vmax.f32 %v262_v13, %v263_v19  ;;  %v141_v13 = vld [vmem:[%s1275_s12 + $0xa8] sm:$0xff] }
  0x27   : > { %v271_v28 = vmax.f32 %v269_v14, %v270_v21  ;;  %v277_v29 = vrot.slane %v276_v22, 4  ;;  %v284_v30 = vrot.slane %v283_v23, 4  ;;  %v290_v31 = vsel %vm184_vm0, %v135_v15, -inf }
  0x28   : > { %v245_v32 = vmax.f32 %v243_v16, %v244_v24  ;;  %v252_v33 = vmax.f32 %v250_v17, %v251_v25  ;;  %v259_v34 = vmax.f32 %v257_v18, %v258_v26  ;;  %v265_v35 = vrot.slane %v264_v27, 2  ;;  %v143_v24 = vld [vmem:[%s1275_s12 + $0xb8] sm:$0xff] }
  0x29   : > { %v272_v36 = vrot.slane %v271_v28, 2  ;;  %v278_v37 = vmax.f32 %v276_v22, %v277_v29  ;;  %v285_v38 = vmax.f32 %v283_v23, %v284_v30  ;;  %v291_v39 = vrot.slane %v290_v31, 4  ;;  %v142_v23 = vld [vmem:[%s1275_s12 + $0xb0] sm:$0xff] }
  0x2a   : > { %v246_v40 = vrot.slane %v245_v32, 1  ;;  %v253_v41 = vrot.slane %v252_v33, 1  ;;  %v260_v42 = vrot.slane %v259_v34, 1  ;;  %v266_v43 = vmax.f32 %v264_v27, %v265_v35 }
  0x2b   : > { %v273_v47 = vmax.f32 %v271_v28, %v272_v36  ;;  %v279_v48 = vrot.slane %v278_v37, 2  ;;  %v286_v49 = vrot.slane %v285_v38, 2  ;;  %v292_v50 = vmax.f32 %v290_v31, %v291_v39 }
  0x2c   : > { %v1330_v54 = vmax.f32 %v245_v32, %v246_v40  ;;  %v1332_v55 = vmax.f32 %v252_v33, %v253_v41  ;;  %v1334_v56 = vmax.f32 %v259_v34, %v260_v42  ;;  %v267_v57 = vrot.slane %v266_v43, 1 }
  0x2d   : > { %v274_v59 = vrot.slane %v273_v47, 1  ;;  %v280_v60 = vmax.f32 %v278_v37, %v279_v48  ;;  %v287_v62 = vmax.f32 %v285_v38, %v286_v49  ;;  %v293_v63 = vrot.slane %v292_v50, 2 }
  0x2e   : > { %v1337_v0 = vmax.f32 %v266_v43, %v267_v57  ;;  %v297_v3 = vsel %vm184_vm0, %v136_v44, -inf  ;;  %v304_v4 = vsel %vm184_vm0, %v137_v45, -inf  ;;  %v311_v5 = vsel %vm184_vm0, %v138_v46, -inf }
  0x2f   : > { %v1343_v7 = vmax.f32 %v273_v47, %v274_v59  ;;  %v281_v8 = vrot.slane %v280_v60, 1  ;;  %v288_v9 = vrot.slane %v287_v62, 1  ;;  %v294_v12 = vmax.f32 %v292_v50, %v293_v63  ;;  %v144_v59 = vld [vmem:[%s1275_s12 + $0xc0] sm:$0xff] }
  0x30   : > { %v298_v14 = vrot.slane %v297_v3, 4  ;;  %v305_v15 = vrot.slane %v304_v4, 4  ;;  %v312_v16 = vrot.slane %v311_v5, 4  ;;  %v318_v17 = vsel %vm184_vm0, %v139_v58, -inf }
  0x31   : > { %v1347_v18 = vmax.f32 %v280_v60, %v281_v8  ;;  %v1349_v19 = vmax.f32 %v287_v62, %v288_v9  ;;  %v295_v21 = vrot.slane %v294_v12, 1  ;;  %v319_v22 = vrot.slane %v318_v17, 4  ;;  %v145_v60 = vld [vmem:[%s1275_s12 + $0xc8] sm:$0xff]  ;;  %v146_v62 = vld [vmem:[%s1275_s12 + $0xd0] sm:$0xff] }
  0x32   : > { %v299_v25 = vmax.f32 %v297_v3, %v298_v14  ;;  %v306_v26 = vmax.f32 %v304_v4, %v305_v15  ;;  %v313_v27 = vmax.f32 %v311_v5, %v312_v16  ;;  %v325_v28 = vsel %vm184_vm0, %v140_v6, -inf }
  0x33   : > { %v1354_v29 = vmax.f32 %v294_v12, %v295_v21  ;;  %v320_v30 = vmax.f32 %v318_v17, %v319_v22  ;;  %v326_v31 = vrot.slane %v325_v28, 4  ;;  %v332_v32 = vsel %vm184_vm0, %v141_v13, -inf  ;;  %v147_v13 = vld [vmem:[%s1275_s12 + $0xd8] sm:$0xff] }
  0x34   : > { %v300_v33 = vrot.slane %v299_v25, 2  ;;  %v307_v34 = vrot.slane %v306_v26, 2  ;;  %v314_v35 = vrot.slane %v313_v27, 2  ;;  %v333_v36 = vrot.slane %v332_v32, 4 }
  0x35   : > { %v321_v37 = vrot.slane %v320_v30, 2  ;;  %v327_v38 = vmax.f32 %v325_v28, %v326_v31  ;;  %v339_v39 = vsel %vm184_vm0, %v142_v23, -inf  ;;  %v346_v40 = vsel %vm184_vm0, %v143_v24, -inf }
  0x36   : > { %v301_v41 = vmax.f32 %v299_v25, %v300_v33  ;;  %v308_v42 = vmax.f32 %v306_v26, %v307_v34  ;;  %v315_v43 = vmax.f32 %v313_v27, %v314_v35  ;;  %v334_v44 = vmax.f32 %v332_v32, %v333_v36  ;;  %v148_v25 = vld [vmem:[%s1275_s12 + $0xe0] sm:$0xff]  ;;  %v149_v26 = vld [vmem:[%s1275_s12 + $0xe8] sm:$0xff] }
  0x37   : > { %v322_v45 = vmax.f32 %v320_v30, %v321_v37  ;;  %v328_v46 = vrot.slane %v327_v38, 2  ;;  %v340_v47 = vrot.slane %v339_v39, 4  ;;  %v347_v48 = vrot.slane %v346_v40, 4 }
  0x38   : > { %v302_v49 = vrot.slane %v301_v41, 1  ;;  %v309_v50 = vrot.slane %v308_v42, 1  ;;  %v316_v57 = vrot.slane %v315_v43, 1  ;;  %v335_v58 = vrot.slane %v334_v44, 2 }
  0x39   : > { %v323_v63 = vrot.slane %v322_v45, 1  ;;  %v329_v3 = vmax.f32 %v327_v38, %v328_v46  ;;  %v341_v4 = vmax.f32 %v339_v39, %v340_v47  ;;  %v348_v5 = vmax.f32 %v346_v40, %v347_v48  ;;  %v150_v40 = vld [vmem:[%s1275_s12 + $0xf0] sm:$0xff] }
  0x3a   : > { %v1362_v6 = vmax.f32 %v301_v41, %v302_v49  ;;  %v1364_v8 = vmax.f32 %v308_v42, %v309_v50  ;;  %v1366_v9 = vmax.f32 %v315_v43, %v316_v57  ;;  %v336_v12 = vmax.f32 %v334_v44, %v335_v58  ;;  %v151_v41 = vld [vmem:[%s1275_s12 + $0xf8] sm:$0xff] }
  0x3b   : > { %v1369_v14 = vmax.f32 %v322_v45, %v323_v63  ;;  %v330_v15 = vrot.slane %v329_v3, 1  ;;  %v342_v16 = vrot.slane %v341_v4, 2  ;;  %v349_v17 = vrot.slane %v348_v5, 2 }
  0x3c   : > { %v337_v21 = vrot.slane %v336_v12, 1  ;;  %v353_v22 = vsel %vm184_vm0, %v144_v59, -inf  ;;  %v360_v23 = vsel %vm184_vm0, %v145_v60, -inf  ;;  %v367_v24 = vsel %vm184_vm0, %v146_v62, -inf }
  0x3d   : > { %v1376_v27 = vmax.f32 %v329_v3, %v330_v15  ;;  %v343_v28 = vmax.f32 %v341_v4, %v342_v16  ;;  %v350_v30 = vmax.f32 %v348_v5, %v349_v17  ;;  %v354_v31 = vrot.slane %v353_v22, 4 }
  0x3e   : > { %v1378_v32 = vmax.f32 %v336_v12, %v337_v21  ;;  %v361_v33 = vrot.slane %v360_v23, 4  ;;  %v368_v34 = vrot.slane %v367_v24, 4  ;;  %v374_v35 = vsel %vm184_vm0, %v147_v13, -inf }
  0x3f   : > { %v344_v36 = vrot.slane %v343_v28, 1  ;;  %v351_v37 = vrot.slane %v350_v30, 1  ;;  %v355_v38 = vmax.f32 %v353_v22, %v354_v31  ;;  %v375_v39 = vrot.slane %v374_v35, 4  ;;  %v152_v22 = vld [vmem:[%s1275_s12 + $0x100] sm:$0xff] }
  0x40   : > { %v362_v42 = vmax.f32 %v360_v23, %v361_v33  ;;  %v369_v43 = vmax.f32 %v367_v24, %v368_v34  ;;  %v381_v44 = vsel %vm184_vm0, %v148_v25, -inf  ;;  %v388_v45 = vsel %vm184_vm0, %v149_v26, -inf }
  0x41   : > { %v1385_v46 = vmax.f32 %v343_v28, %v344_v36  ;;  %v1387_v47 = vmax.f32 %v350_v30, %v351_v37  ;;  %v356_v48 = vrot.slane %v355_v38, 2  ;;  %v376_v49 = vmax.f32 %v374_v35, %v375_v39  ;;  %v153_v28 = vld [vmem:[%s1275_s12 + $0x108] sm:$0xff]  ;;  %v154_v35 = vld [vmem:[%s1275_s12 + $0x110] sm:$0xff] }
  0x42   : > { %v363_v50 = vrot.slane %v362_v42, 2  ;;  %v370_v57 = vrot.slane %v369_v43, 2  ;;  %v382_v58 = vrot.slane %v381_v44, 4  ;;  %v389_v59 = vrot.slane %v388_v45, 4 }
  0x43   : > { %v357_v60 = vmax.f32 %v355_v38, %v356_v48  ;;  %v377_v62 = vrot.slane %v376_v49, 2  ;;  %v395_v63 = vsel %vm184_vm0, %v150_v40, -inf  ;;  %v402_v3 = vsel %vm184_vm0, %v151_v41, -inf }
  0x44   : > { %v364_v4 = vmax.f32 %v362_v42, %v363_v50  ;;  %v371_v5 = vmax.f32 %v369_v43, %v370_v57  ;;  %v383_v12 = vmax.f32 %v381_v44, %v382_v58  ;;  %v390_v13 = vmax.f32 %v388_v45, %v389_v59  ;;  %v155_v44 = vld [vmem:[%s1275_s12 + $0x118] sm:$0xff]  ;;  %v156_v57 = vld [vmem:[%s1275_s12 + $0x120] sm:$0xff] }
  0x45   : > { %v358_v15 = vrot.slane %v357_v60, 1  ;;  %v378_v16 = vmax.f32 %v376_v49, %v377_v62  ;;  %v396_v17 = vrot.slane %v395_v63, 4  ;;  %v403_v21 = vrot.slane %v402_v3, 4 }
  0x46   : > { %v365_v23 = vrot.slane %v364_v4, 1  ;;  %v372_v24 = vrot.slane %v371_v5, 1  ;;  %v384_v25 = vrot.slane %v383_v12, 2  ;;  %v391_v26 = vrot.slane %v390_v13, 2 }
  0x47   : > { %v1393_v30 = vmax.f32 %v357_v60, %v358_v15  ;;  %v379_v31 = vrot.slane %v378_v16, 1  ;;  %v397_v33 = vmax.f32 %v395_v63, %v396_v17  ;;  %v404_v34 = vmax.f32 %v402_v3, %v403_v21  ;;  %v158_v21 = vld [vmem:[%s1275_s12 + $0x130] sm:$0xff] }
  0x48   : > { %v1396_v36 = vmax.f32 %v364_v4, %v365_v23  ;;  %v1398_v37 = vmax.f32 %v371_v5, %v372_v24  ;;  %v385_v38 = vmax.f32 %v383_v12, %v384_v25  ;;  %v392_v39 = vmax.f32 %v390_v13, %v391_v26  ;;  %v157_v12 = vld [vmem:[%s1275_s12 + $0x128] sm:$0xff] }
  0x49   : > { %v1400_v40 = vmax.f32 %v378_v16, %v379_v31  ;;  %v398_v41 = vrot.slane %v397_v33, 2  ;;  %v405_v42 = vrot.slane %v404_v34, 2  ;;  %v409_v43 = vsel %vm184_vm0, %v152_v22, -inf }
  0x4a   : > { %v386_v45 = vrot.slane %v385_v38, 1  ;;  %v393_v48 = vrot.slane %v392_v39, 1  ;;  %v410_v49 = vrot.slane %v409_v43, 4  ;;  %v416_v50 = vsel %vm184_vm0, %v153_v28, -inf }
  0x4b   : > { %v399_v58 = vmax.f32 %v397_v33, %v398_v41  ;;  %v406_v59 = vmax.f32 %v404_v34, %v405_v42  ;;  %v417_v60 = vrot.slane %v416_v50, 4  ;;  %v423_v62 = vsel %vm184_vm0, %v154_v35, -inf  ;;  %v159_v34 = vld [vmem:[%s1275_s12 + $0x138] sm:$0xff] }
  0x4c   : > { %v1407_v63 = vmax.f32 %v385_v38, %v386_v45  ;;  %v1409_v3 = vmax.f32 %v392_v39, %v393_v48  ;;  %v411_v4 = vmax.f32 %v409_v43, %v410_v49  ;;  %v424_v5 = vrot.slane %v423_v62, 4 }
  0x4d   : > { %v400_v13 = vrot.slane %v399_v58, 1  ;;  %v407_v15 = vrot.slane %v406_v59, 1  ;;  %v418_v16 = vmax.f32 %v416_v50, %v417_v60  ;;  %v430_v17 = vsel %vm184_vm0, %v155_v44, -inf }
  0x4e   : > { %v412_v22 = vrot.slane %v411_v4, 2  ;;  %v425_v23 = vmax.f32 %v423_v62, %v424_v5  ;;  %v431_v24 = vrot.slane %v430_v17, 4  ;;  %v437_v25 = vsel %vm184_vm0, %v156_v57, -inf }
  0x4f   : > { %v1415_v26 = vmax.f32 %v399_v58, %v400_v13  ;;  %v1417_v28 = vmax.f32 %v406_v59, %v407_v15  ;;  %v419_v31 = vrot.slane %v418_v16, 2  ;;  %v438_v33 = vrot.slane %v437_v25, 4  ;;  %v160_v58 = vld [vmem:[%s1275_s12 + $0x140] sm:$0xff] }
  0x50   : > { %v413_v35 = vmax.f32 %v411_v4, %v412_v22  ;;  %v426_v38 = vrot.slane %v425_v23, 2  ;;  %v432_v39 = vmax.f32 %v430_v17, %v431_v24  ;;  %v444_v41 = vsel %vm184_vm0, %v157_v12, -inf  ;;  %v162_v17 = vld [vmem:[%s1275_s12 + $0x150] sm:$0xff] }
  0x51   : > { %v420_v42 = vmax.f32 %v418_v16, %v419_v31  ;;  %v439_v43 = vmax.f32 %v437_v25, %v438_v33  ;;  %v445_v44 = vrot.slane %v444_v41, 4  ;;  %v451_v45 = vsel %vm184_vm0, %v158_v21, -inf  ;;  %v161_v16 = vld [vmem:[%s1275_s12 + $0x148] sm:$0xff] }
  0x52   : > { %v414_v48 = vrot.slane %v413_v35, 1  ;;  %v427_v49 = vmax.f32 %v425_v23, %v426_v38  ;;  %v433_v50 = vrot.slane %v432_v39, 2  ;;  %v452_v57 = vrot.slane %v451_v45, 4 }
  0x53   : > { %v421_v59 = vrot.slane %v420_v42, 1  ;;  %v440_v60 = vrot.slane %v439_v43, 2  ;;  %v446_v62 = vmax.f32 %v444_v41, %v445_v44  ;;  %v458_v4 = vsel %vm184_vm0, %v159_v34, -inf  ;;  %v163_v34 = vld [vmem:[%s1275_s12 + $0x158] sm:$0xff] }
  0x54   : > { %v1424_v5 = vmax.f32 %v413_v35, %v414_v48  ;;  %v428_v12 = vrot.slane %v427_v49, 1  ;;  %v434_v13 = vmax.f32 %v432_v39, %v433_v50  ;;  %v453_v15 = vmax.f32 %v451_v45, %v452_v57 }
  0x55   : > { %v1428_v22 = vmax.f32 %v420_v42, %v421_v59  ;;  %v441_v21 = vmax.f32 %v439_v43, %v440_v60  ;;  %v447_v23 = vrot.slane %v446_v62, 2  ;;  %v459_v24 = vrot.slane %v458_v4, 4 }
  0x56   : > { %v1430_v25 = vmax.f32 %v427_v49, %v428_v12  ;;  %v435_v31 = vrot.slane %v434_v13, 1  ;;  %v454_v33 = vrot.slane %v453_v15, 2  ;;  %v465_v38 = vsel %vm184_vm0, %v160_v58, -inf  ;;  %v164_v49 = vld [vmem:[%s1275_s12 + $0x160] sm:$0xff] }
  0x57   : > { %v442_v35 = vrot.slane %v441_v21, 1  ;;  %v448_v41 = vmax.f32 %v446_v62, %v447_v23  ;;  %v460_v39 = vmax.f32 %v458_v4, %v459_v24  ;;  %v466_v44 = vrot.slane %v465_v38, 4  ;;  %v165_v23 = vld [vmem:[%s1275_s12 + $0x168] sm:$0xff] }
  0x58   : > { %v1434_v45 = vmax.f32 %v434_v13, %v435_v31  ;;  %v455_v42 = vmax.f32 %v453_v15, %v454_v33  ;;  %v472_v43 = vsel %vm184_vm0, %v161_v16, -inf  ;;  %v479_v48 = vsel %vm184_vm0, %v162_v17, -inf  ;;  %v166_v13 = vld [vmem:[%s1275_s12 + $0x170] sm:$0xff] }
  0x59   : > { %v1439_v50 = vmax.f32 %v441_v21, %v442_v35  ;;  %v449_v57 = vrot.slane %v448_v41, 1  ;;  %v461_v59 = vrot.slane %v460_v39, 2  ;;  %v467_v58 = vmax.f32 %v465_v38, %v466_v44 }
  0x5a   : > { %2101 = vst [vmem:[#allocation3_spill] sm:$0xff] %v1434_v45  ;;  %v456_v60 = vrot.slane %v455_v42, 1  ;;  %v473_v12 = vrot.slane %v472_v43, 4  ;;  %v480_v62 = vrot.slane %v479_v48, 4  ;;  %v486_v4 = vsel %vm184_vm0, %v163_v34, -inf }
  0x5b   : > { %2102 = vst [vmem:[#allocation4_spill] sm:$0xff] %v1439_v50  ;;  %v1444_v24 = vmax.f32 %v448_v41, %v449_v57  ;;  %v462_v15 = vmax.f32 %v460_v39, %v461_v59  ;;  %v468_v16 = vrot.slane %v467_v58, 2  ;;  %v487_v31 = vrot.slane %v486_v4, 4  ;;  %v167_v50 = vld [vmem:[%s1275_s12 + $0x178] sm:$0xff]  ;;  %v168_v59 = vld [vmem:[%s1275_s12 + $0x180] sm:$0xff] }
  0x5c   : > { %v1446_v17 = vmax.f32 %v455_v42, %v456_v60  ;;  %v474_v21 = vmax.f32 %v472_v43, %v473_v12  ;;  %v481_v33 = vmax.f32 %v479_v48, %v480_v62  ;;  %v493_v38 = vsel %vm184_vm0, %v164_v49, -inf }
  0x5d   : > { %2103 = vst [vmem:[#allocation5_spill] sm:$0xff] %v1444_v24  ;;  %v463_v35 = vrot.slane %v462_v15, 1  ;;  %v469_v44 = vmax.f32 %v467_v58, %v468_v16  ;;  %v488_v10 = vmax.f32 %v486_v4, %v487_v31  ;;  %v494_v51 = vrot.slane %v493_v38, 4 }
  0x5e   : > { %2104 = vst [vmem:[#allocation6_spill] sm:$0xff] %v1446_v17  ;;  %v475_v34 = vrot.slane %v474_v21, 2  ;;  %v482_v45 = vrot.slane %v481_v33, 2  ;;  %v500_v41 = vsel %vm184_vm0, %v165_v23, -inf  ;;  %v507_v39 = vsel %vm184_vm0, %v166_v13, -inf  ;;  %v170_v17 = vld [vmem:[%s1275_s12 + $0x190] sm:$0xff] }
  0x5f   : > { %v1452_v57 = vmax.f32 %v462_v15, %v463_v35  ;;  %v470_v42 = vrot.slane %v469_v44, 1  ;;  %v489_v43 = vrot.slane %v488_v10, 2  ;;  %v495_v48 = vmax.f32 %v493_v38, %v494_v51 }
  0x60   : > { %v476_v49 = vmax.f32 %v474_v21, %v475_v34  ;;  %v483_v60 = vmax.f32 %v481_v33, %v482_v45  ;;  %v501_v58 = vrot.slane %v500_v41, 4  ;;  %v508_v12 = vrot.slane %v507_v39, 4  ;;  %v171_v34 = vld [vmem:[%s1275_s12 + $0x198] sm:$0xff] }
  0x61   : > { %2105 = vst [vmem:[#allocation7_spill] sm:$0xff] %v1452_v57  ;;  %v1455_v62 = vmax.f32 %v469_v44, %v470_v42  ;;  %v490_v4 = vmax.f32 %v488_v10, %v489_v43  ;;  %v496_v16 = vrot.slane %v495_v48, 2  ;;  %v514_v23 = vsel %vm184_vm0, %v167_v50, -inf  ;;  %v169_v57 = vld [vmem:[%s1275_s12 + $0x188] sm:$0xff] }
  0x62   : > { %v477_v13 = vrot.slane %v476_v49, 1  ;;  %v484_v15 = vrot.slane %v483_v60, 1  ;;  %v502_v31 = vmax.f32 %v500_v41, %v501_v58  ;;  %v509_v35 = vmax.f32 %v507_v39, %v508_v12 }
  0x63   : > { %2106 = vst [vmem:[#allocation8_spill] sm:$0xff] %v1455_v62  ;;  %v491_v24 = vrot.slane %v490_v4, 1  ;;  %v497_v51 = vmax.f32 %v495_v48, %v496_v16  ;;  %v515_v21 = vrot.slane %v514_v23, 4  ;;  %v521_v45 = vsel %vm184_vm0, %v168_v59, -inf }
  0x64   : > { %v1461_v33 = vmax.f32 %v476_v49, %v477_v13  ;;  %v1463_v38 = vmax.f32 %v483_v60, %v484_v15  ;;  %v503_v10 = vrot.slane %v502_v31, 2  ;;  %v510_v44 = vrot.slane %v509_v35, 2  ;;  %v172_v49 = vld [vmem:[%s1275_s12 + $0x1a0] sm:$0xff] }
  0x65   : > { %v1466_v50 = vmax.f32 %v490_v4, %v491_v24  ;;  %v498_v42 = vrot.slane %v497_v51, 1  ;;  %v516_v41 = vmax.f32 %v514_v23, %v515_v21  ;;  %v522_v39 = vrot.slane %v521_v45, 4  ;;  %v173_v21 = vld [vmem:[%s1275_s12 + $0x1a8] sm:$0xff] }
  0x66   : > { %2107 = vst [vmem:[#allocation9_spill] sm:$0xff] %v1461_v33  ;;  %2108 = vst [vmem:[#allocation10_spill] sm:$0xff] %v1463_v38  ;;  %v504_v43 = vmax.f32 %v502_v31, %v503_v10  ;;  %v511_v48 = vmax.f32 %v509_v35, %v510_v44  ;;  %v528_v58 = vsel %vm184_vm0, %v169_v57, -inf  ;;  %v535_v59 = vsel %vm184_vm0, %v170_v17, -inf  ;;  %v175_v33 = vld [vmem:[%s1275_s12 + $0x1b8] sm:$0xff] }
  0x67   : > { %2109 = vst [vmem:[#allocation11_spill] sm:$0xff] %v1466_v50  ;;  %v1471_v12 = vmax.f32 %v497_v51, %v498_v42  ;;  %v517_v60 = vrot.slane %v516_v41, 2  ;;  %v523_v16 = vmax.f32 %v521_v45, %v522_v39  ;;  %v529_v13 = vrot.slane %v528_v58, 4  ;;  %v174_v50 = vld [vmem:[%s1275_s12 + $0x1b0] sm:$0xff] }
  0x68   : > { %v505_v15 = vrot.slane %v504_v43, 1  ;;  %v512_v24 = vrot.slane %v511_v48, 1  ;;  %v536_v4 = vrot.slane %v535_v59, 4  ;;  %v542_v23 = vsel %vm184_vm0, %v171_v34, -inf }
  0x69   : > { %2110 = vst [vmem:[#allocation12_spill] sm:$0xff] %v1471_v12  ;;  %v518_v31 = vmax.f32 %v516_v41, %v517_v60  ;;  %v524_v35 = vrot.slane %v523_v16, 2  ;;  %v530_v10 = vmax.f32 %v528_v58, %v529_v13  ;;  %v543_v57 = vrot.slane %v542_v23, 4 }
  0x6a   : > { %v1476_v44 = vmax.f32 %v504_v43, %v505_v15  ;;  %v1478_v17 = vmax.f32 %v511_v48, %v512_v24  ;;  %v537_v51 = vmax.f32 %v535_v59, %v536_v4  ;;  %v549_v45 = vsel %vm184_vm0, %v172_v49, -inf  ;;  %v176_v59 = vld [vmem:[%s1275_s12 + $0x1c0] sm:$0xff] }
  0x6b   : > { %v519_v42 = vrot.slane %v518_v31, 1  ;;  %v525_v39 = vmax.f32 %v523_v16, %v524_v35  ;;  %v531_v12 = vrot.slane %v530_v10, 2  ;;  %v544_v38 = vmax.f32 %v542_v23, %v543_v57  ;;  %v177_v57 = vld [vmem:[%s1275_s12 + $0x1c8] sm:$0xff] }
  0x6c   : > { %2111 = vst [vmem:[#allocation13_spill] sm:$0xff] %v1476_v44  ;;  %2112 = vst [vmem:[#allocation14_spill] sm:$0xff] %v1478_v17  ;;  %v538_v34 = vrot.slane %v537_v51, 2  ;;  %v550_v62 = vrot.slane %v549_v45, 4  ;;  %v556_v41 = vsel %vm184_vm0, %v173_v21, -inf  ;;  %v563_v58 = vsel %vm184_vm0, %v174_v50, -inf }
  0x6d   : > { %v1484_v43 = vmax.f32 %v518_v31, %v519_v42  ;;  %v526_v48 = vrot.slane %v525_v39, 1  ;;  %v532_v60 = vmax.f32 %v530_v10, %v531_v12  ;;  %v545_v13 = vrot.slane %v544_v38, 2 }
  0x6e   : > { %v539_v15 = vmax.f32 %v537_v51, %v538_v34  ;;  %v551_v49 = vmax.f32 %v549_v45, %v550_v62  ;;  %v557_v16 = vrot.slane %v556_v41, 4  ;;  %v564_v24 = vrot.slane %v563_v58, 4  ;;  %v178_v45 = vld [vmem:[%s1275_s12 + $0x1d0] sm:$0xff]  ;;  %v179_v34 = vld [vmem:[%s1275_s12 + $0x1d8] sm:$0xff] }
  0x6f   : > { %2113 = vst [vmem:[#allocation15_spill] sm:$0xff] %v1484_v43  ;;  %v1487_v4 = vmax.f32 %v525_v39, %v526_v48  ;;  %v533_v23 = vrot.slane %v532_v60, 1  ;;  %v546_v35 = vmax.f32 %v544_v38, %v545_v13  ;;  %v570_v21 = vsel %vm184_vm0, %v175_v33, -inf }
  0x70   : > { %v540_v50 = vrot.slane %v539_v15, 1  ;;  %v552_v31 = vrot.slane %v551_v49, 2  ;;  %v558_v42 = vmax.f32 %v556_v41, %v557_v16  ;;  %v565_v43 = vmax.f32 %v563_v58, %v564_v24 }
  0x71   : > { %2114 = vst [vmem:[#allocation16_spill] sm:$0xff] %v1487_v4  ;;  %v1491_v12 = vmax.f32 %v532_v60, %v533_v23  ;;  %v547_v10 = vrot.slane %v546_v35, 1  ;;  %v571_v51 = vrot.slane %v570_v21, 4  ;;  %v577_v62 = vsel %vm184_vm0, %v176_v59, -inf  ;;  %v180_v59 = vld [vmem:[%s1275_s12 + $0x1e0] sm:$0xff] }
  0x72   : > { %v1496_v39 = vmax.f32 %v539_v15, %v540_v50  ;;  %v553_v48 = vmax.f32 %v551_v49, %v552_v31  ;;  %v559_v38 = vrot.slane %v558_v42, 2  ;;  %v566_v13 = vrot.slane %v565_v43, 2 }
  0x73   : > { %2115 = vst [vmem:[#allocation17_spill] sm:$0xff] %v1491_v12  ;;  %v1498_v33 = vmax.f32 %v546_v35, %v547_v10  ;;  %v572_v4 = vmax.f32 %v570_v21, %v571_v51  ;;  %v578_v41 = vrot.slane %v577_v62, 4  ;;  %v584_v58 = vsel %vm184_vm0, %v177_v57, -inf  ;;  %v181_v10 = vld [vmem:[%s1275_s12 + $0x1e8] sm:$0xff]  ;;  %v182_v51 = vld [vmem:[%s1275_s12 + $0x1f0] sm:$0xff] }
  0x74   : > { %2116 = vst [vmem:[#allocation18_spill] sm:$0xff] %v1496_v39  ;;  %v554_v60 = vrot.slane %v553_v48, 1  ;;  %v560_v16 = vmax.f32 %v558_v42, %v559_v38  ;;  %v567_v24 = vmax.f32 %v565_v43, %v566_v13  ;;  %v585_v23 = vrot.slane %v584_v58, 4 }
  0x75   : > { %2117 = vst [vmem:[#allocation19_spill] sm:$0xff] %v1498_v33  ;;  %v573_v12 = vrot.slane %v572_v4, 2  ;;  %v579_v17 = vmax.f32 %v577_v62, %v578_v41  ;;  %v591_v15 = vsel %vm184_vm0, %v178_v45, -inf  ;;  %v598_v49 = vsel %vm184_vm0, %v179_v34, -inf }
  0x76   : > { %v1504_v50 = vmax.f32 %v553_v48, %v554_v60  ;;  %v561_v35 = vrot.slane %v560_v16, 1  ;;  %v568_v21 = vrot.slane %v567_v24, 1  ;;  %v586_v31 = vmax.f32 %v584_v58, %v585_v23 }
  0x77   : > { %v574_v57 = vmax.f32 %v572_v4, %v573_v12  ;;  %v580_v33 = vrot.slane %v579_v17, 2  ;;  %v592_v42 = vrot.slane %v591_v15, 4  ;;  %v599_v43 = vrot.slane %v598_v49, 4 }
  0x78   : > { %2118 = vst [vmem:[#allocation20_spill] sm:$0xff] %v1504_v50  ;;  %v1508_v38 = vmax.f32 %v560_v16, %v561_v35  ;;  %v1510_v13 = vmax.f32 %v567_v24, %v568_v21  ;;  %v587_v62 = vrot.slane %v586_v31, 2  ;;  %v605_v45 = vsel %vm184_vm0, %v180_v59, -inf  ;;  %v183_v50 = vld [vmem:[%s1275_s12 + $0x1f8] sm:$0xff] }
  0x79   : > { %v575_v34 = vrot.slane %v574_v57, 1  ;;  %v581_v48 = vmax.f32 %v579_v17, %v580_v33  ;;  %v593_v41 = vmax.f32 %v591_v15, %v592_v42  ;;  %v600_v60 = vmax.f32 %v598_v49, %v599_v43 }
  0x7a   : > { %2119 = vst [vmem:[#allocation21_spill] sm:$0xff] %v1508_v38  ;;  %2120 = vst [vmem:[#allocation22_spill] sm:$0xff] %v1510_v13  ;;  %v588_v39 = vmax.f32 %v586_v31, %v587_v62  ;;  %v606_v58 = vrot.slane %v605_v45, 4  ;;  %v612_v23 = vsel %vm184_vm0, %v181_v10, -inf  ;;  %v619_v4 = vsel %vm184_vm0, %v182_v51, -inf  ;;  %v2137_v62 = vld [vmem:[#allocation16_spill] sm:$0xff] }
  0x7b   : > { %v1516_v12 = vmax.f32 %v574_v57, %v575_v34  ;;  %v582_v16 = vrot.slane %v581_v48, 1  ;;  %v594_v35 = vrot.slane %v593_v41, 2  ;;  %v601_v24 = vrot.slane %v600_v60, 2 }
  0x7c   : > { %v589_v21 = vrot.slane %v588_v39, 1  ;;  %v607_v13 = vmax.f32 %v605_v45, %v606_v58  ;;  %v613_v38 = vrot.slane %v612_v23, 4  ;;  %v620_v59 = vrot.slane %v619_v4, 4 }
  0x7d   : > { %v1518_v44 = vmax.f32 %v581_v48, %v582_v16  ;;  %v595_v17 = vmax.f32 %v593_v41, %v594_v35  ;;  %v602_v33 = vmax.f32 %v600_v60, %v601_v24  ;;  %v626_v15 = vsel %vm184_vm0, %v183_v50, -inf  ;;  %v2136_v48 = vld [vmem:[#allocation15_spill] sm:$0xff] }
  0x7e   : > { %v1521_v49 = vmax.f32 %v588_v39, %v589_v21  ;;  %v608_v31 = vrot.slane %v607_v13, 2  ;;  %v614_v10 = vmax.f32 %v612_v23, %v613_v38  ;;  %v621_v51 = vmax.f32 %v619_v4, %v620_v59  ;;  %v2139_v21 = vld [vmem:[#allocation18_spill] sm:$0xff]  ;;  %v2140_v24 = vld [vmem:[#allocation19_spill] sm:$0xff] }
  0x7f   : > { %2121 = vst [vmem:[#allocation23_spill] sm:$0xff] %v1518_v44  ;;  %v596_v57 = vrot.slane %v595_v17, 1  ;;  %v603_v42 = vrot.slane %v602_v33, 1  ;;  %v627_v43 = vrot.slane %v626_v15, 4  ;;  %v2141_v35 = vld [vmem:[#allocation20_spill] sm:$0xff]  ;;  %v2144_v44 = vld [vmem:[#allocation2_spill] sm:$0xff] }
  0x80   : > { %2122 = vst [vmem:[#allocation24_spill] sm:$0xff] %v1521_v49  ;;  %v609_v45 = vmax.f32 %v607_v13, %v608_v31  ;;  %v615_v34 = vrot.slane %v614_v10, 2  ;;  %v622_v58 = vrot.slane %v621_v51, 2 }
  0x81   : > { %v1527_v41 = vmax.f32 %v595_v17, %v596_v57  ;;  %v1529_v50 = vmax.f32 %v602_v33, %v603_v42  ;;  %v628_v39 = vmax.f32 %v626_v15, %v627_v43  ;;  %v2127_v57 = vld [vmem:[#allocation6_spill] sm:$0xff]  ;;  %v2138_v15 = vld [vmem:[#allocation17_spill] sm:$0xff] }
  0x82   : > { %v610_v60 = vrot.slane %v609_v45, 1  ;;  %v616_v23 = vmax.f32 %v614_v10, %v615_v34  ;;  %v623_v4 = vmax.f32 %v621_v51, %v622_v58  ;;  %v2128_v51 = vld [vmem:[#allocation7_spill] sm:$0xff]  ;;  %v2129_v10 = vld [vmem:[#allocation8_spill] sm:$0xff]  ;;  %v2142_v16 = vld [vmem:[#allocation21_spill] sm:$0xff] }
  0x83   : > { %v629_v13 = vrot.slane %v628_v39, 2  ;;  %v2143_v38 = vld [vmem:[#allocation22_spill] sm:$0xff] }
  0x84   : > { %v1541_v59 = vmax.f32 %v609_v45, %v610_v60  ;;  %v617_v17 = vrot.slane %v616_v23, 1  ;;  %v624_v33 = vrot.slane %v623_v4, 1  ;;  %v2124_v60 = vld [vmem:[#allocation3_spill] sm:$0xff]  ;;  %v2126_v45 = vld [vmem:[#allocation5_spill] sm:$0xff] }
  0x85   : > { %v630_v31 = vmax.f32 %v628_v39, %v629_v13  ;;  %v2125_v39 = vld [vmem:[#allocation4_spill] sm:$0xff]  ;;  %v2145_v13 = vpack.c.bf16 %v2144_v44, %v2144_v44  ;;  %v2149_v44 = vpack.c.bf16 %v1309_v1, %v1309_v1  ;;  %v2154_v1 = vpack.c.bf16 %v1330_v54, %v1330_v54 }
  0x86   : > { %v1551_v42 = vmax.f32 %v616_v23, %v617_v17  ;;  %v1553_v43 = vmax.f32 %v623_v4, %v624_v33  ;;  %v2146_v4 = vpack.c.bf16 %v1298_v52, %v1298_v52  ;;  %v2147_v17 = vpack.c.bf16 %v1300_v53, %v1300_v53 }
  0x87   : > { %v631_v58 = vrot.slane %v630_v31, 1  ;;  %v1664_v49 = vunpack.c.l.b16 %v2145_v13  ;;  %v1684_v13 = vunpack.c.l.b16 %v2149_v44  ;;  %v2150_v52 = vpack.c.bf16 %v1311_v2, %v1311_v2 }
  0x88   : > { %2123 = vst [vmem:[#allocation25_spill] sm:$0xff] %v1553_v43  ;;  %v1669_v23 = vunpack.c.l.b16 %v2146_v4  ;;  %v1674_v33 = vunpack.c.l.b16 %v2147_v17  ;;  %v2151_v53 = vpack.c.bf16 %v1317_v11, %v1317_v11  ;;  %v1704_v44 = vunpack.c.l.b16 %v2154_v1 }
  0x89   : > { %v1573_v34 = vmax.f32 %v630_v31, %v631_v58  ;;  %v2148_v31 = vpack.c.bf16 %v1304_v61, %v1304_v61  ;;  %v1689_v4 = vunpack.c.l.b16 %v2150_v52  ;;  %v2152_v61 = vpack.c.bf16 %v1322_v20, %v1322_v20 }
  0x8a   : > { %v1694_v17 = vunpack.c.l.b16 %v2151_v53  ;;  %v2155_v2 = vpack.c.bf16 %v1332_v55, %v1332_v55  ;;  %v2156_v11 = vpack.c.bf16 %v1334_v56, %v1334_v56  ;;  %v2157_v20 = vpack.c.bf16 %v1337_v0, %v1337_v0 }
  0x8b   : > { %v1679_v43 = vunpack.c.l.b16 %v2148_v31  ;;  %v1699_v31 = vunpack.c.l.b16 %v2152_v61  ;;  %v2158_v54 = vpack.c.bf16 %v1343_v7, %v1343_v7  ;;  %v2159_v55 = vpack.c.bf16 %v1347_v18, %v1347_v18 }
  0x8c   : > { %v1709_v52 = vunpack.c.l.b16 %v2155_v2  ;;  %v1714_v53 = vunpack.c.l.b16 %v2156_v11  ;;  %v1719_v61 = vunpack.c.l.b16 %v2157_v20  ;;  %v2160_v56 = vpack.c.bf16 %v1349_v19, %v1349_v19 }
  0x8d   : > { %2153 = vst [vmem:[#allocation3_spill] sm:$0xff] %v1699_v31  ;;  %v1724_v1 = vunpack.c.l.b16 %v2158_v54  ;;  %v1729_v2 = vunpack.c.l.b16 %v2159_v55  ;;  %v2161_v0 = vpack.c.bf16 %v1354_v29, %v1354_v29  ;;  %v2162_v7 = vpack.c.bf16 %v1362_v6, %v1362_v6 }
  0x8e   : > { %v1734_v11 = vunpack.c.l.b16 %v2160_v56  ;;  %v2163_v58 = vpack.c.bf16 %v1364_v8, %v1364_v8  ;;  %v2164_v55 = vpack.c.bf16 %v1366_v9, %v1366_v9  ;;  %v2165_v19 = vpack.c.bf16 %v1369_v14, %v1369_v14 }
  0x8f   : > { %v1739_v20 = vunpack.c.l.b16 %v2161_v0  ;;  %v905_v54 = vunpack.c.l.b16 %v2162_v7  ;;  %v2166_v29 = vpack.c.bf16 %v1376_v27, %v1376_v27  ;;  %v2167_v6 = vpack.c.bf16 %v1378_v32, %v1378_v32 }
  0x90   : > { %v906_v18 = vunpack.c.l.b16 %v2163_v58  ;;  %v907_v31 = vunpack.c.l.b16 %v2164_v55  ;;  %v1753_v56 = vunpack.c.l.b16 %v2165_v19  ;;  %v2168_v8 = vpack.c.bf16 %v1385_v46, %v1385_v46 }
  0x91   : > { %v1758_v0 = vunpack.c.l.b16 %v2166_v29  ;;  %v1763_v7 = vunpack.c.l.b16 %v2167_v6  ;;  %v2169_v14 = vpack.c.bf16 %v1387_v47, %v1387_v47  ;;  %v2170_v27 = vpack.c.bf16 %v1393_v30, %v1393_v30 }
  0x92   : > { %v1768_v9 = vunpack.c.l.b16 %v2168_v8  ;;  %v2171_v19 = vpack.c.bf16 %v1396_v36, %v1396_v36  ;;  %v2172_v29 = vpack.c.bf16 %v1398_v37, %v1398_v37  ;;  %v2173_v46 = vpack.c.bf16 %v1400_v40, %v1400_v40 }
  0x93   : > { %v1773_v58 = vunpack.c.l.b16 %v2169_v14  ;;  %v913_v55 = vunpack.c.l.b16 %v2170_v27  ;;  %v2174_v47 = vpack.c.bf16 %v1407_v63, %v1407_v63  ;;  %v2175_v30 = vpack.c.bf16 %v1409_v3, %v1409_v3 }
  0x94   : > { %v914_v32 = vunpack.c.l.b16 %v2171_v19  ;;  %v915_v6 = vunpack.c.l.b16 %v2172_v29  ;;  %v916_v8 = vunpack.c.l.b16 %v2173_v46  ;;  %v2176_v36 = vpack.c.bf16 %v1415_v26, %v1415_v26 }
  0x95   : > { %v917_v14 = vunpack.c.l.b16 %v2174_v47  ;;  %v1793_v27 = vunpack.c.l.b16 %v2175_v30  ;;  %v2177_v37 = vpack.c.bf16 %v1417_v28, %v1417_v28  ;;  %v2178_v40 = vpack.c.bf16 %v1424_v5, %v1424_v5 }
  0x96   : > { %v1798_v19 = vunpack.c.l.b16 %v2176_v36  ;;  %v2179_v3 = vpack.c.bf16 %v1428_v22, %v1428_v22  ;;  %v2180_v26 = vpack.c.bf16 %v1430_v25, %v1430_v25  ;;  %v2181_v28 = vpack.c.bf16 %v2124_v60, %v2124_v60 }
  0x97   : > { %v1803_v29 = vunpack.c.l.b16 %v2177_v37  ;;  %v1808_v63 = vunpack.c.l.b16 %v2178_v40  ;;  %v2182_v5 = vpack.c.bf16 %v2125_v39, %v2125_v39  ;;  %v2184_v22 = vpack.c.bf16 %v2126_v45, %v2126_v45 }
  0x98   : > { %v1813_v46 = vunpack.c.l.b16 %v2179_v3  ;;  %v1818_v47 = vunpack.c.l.b16 %v2180_v26  ;;  %v1823_v30 = vunpack.c.l.b16 %v2181_v28  ;;  %v2186_v25 = vpack.c.bf16 %v2127_v57, %v2127_v57  ;;  %v2191_v28 = vld [vmem:[#allocation9_spill] sm:$0xff] }
  0x99   : > { %v1828_v36 = vunpack.c.l.b16 %v2182_v5  ;;  %v1833_v37 = vunpack.c.l.b16 %v2184_v22  ;;  %v2188_v60 = vpack.c.bf16 %v2128_v51, %v2128_v51  ;;  %v2190_v39 = vpack.c.bf16 %v2129_v10, %v2129_v10  ;;  %v2193_v22 = vld [vmem:[#allocation10_spill] sm:$0xff] }
  0x9a   : > { %v1838_v40 = vunpack.c.l.b16 %v2186_v25  ;;  %v2192_v45 = vpack.c.bf16 %v2191_v28, %v2191_v28  ;;  %v2194_v57 = vpack.c.bf16 %v2193_v22, %v2193_v22 }
  0x9b   : > { %2183 = vst [vmem:[#allocation4_spill] sm:$0xff] %v1828_v36  ;;  %2185 = vst [vmem:[#allocation5_spill] sm:$0xff] %v1833_v37  ;;  %v1843_v3 = vunpack.c.l.b16 %v2188_v60  ;;  %v1848_v26 = vunpack.c.l.b16 %v2190_v39  ;;  %v2200_v37 = vld [vmem:[#allocation13_spill] sm:$0xff]  ;;  %v2203_v36 = vld [vmem:[#allocation14_spill] sm:$0xff] }
  0x9c   : > { %2187 = vst [vmem:[#allocation6_spill] sm:$0xff] %v1838_v40  ;;  %v1853_v5 = vunpack.c.l.b16 %v2192_v45  ;;  %v1858_v25 = vunpack.c.l.b16 %v2194_v57  ;;  %v2195_v40 = vld [vmem:[#allocation11_spill] sm:$0xff]  ;;  %v2201_v28 = vpack.c.bf16 %v2200_v37, %v2200_v37  ;;  %v2204_v22 = vpack.c.bf16 %v2203_v36, %v2203_v36 }
  0x9d   : > { %2189 = vst [vmem:[#allocation7_spill] sm:$0xff] %v1843_v3  ;;  %v2196_v51 = vpack.c.bf16 %v2195_v40, %v2195_v40  ;;  %v2197_v3 = vld [vmem:[#allocation12_spill] sm:$0xff]  ;;  %v2206_v40 = vpack.c.bf16 %v2136_v48, %v2136_v48  ;;  %v2211_v36 = vpack.c.bf16 %v2140_v24, %v2140_v24  ;;  %v2212_v48 = vpack.c.bf16 %v2141_v35, %v2141_v35 }
  0x9e   : > { %v2198_v10 = vpack.c.bf16 %v2197_v3, %v2197_v3  ;;  %v1873_v45 = vunpack.c.l.b16 %v2201_v28  ;;  %v1878_v57 = vunpack.c.l.b16 %v2204_v22  ;;  %v2208_v3 = vpack.c.bf16 %v2137_v62, %v2137_v62 }
  0x9f   : > { %v1863_v60 = vunpack.c.l.b16 %v2196_v51  ;;  %v1883_v51 = vunpack.c.l.b16 %v2206_v40  ;;  %v2210_v28 = vpack.c.bf16 %v2139_v21, %v2139_v21  ;;  %v1897_v22 = vunpack.c.l.b16 %v2211_v36 }
  0xa0   : > { %v1868_v39 = vunpack.c.l.b16 %v2198_v10  ;;  %2202 = vst [vmem:[#allocation15_spill] sm:$0xff] %v1873_v45  ;;  %2205 = vst [vmem:[#allocation16_spill] sm:$0xff] %v1878_v57  ;;  %v937_v10 = vunpack.c.l.b16 %v2208_v3  ;;  %v1902_v40 = vunpack.c.l.b16 %v2212_v48  ;;  %v2213_v62 = vpack.c.bf16 %v2142_v16, %v2142_v16  ;;  %v2219_v48 = vld [vmem:[#allocation24_spill] sm:$0xff] }
  0xa1   : > { %2207 = vst [vmem:[#allocation17_spill] sm:$0xff] %v1883_v51  ;;  %v939_v45 = vunpack.c.l.b16 %v2210_v28  ;;  %v2214_v21 = vpack.c.bf16 %v2143_v38, %v2143_v38  ;;  %v2215_v24 = vpack.c.bf16 %v1516_v12, %v1516_v12  ;;  %v2217_v28 = vld [vmem:[#allocation23_spill] sm:$0xff]  ;;  %v2220_v16 = vpack.c.bf16 %v2219_v48, %v2219_v48 }
  0xa2   : > { %2199 = vst [vmem:[#allocation8_spill] sm:$0xff] %v1868_v39  ;;  %v2209_v39 = vpack.c.bf16 %v2138_v15, %v2138_v15  ;;  %v1907_v15 = vunpack.c.l.b16 %v2213_v62  ;;  %v2218_v35 = vpack.c.bf16 %v2217_v28, %v2217_v28  ;;  %v2221_v62 = vpack.c.bf16 %v1527_v41, %v1527_v41 }
  0xa3   : > { %v1917_v3 = vunpack.c.l.b16 %v2215_v24  ;;  %v946_v51 = vunpack.c.l.b16 %v2220_v16  ;;  %v2222_v38 = vpack.c.bf16 %v1529_v50, %v1529_v50  ;;  %v2223_v12 = vpack.c.bf16 %v1541_v59, %v1541_v59 }
  0xa4   : > { %v938_v37 = vunpack.c.l.b16 %v2209_v39  ;;  %v1912_v39 = vunpack.c.l.b16 %v2214_v21  ;;  %v945_v36 = vunpack.c.l.b16 %v2218_v35  ;;  %v947_v57 = vunpack.c.l.b16 %v2221_v62 }
  0xa5   : > { %2216 = vst [vmem:[#allocation18_spill] sm:$0xff] %v1917_v3  ;;  %v948_v21 = vunpack.c.l.b16 %v2222_v38  ;;  %v949_v24 = vunpack.c.l.b16 %v2223_v12  ;;  %v2224_v28 = vpack.c.bf16 %v1551_v42, %v1551_v42  ;;  %v2225_v3 = vld [vmem:[#allocation25_spill] sm:$0xff]  ;;  %v2227_v41 = vpack.c.bf16 %v1573_v34, %v1573_v34 }
  0xa6   : > { %v2226_v48 = vpack.c.bf16 %v2225_v3, %v2225_v3  ;;  %v954_v50 = vsel %vm953_vm1, %v1669_v23, %v1664_v49  ;;  %v967_v42 = vsel %vm953_vm1, %v1709_v52, %v1704_v44  ;;  %v974_v34 = vsel %vm953_vm1, %v906_v18, %v905_v54 }
  0xa7   : > { %v1937_v35 = vunpack.c.l.b16 %v2224_v28  ;;  %v1947_v62 = vunpack.c.l.b16 %v2227_v41  ;;  %v956_v59 = vsel %vm955_vm2, %v1674_v33, %v954_v50  ;;  %v981_v3 = vsel %vm953_vm1, %v914_v32, %v913_v55  ;;  %v2228_v55 = vld [vmem:[#allocation3_spill] sm:$0xff]  ;;  %v2235_v50 = vld [vmem:[#allocation16_spill] sm:$0xff] }
  0xa8   : > { %v1942_v16 = vunpack.c.l.b16 %v2226_v48  ;;  %v958_v38 = vsel %vm957_vm3, %v1679_v43, %v956_v59  ;;  %v968_v49 = vsel %vm955_vm2, %v1714_v53, %v967_v42  ;;  %v975_v23 = vsel %vm955_vm2, %v907_v31, %v974_v34  ;;  %v2234_v48 = vld [vmem:[#allocation7_spill] sm:$0xff] }
  0xa9   : > { %v982_v12 = vsel %vm955_vm2, %v915_v6, %v981_v3  ;;  %v960_v33 = vsel %vm959_vm4, %v1684_v13, %v958_v38  ;;  %v969_v44 = vsel %vm957_vm3, %v1719_v61, %v968_v49  ;;  %v976_v52 = vsel %vm957_vm3, %v1753_v56, %v975_v23 }
  0xaa   : > { %v983_v43 = vsel %vm957_vm3, %v916_v8, %v982_v12  ;;  %v962_v53 = vsel %vm961_vm5, %v1689_v4, %v960_v33  ;;  %v970_v31 = vsel %vm959_vm4, %v1724_v1, %v969_v44  ;;  %v977_v54 = vsel %vm959_vm4, %v1758_v0, %v976_v52 }
  0xab   : > { %v984_v13 = vsel %vm959_vm4, %v917_v14, %v983_v43  ;;  %v964_v18 = vsel %vm963_vm6, %v1694_v17, %v962_v53  ;;  %v971_v61 = vsel %vm961_vm5, %v1729_v2, %v970_v31  ;;  %v978_v56 = vsel %vm961_vm5, %v1763_v7, %v977_v54 }
  0xac   : > { %v985_v4 = vsel %vm961_vm5, %v1793_v27, %v984_v13  ;;  %v966_v1 = vsel %vm965_vm7, %v2228_v55, %v964_v18  ;;  %v972_v0 = vsel %vm963_vm6, %v1734_v11, %v971_v61  ;;  %v979_v32 = vsel %vm963_vm6, %v1768_v9, %v978_v56 }
  0xad   : > { %v986_v17 = vsel %vm963_vm6, %v1798_v19, %v985_v4  ;;  %v973_v2 = vsel %vm965_vm7, %v1739_v20, %v972_v0  ;;  %v980_v7 = vsel %vm965_vm7, %v1773_v58, %v979_v32  ;;  %v988_v11 = vsel %vm953_vm1, %v1813_v46, %v1808_v63  ;;  %v2229_v63 = vld [vmem:[#allocation4_spill] sm:$0xff] }
  0xae   : > { %v987_v6 = vsel %vm965_vm7, %v1803_v29, %v986_v17  ;;  %v989_v9 = vsel %vm955_vm2, %v1818_v47, %v988_v11  ;;  %v995_v8 = vsel %vm953_vm1, %v1853_v5, %v1848_v26  ;;  %v1002_v20 = vsel %vm953_vm1, %v938_v37, %v937_v10  ;;  %v2232_v37 = vld [vmem:[#allocation6_spill] sm:$0xff] }
  0xaf   : > { %v1009_v14 = vsel %vm953_vm1, %v946_v51, %v945_v36  ;;  %v990_v58 = vsel %vm957_vm3, %v1823_v30, %v989_v9  ;;  %v996_v27 = vsel %vm955_vm2, %v1858_v25, %v995_v8  ;;  %v1003_v19 = vsel %vm955_vm2, %v939_v45, %v1002_v20  ;;  %v2230_v30 = vld [vmem:[#allocation5_spill] sm:$0xff]  ;;  %v2231_v25 = vld [vmem:[#allocation8_spill] sm:$0xff]  ;;  %v2233_v36 = vld [vmem:[#allocation15_spill] sm:$0xff] }
  0xb0   : > { %v1010_v29 = vsel %vm955_vm2, %v947_v57, %v1009_v14  ;;  %v991_v46 = vsel %vm959_vm4, %v2229_v63, %v990_v58  ;;  %v997_v47 = vsel %vm957_vm3, %v1863_v60, %v996_v27  ;;  %v1004_v26 = vsel %vm957_vm3, %v1897_v22, %v1003_v19 }
  0xb1   : > { %v1011_v5 = vsel %vm957_vm3, %v948_v21, %v1010_v29  ;;  %v992_v51 = vsel %vm961_vm5, %v2230_v30, %v991_v46  ;;  %v998_v45 = vsel %vm959_vm4, %v2231_v25, %v997_v47  ;;  %v1005_v57 = vsel %vm959_vm4, %v1902_v40, %v1004_v26 }
  0xb2   : > { %v1012_v10 = vsel %vm959_vm4, %v949_v24, %v1011_v5  ;;  %v993_v60 = vsel %vm963_vm6, %v2232_v37, %v992_v51  ;;  %v999_v22 = vsel %vm961_vm5, %v2233_v36, %v998_v45  ;;  %v1006_v21 = vsel %vm961_vm5, %v1907_v15, %v1005_v57  ;;  %v2236_v15 = vld [vmem:[#allocation17_spill] sm:$0xff] }
  0xb3   : > { %v1013_v28 = vsel %vm961_vm5, %v1937_v35, %v1012_v10  ;;  %v994_v41 = vsel %vm965_vm7, %v2234_v48, %v993_v60  ;;  %v1000_v40 = vsel %vm963_vm6, %v2235_v50, %v999_v22  ;;  %v1007_v24 = vsel %vm963_vm6, %v1912_v39, %v1006_v21  ;;  %v2237_v35 = vld [vmem:[#allocation18_spill] sm:$0xff] }
  0xb4   : > { %v1014_v59 = vsel %vm963_vm6, %v1942_v16, %v1013_v28  ;;  %v1001_v42 = vsel %vm965_vm7, %v2236_v15, %v1000_v40  ;;  %v1008_v34 = vsel %vm965_vm7, %v2237_v35, %v1007_v24  ;;  %v1016_v38 = vpack.c.b16 %v966_v1, %v966_v1 }
  0xb5   : > { %v1015_v3 = vsel %vm965_vm7, %v1947_v62, %v1014_v59  ;;  %v1017_v49 = vpack.c.b16 %v973_v2, %v973_v2  ;;  %v1018_v23 = vpack.c.b16 %v980_v7, %v980_v7  ;;  %v1019_v39 = vpack.c.b16 %v987_v6, %v987_v6 }
  0xb6   : > { %v1020_v12 = vpack.c.b16 %v994_v41, %v994_v41  ;;  %v1021_v33 = vpack.c.b16 %v1001_v42, %v1001_v42  ;;  %v1022_v16 = vpack.c.b16 %v1008_v34, %v1008_v34  ;;  %v1023_v44 = vpack.c.b16 %v1015_v3, %v1015_v3  ;;  %1033 = vst.msk [vmem:[%s118_s17] sm:$0xf] %vm1032_vm8, %v1016_v38 }
  0xb7   : > { %1034 = vst.msk [vmem:[%s118_s17 + $0x4] sm:$0xf] %vm1032_vm8, %v1017_v49  ;;  %1035 = vst.msk [vmem:[%s118_s17 + $0x8] sm:$0xf] %vm1032_vm8, %v1018_v23 }
  0xb8   : > { %1036 = vst.msk [vmem:[%s118_s17 + $0xc] sm:$0xf] %vm1032_vm8, %v1019_v39  ;;  %1037 = vst.msk [vmem:[%s118_s17 + $0x10] sm:$0xf] %vm1032_vm8, %v1020_v12 }
  0xb9   : > { %1038 = vst.msk [vmem:[%s118_s17 + $0x14] sm:$0xf] %vm1032_vm8, %v1021_v33  ;;  %1039 = vst.msk [vmem:[%s118_s17 + $0x18] sm:$0xf] %vm1032_vm8, %v1022_v16 }
  0xba   : > { %1040 = vst.msk [vmem:[%s118_s17 + $0x1c] sm:$0xf] %vm1032_vm8, %v1023_v44 }
  0xbb PF: > { %s11_s6 = sadd.s32 1, %s1250_s6  }
  0xbc   : > { %p8_p5 = scmp.ge.s32.totalorder %s11_s6, 4  }
  0xbe   :  { %10 = sbr.rel (!%p8_p5) target bundleno = 1 (0x1), region = 54 }

// kernel: tile.33
= control target key start
LH: loop header
LB: loop body
LE: loop exit
PB: predicated region body
PF: predicated region fallthrough
CT: control target
= control target key end

     0   :  { %s22_s0 = inlined_call_operand.vmem [shape: f32[8], index: 0, kind: input, shape index: {}]   ;;  %s23_s1 = inlined_call_operand.vmem [shape: f32[8,8], index: 1, kind: output, shape index: {}]  }
   0x1   :  { %v4_v0 = vld [vmem:[%s22_s0] ss:$0 sm:$0xff] }
   0x2   :  { %5 = vst [vmem:[%s23_s1] sm:$0xff] %v4_v0 }

// kernel: tile.34
= control target key start
LH: loop header
LB: loop body
LE: loop exit
PB: predicated region body
PF: predicated region fallthrough
CT: control target
= control target key end

     0   :  { %s67_s10 = smov 56   ;;  %s68_s11 = smov 40   ;;  %vm3_vm0 = vcmask 64512   ;;  %vm9_vm1 = vcmask 523712   ;;  %vm15_vm2 = vcmask 458112   ;;  %vm21_vm3 = vcmask 392512   ;;  %s111_s0 = inlined_call_operand.vmem [shape: f32[8,8], index: 0, kind: input, shape index: {}]   ;;  %s112_s1 = inlined_call_operand.vmem [shape: f32[1,64], index: 1, kind: output, shape index: {}]  }
   0x1   :  { %v53_v0 = vld [vmem:[%s111_s0 + $0x7] sm:$0x1]   ;;  %v55_v1 = vld [vmem:[%s111_s0 + $0x5] sm:$0x1]   ;;  %v54_v2 = vld [vmem:[%s111_s0 + $0x6] sm:$0x1]  }
   0x2   :  { %7 = vrot.lane.b32.xlu0 %v53_v0, %s67_s10  ;;  %19 = vrot.lane.b32.xlu1 %v55_v1, %s68_s11  ;;  %v56_v3 = vld [vmem:[%s111_s0 + $0x4] sm:$0x1]   ;;  %v2_v4 = vld [vmem:[%s111_s0] sm:$0x1]   ;;  %s69_s18 = smov 48   ;;  %s70_s19 = smov 32  }
   0x3   :  { %4 = vst.msk [vmem:[#allocation0] sm:$0x1] %vm3_vm0, %v2_v4   ;;  %v57_v5 = vld [vmem:[%s111_s0 + $0x3] sm:$0x1]   ;;  %v58_v6 = vld [vmem:[%s111_s0 + $0x2] sm:$0x1]  }
   0x4   :  { %s71_s24 = smov 24   ;;  %s72_s25 = smov 16   ;;  %v59_v7 = vld [vmem:[%s111_s0 + $0x1] sm:$0x1]   ;;  %vm27_vm4 = vcmask 326912   ;;  %vm33_vm5 = vcmask 261312  }
   0x5   :  { %s73_s0 = smov 8   ;;  %vm39_vm6 = vcmask 195712   ;;  %vm45_vm7 = vcmask 130112  }
   0x6   :  { %13 = vrot.lane.b32.xlu0 %v54_v2, %s69_s18  ;;  %25 = vrot.lane.b32.xlu1 %v56_v3, %s70_s19 }
   0xa   :  { %31 = vrot.lane.b32.xlu0 %v57_v5, %s71_s24  ;;  %37 = vrot.lane.b32.xlu1 %v58_v6, %s72_s25 }
   0xe   :  { %43 = vrot.lane.b32.xlu0 %v59_v7, %s73_s0 }
  0x74   :  { %v8_v8 = vpop.permute.xlu0 %7   ;;  %v20_v9 = vpop.permute.xlu1 %19  }
  0x75   :  { %10 = vst.msk [vmem:[#allocation0] sm:$0x1] %vm9_vm1, %v8_v8  }
  0x78   :  { %v14_v10 = vpop.permute.xlu0 %13   ;;  %v26_v11 = vpop.permute.xlu1 %25  }
  0x79   :  { %16 = vst.msk [vmem:[#allocation0] sm:$0x1] %vm15_vm2, %v14_v10  }
  0x7a   :  { %22 = vst.msk [vmem:[#allocation0] sm:$0x1] %vm21_vm3, %v20_v9  }
  0x7b   :  { %28 = vst.msk [vmem:[#allocation0] sm:$0x1] %vm27_vm4, %v26_v11  }
  0x7c   :  { %v32_v12 = vpop.permute.xlu0 %31   ;;  %v38_v13 = vpop.permute.xlu1 %37  }
  0x7d   :  { %34 = vst.msk [vmem:[#allocation0] sm:$0x1] %vm33_vm5, %v32_v12  }
  0x7e   :  { %40 = vst.msk [vmem:[#allocation0] sm:$0x1] %vm39_vm6, %v38_v13  }
  0x80   :  { %v44_v14 = vpop.permute.xlu0 %43  }
  0x81   :  { %46 = vst.msk [vmem:[#allocation0] sm:$0x1] %vm45_vm7, %v44_v14  }
  0x88   :  { %v50_v15 = vld [vmem:[#allocation0] sm:$0x1] }
  0x89   :  { %52 = vst [vmem:[%s112_s1] sm:$0x1] %v50_v15 }

// kernel: down3d_forward.7
= control target key start
LH: loop header
LB: loop body
LE: loop exit
PB: predicated region body
PF: predicated region fallthrough
CT: control target
= control target key end

     0   :  { %vm188_vm0 = vcmask 519168   ;;  %s465_s0 = inlined_call_operand.vmem [shape: f32[160,64], index: 0, kind: input, shape index: {}]   ;;  %s466_s1 = inlined_call_operand.vmem [shape: f32[1,64], index: 1, kind: input, shape index: {}]   ;;  %s467_s2 = inlined_call_operand.vmem [shape: f32[1,64], index: 2, kind: input, shape index: {}]   ;;  %s468_s3 = inlined_call_operand.vmem [shape: bf16[160,64], index: 3, kind: output, shape index: {}]  }
   0x1   :  { %v14_v0 = vld [vmem:[%s465_s0] sm:$0xff]  ;;  %v15_v4 = vld [vmem:[%s465_s0 + $0x8] sm:$0xff]  ;;  %v16_v5 = vld [vmem:[%s465_s0 + $0x10] sm:$0xff] }
   0x2   :  { %v281_v1 = vld [vmem:[%s466_s1] ss:$0 sm:$0xff]  ;;  %v17_v6 = vld [vmem:[%s465_s0 + $0x18] sm:$0xff]  ;;  %v19_v11 = vld [vmem:[%s465_s0 + $0x28] sm:$0xff] }
   0x3   :  { %v286_v2 = vld [vmem:[%s467_s2] ss:$0 sm:$0xff]  ;;  %v41_v3 = vmul.f32 %v281_v1, %v14_v0  ;;  %v42_v7 = vmul.f32 %v281_v1, %v15_v4  ;;  %v43_v8 = vmul.f32 %v281_v1, %v16_v5  ;;  %v44_v9 = vmul.f32 %v281_v1, %v17_v6  ;;  %v20_v12 = vld [vmem:[%s465_s0 + $0x30] sm:$0xff]  ;;  %v21_v17 = vld [vmem:[%s465_s0 + $0x38] sm:$0xff] }
   0x4   :  { %v18_v10 = vld [vmem:[%s465_s0 + $0x20] sm:$0xff]  ;;  %v46_v15 = vmul.f32 %v281_v1, %v19_v11  ;;  %v47_v16 = vmul.f32 %v281_v1, %v20_v12  ;;  %v48_v21 = vmul.f32 %v281_v1, %v21_v17  ;;  %v23_v35 = vld [vmem:[%s465_s0 + $0x48] sm:$0xff]  ;;  %v24_v36 = vld [vmem:[%s465_s0 + $0x50] sm:$0xff] }
   0x5   :  { %v68_v13 = vadd.f32 %v286_v2, %v41_v3  ;;  %v45_v14 = vmul.f32 %v281_v1, %v18_v10  ;;  %v69_v18 = vadd.f32 %v286_v2, %v42_v7  ;;  %v70_v19 = vadd.f32 %v286_v2, %v43_v8  ;;  %v22_v30 = vld [vmem:[%s465_s0 + $0x40] sm:$0xff]  ;;  %v25_v37 = vld [vmem:[%s465_s0 + $0x58] sm:$0xff]  ;;  %v27_v43 = vld [vmem:[%s465_s0 + $0x68] sm:$0xff] }
   0x6   :  { %v71_v20 = vadd.f32 %v286_v2, %v44_v9  ;;  %v73_v24 = vadd.f32 %v286_v2, %v46_v15  ;;  %v74_v25 = vadd.f32 %v286_v2, %v47_v16  ;;  %v75_v29 = vadd.f32 %v286_v2, %v48_v21  ;;  %v26_v42 = vld [vmem:[%s465_s0 + $0x60] sm:$0xff]  ;;  %v28_v44 = vld [vmem:[%s465_s0 + $0x70] sm:$0xff]  ;;  %v29_v49 = vld [vmem:[%s465_s0 + $0x78] sm:$0xff] }
   0x7   :  { %v88_v22 = vmax.f32 %v68_v13, 0.0  ;;  %v72_v23 = vadd.f32 %v286_v2, %v45_v14  ;;  %v89_v26 = vmax.f32 %v69_v18, 0.0  ;;  %v90_v27 = vmax.f32 %v70_v19, 0.0  ;;  %v30_v8 = vld [vmem:[%s465_s0 + $0x80] sm:$0xff]  ;;  %v31_v13 = vld [vmem:[%s465_s0 + $0x88] sm:$0xff]  ;;  %v32_v14 = vld [vmem:[%s465_s0 + $0x90] sm:$0xff] }
   0x8   :  { %v91_v28 = vmax.f32 %v71_v20, 0.0  ;;  %v93_v33 = vmax.f32 %v73_v24, 0.0  ;;  %v94_v34 = vmax.f32 %v74_v25, 0.0  ;;  %v95_v41 = vmax.f32 %v75_v29, 0.0  ;;  %v33_v15 = vld [vmem:[%s465_s0 + $0x98] sm:$0xff] }
   0x9   :  { %v235_v31 = vpack.c.bf16 %v88_v22, %v88_v22  ;;  %v92_v32 = vmax.f32 %v72_v23, 0.0  ;;  %v236_v38 = vpack.c.bf16 %v89_v26, %v89_v26  ;;  %v237_v39 = vpack.c.bf16 %v90_v27, %v90_v27 }
   0xa   :  { %v238_v40 = vpack.c.bf16 %v91_v28, %v91_v28  ;;  %v240_v46 = vpack.c.bf16 %v93_v33, %v93_v33  ;;  %v241_v47 = vpack.c.bf16 %v94_v34, %v94_v34  ;;  %v49_v48 = vmul.f32 %v281_v1, %v22_v30 }
   0xb   :  { %189 = vst.msk [vmem:[%s468_s3] sm:$0xf] %vm188_vm0, %v235_v31  ;;  %v239_v45 = vpack.c.bf16 %v92_v32, %v92_v32  ;;  %190 = vst.msk [vmem:[%s468_s3 + $0x4] sm:$0xf] %vm188_vm0, %v236_v38  ;;  %v242_v50 = vpack.c.bf16 %v95_v41, %v95_v41  ;;  %v50_v51 = vmul.f32 %v281_v1, %v23_v35 }
   0xc   :  { %191 = vst.msk [vmem:[%s468_s3 + $0x8] sm:$0xf] %vm188_vm0, %v237_v39  ;;  %192 = vst.msk [vmem:[%s468_s3 + $0xc] sm:$0xf] %vm188_vm0, %v238_v40  ;;  %v51_v52 = vmul.f32 %v281_v1, %v24_v36  ;;  %v52_v53 = vmul.f32 %v281_v1, %v25_v37  ;;  %v76_v54 = vadd.f32 %v286_v2, %v49_v48 }
   0xd   :  { %193 = vst.msk [vmem:[%s468_s3 + $0x10] sm:$0xf] %vm188_vm0, %v239_v45  ;;  %194 = vst.msk [vmem:[%s468_s3 + $0x14] sm:$0xf] %vm188_vm0, %v240_v46  ;;  %v53_v55 = vmul.f32 %v281_v1, %v26_v42  ;;  %v54_v56 = vmul.f32 %v281_v1, %v27_v43  ;;  %v55_v57 = vmul.f32 %v281_v1, %v28_v44 }
   0xe   :  { %195 = vst.msk [vmem:[%s468_s3 + $0x18] sm:$0xf] %vm188_vm0, %v241_v47  ;;  %196 = vst.msk [vmem:[%s468_s3 + $0x1c] sm:$0xf] %vm188_vm0, %v242_v50  ;;  %v77_v58 = vadd.f32 %v286_v2, %v50_v51  ;;  %v78_v59 = vadd.f32 %v286_v2, %v51_v52  ;;  %v79_v60 = vadd.f32 %v286_v2, %v52_v53  ;;  %v96_v62 = vmax.f32 %v76_v54, 0.0 }
   0xf   :  { %v56_v61 = vmul.f32 %v281_v1, %v29_v49  ;;  %v80_v63 = vadd.f32 %v286_v2, %v53_v55  ;;  %v81_v0 = vadd.f32 %v286_v2, %v54_v56  ;;  %v82_v3 = vadd.f32 %v286_v2, %v55_v57 }
  0x10   :  { %v97_v4 = vmax.f32 %v77_v58, 0.0  ;;  %v98_v5 = vmax.f32 %v78_v59, 0.0  ;;  %v99_v6 = vmax.f32 %v79_v60, 0.0  ;;  %v243_v9 = vpack.c.bf16 %v96_v62, %v96_v62 }
  0x11   :  { %v83_v7 = vadd.f32 %v286_v2, %v56_v61  ;;  %v100_v10 = vmax.f32 %v80_v63, 0.0  ;;  %v101_v11 = vmax.f32 %v81_v0, 0.0  ;;  %v102_v12 = vmax.f32 %v82_v3, 0.0 }
  0x12   :  { %v244_v16 = vpack.c.bf16 %v97_v4, %v97_v4  ;;  %v245_v17 = vpack.c.bf16 %v98_v5, %v98_v5  ;;  %v246_v18 = vpack.c.bf16 %v99_v6, %v99_v6  ;;  %197 = vst.msk [vmem:[%s468_s3 + $0x20] sm:$0xf] %vm188_vm0, %v243_v9  ;;  %v57_v23 = vmul.f32 %v281_v1, %v30_v8 }
  0x13   :  { %v103_v19 = vmax.f32 %v83_v7, 0.0  ;;  %v247_v20 = vpack.c.bf16 %v100_v10, %v100_v10  ;;  %v248_v21 = vpack.c.bf16 %v101_v11, %v101_v11  ;;  %v249_v22 = vpack.c.bf16 %v102_v12, %v102_v12 }
  0x14   :  { %198 = vst.msk [vmem:[%s468_s3 + $0x24] sm:$0xf] %vm188_vm0, %v244_v16  ;;  %199 = vst.msk [vmem:[%s468_s3 + $0x28] sm:$0xf] %vm188_vm0, %v245_v17  ;;  %v58_v25 = vmul.f32 %v281_v1, %v31_v13  ;;  %v59_v26 = vmul.f32 %v281_v1, %v32_v14  ;;  %v60_v27 = vmul.f32 %v281_v1, %v33_v15 }
  0x15   :  { %200 = vst.msk [vmem:[%s468_s3 + $0x2c] sm:$0xf] %vm188_vm0, %v246_v18  ;;  %v250_v24 = vpack.c.bf16 %v103_v19, %v103_v19  ;;  %201 = vst.msk [vmem:[%s468_s3 + $0x30] sm:$0xf] %vm188_vm0, %v247_v20  ;;  %v84_v28 = vadd.f32 %v286_v2, %v57_v23 }
  0x16   :  { %202 = vst.msk [vmem:[%s468_s3 + $0x34] sm:$0xf] %vm188_vm0, %v248_v21  ;;  %203 = vst.msk [vmem:[%s468_s3 + $0x38] sm:$0xf] %vm188_vm0, %v249_v22  ;;  %v85_v1 = vadd.f32 %v286_v2, %v58_v25  ;;  %v86_v29 = vadd.f32 %v286_v2, %v59_v26  ;;  %v87_v30 = vadd.f32 %v286_v2, %v60_v27 }
  0x17   :  { %204 = vst.msk [vmem:[%s468_s3 + $0x3c] sm:$0xf] %vm188_vm0, %v250_v24  ;;  %v104_v31 = vmax.f32 %v84_v28, 0.0 }
  0x18   :  { %v105_v32 = vmax.f32 %v85_v1, 0.0  ;;  %v106_v33 = vmax.f32 %v86_v29, 0.0  ;;  %v107_v34 = vmax.f32 %v87_v30, 0.0 }
  0x19   :  { %v251_v35 = vpack.c.bf16 %v104_v31, %v104_v31 }
  0x1a   :  { %v252_v36 = vpack.c.bf16 %v105_v32, %v105_v32  ;;  %v253_v37 = vpack.c.bf16 %v106_v33, %v106_v33  ;;  %v254_v38 = vpack.c.bf16 %v107_v34, %v107_v34 }
  0x1b   :  { %205 = vst.msk [vmem:[%s468_s3 + $0x40] sm:$0xf] %vm188_vm0, %v251_v35 }
  0x1c   :  { %206 = vst.msk [vmem:[%s468_s3 + $0x44] sm:$0xf] %vm188_vm0, %v252_v36  ;;  %207 = vst.msk [vmem:[%s468_s3 + $0x48] sm:$0xf] %vm188_vm0, %v253_v37 }
  0x1d   :  { %208 = vst.msk [vmem:[%s468_s3 + $0x4c] sm:$0xf] %vm188_vm0, %v254_v38 }

// kernel: down3d_forward.6
= control target key start
LH: loop header
LB: loop body
LE: loop exit
PB: predicated region body
PF: predicated region fallthrough
CT: control target
= control target key end

     0   :  { %s2577_s15 = smov 0   ;;  %s3374_s0 = inlined_call_operand.vmem [shape: bf16[2,102,40], index: 0, kind: input, shape index: {}]   ;;  %s3375_s1 = inlined_call_operand.vmem [shape: bf16[9,40,64], index: 1, kind: input, shape index: {}]   ;;  %s3376_s2 = inlined_call_operand.vmem [shape: f32[1,64], index: 2, kind: input, shape index: {}]   ;;  %s3377_s3 = inlined_call_operand.vmem [shape: f32[2,80,64], index: 3, kind: output, shape index: {0}]   ;;  %s3378_s4 = inlined_call_operand.vmem [shape: f32[2,8,64], index: 4, kind: output, shape index: {1}]  }
   0x1 LB: > { %s2002_s16 = sadd.s32 4294967295, %s2548_s15   ;;  %p2006_p0 = scmp.ge.s32.totalorder %s2548_s15, 1  ;;  %s2548_s15 = sphi %s2577_s15, %s15_s15  }
   0x2   : > { %p165_p1 = scmp.lt.s32.totalorder %s2548_s15, 3 }
   0x4   : > { %p166_p2 = pnand %p2006_p0, %p165_p1 }
   0x5   : > { %v2492_v0 = vld [vmem:[%s3375_s1 + $0x14] sm:$0xff] (!%p166_p2)   ;;  %v2550_v1 = vmov (!%p166_p2), 0.0   ;;  %v2493_v2 = vld [vmem:[%s3375_s1 + $0x1c] sm:$0xff] (!%p166_p2)   ;;  %p195_p3 = scmp.lt.s32.totalorder (!%p166_p2), %s2002_s16, 1  ;;  %v2494_v3 = vld [vmem:[%s3375_s1 + $0x24] ss:$0 sps:$4 sm:$0xff] (!%p166_p2)  }
   0x6   : > { %169 = sbr.rel (%p166_p2) target bundleno = 440 (0x1b8), region = 32  ;;  %2454 = vmatprep.subr.bf16.mxu1 (!%p166_p2), %v2550_v1  ;;  %2220 = vmatprep.subr.bf16.mxu0 (!%p166_p2), %v2550_v1  ;;  %vm336_vm0 = vcmask (!%p166_p2), 1043456   ;;  %vm2551_vm1 = vmmov (!%p166_p2), 0   ;;  %vm260_vm2 = vsmask.f32 (!%p166_p2), 7424  ;;  %vm320_vm3 = vcmask (!%p166_p2), 326656  }
   0x7   : > { %2457 = vmatpush3.bf16.msra.mxu1 (!%p166_p2), %v2492_v0  ;;  %2221 = vmatpush3.bf16.msra.mxu0 (!%p166_p2), %v2492_v0  ;;  %v338_v4 = vsel (!%p166_p2), %vm336_vm0, %v2494_v3, 0  ;;  %v2497_v21 = vld [vmem:[%s3375_s1] sm:$0xff] (!%p166_p2)   ;;  %v2502_v28 = vld [vmem:[%s3375_s1 + $0x28] sm:$0xff] (!%p166_p2)   ;;  %v2504_v35 = vld [vmem:[%s3375_s1 + $0x10] ss:$0 sps:$4 sm:$0xff] (!%p166_p2)   ;;  %vm524_vm4 = vcmask (!%p166_p2), 1046528  }
   0x8   : > { %2455 = vmatprep.subr.bf16.mxu1 (!%p166_p2), %v2550_v1  ;;  %2222 = vmatprep.subr.bf16.mxu0 (!%p166_p2), %v2550_v1  ;;  %v2501_v30 = vld [vmem:[%s3375_s1 + $0x8] sm:$0xff] (!%p166_p2)   ;;  %v2505_v37 = vld [vmem:[%s3375_s1 + $0x30] sm:$0xff] (!%p166_p2)   ;;  %v2506_v39 = vld [vmem:[%s3375_s1 + $0x38] ss:$0 sps:$4 sm:$0xff] (!%p166_p2)   ;;  %v439_v43 = vsel (!%p166_p2), %vm336_vm0, %v2504_v35, 0  ;;  %vm1014_vm6 = vcmask (!%p166_p2), 1045504  }
   0x9   : > { %2234 = vmatprep.mubr.msk.bf16.mxu1 (!%p166_p2), %vm2551_vm1, %v2550_v1  ;;  %2226 = vmatprep.mubr.msk.bf16.mxu0 (!%p166_p2), %vm2551_vm1, %v2550_v1  ;;  %v567_v46 = vsel (!%p166_p2), %vm336_vm0, %v2506_v39, 0  ;;  %v2509_v52 = vld [vmem:[%s3375_s1 + $0x50] sm:$0xff] (!%p166_p2)   ;;  %v2511_v59 = vld [vmem:[%s3375_s1 + $0x58] sm:$0xff] (!%p166_p2)   ;;  %v2513_v62 = vld [vmem:[%s3375_s1 + $0x60] ss:$0 sps:$4 sm:$0xff] (!%p166_p2)   ;;  %vm1504_vm7 = vcmask (!%p166_p2), 1044480  }
   0xa   : > { %v2508_v63 = vld [vmem:[%s3375_s1 + $0x3c] sm:$0xff] (!%p166_p2)   ;;  %vm834_vm5 = vsmask.f32 (!%p166_p2), 6400  ;;  %vm1324_vm8 = vsmask.f32 (!%p166_p2), 5376  ;;  %vm1904_vm9 = vcmask (!%p166_p2), 521216  }
   0xb   : > { %2458 = vmatpush3.bf16.msra.mxu1 (!%p166_p2), %v2493_v2  ;;  %2223 = vmatpush3.bf16.msra.mxu0 (!%p166_p2), %v2493_v2 }
   0xc   : > { %2456 = vmatprep.subr.bf16.mxu1 (!%p166_p2), %v2550_v1  ;;  %2224 = vmatprep.subr.bf16.mxu0 (!%p166_p2), %v2550_v1 }
   0xd   : > { %s3404_s16 = smov (!%p195_p3, %s2002_s16), 1 }
   0xe   : > { %s2460_s23 = smul.u32 52, %s3404_s16 }
   0xf   : > { %2459 = vmatpush3.bf16.msra.mxu1 %v338_v4  ;;  %2225 = vmatpush3.bf16.msra.mxu0 %v338_v4  ;;  %v919_v4 = vsel %vm336_vm0, %v2513_v62, 0  ;;  %s2461_s6 = smul.u32 80, %s3404_s16 }
  0x10   : > { %s2611_s26 = scalar_lea.vmem %s3374_s0, %s2460_s23  ;;  %2246 = vmatprep.subr.bf16.mxu1 %v2550_v1  ;;  %2272 = vmatprep.subr.bf16.mxu0 %v2550_v1 }
  0x11   : > { %v2614_v5 = vld [vmem:[%s2611_s26 + $0x10] sm:$0xff]   ;;  %v2617_v6 = vld [vmem:[%s2611_s26 + $0x18] sm:$0xff]   ;;  %v210_v7 = vld [vmem:[%s2611_s26] sm:$0xf]  ;;  %s3185_s10 = scalar_lea.vmem %s3377_s3, %s2461_s6 }
  0x12   : > { %v211_v8 = vld [vmem:[%s2611_s26 + $0x4] sm:$0xf]  ;;  %v277_v9 = vshll.u32 %v2614_v5, 16  ;;  %v281_v10 = vshrl.u32 %v2614_v5, 16  ;;  %v285_v11 = vshll.u32 %v2617_v6, 16  ;;  %v2629_v13 = vld [vmem:[%s2611_s26 + $0x8] sm:$0xff]  }
  0x13   : > { %v2626_v12 = vcombine.low %v210_v7, %v211_v8  ;;  %v2632_v14 = vld [vmem:[%s2611_s26 + $0x20] sm:$0xff]   ;;  %v269_v19 = vshll.u32 %v2629_v13, 16  ;;  %v289_v23 = vshrl.u32 %v2617_v6, 16  ;;  %v273_v29 = vshrl.u32 %v2629_v13, 16 }
  0x14   : > { %v279_v15 = vrot.slane %v277_v9, 1  ;;  %v287_v16 = vrot.slane %v285_v11, 1  ;;  %v293_v24 = vshll.u32 %v2632_v14, 16  ;;  %v2655_v34 = vld [vmem:[%s2611_s26 + $0x28] ss:$0 sps:$4 sm:$0x11]  }
  0x15   : > { %v262_v17 = vshrl.u32 %v2626_v12, 16  ;;  %v264_v18 = vshll.u32 %v2626_v12, 16  ;;  %v271_v25 = vrot.slane %v269_v19, 1  ;;  %v514_v38 = vld [vmem:[%s2611_s26] sm:$0xe]  ;;  %v297_v41 = vshrl.u32 %v2632_v14, 16 }
  0x16   : > { %v283_v20 = vor.u32 %v281_v10, %v279_v15  ;;  %v291_v32 = vor.u32 %v289_v23, %v287_v16  ;;  %v295_v33 = vrot.slane %v293_v24, 1  ;;  %v301_v42 = vshll.u32 %v2655_v34, 16  ;;  %v2694_v53 = vld [vmem:[%s2611_s26 + $0x1c] sm:$0xff]   ;;  %v2698_v55 = vld [vmem:[%s2611_s26 + $0x24] sm:$0xff]  }
  0x17   : > { %v266_v22 = vrot.slane %v264_v18, 1  ;;  %v275_v36 = vor.u32 %v273_v29, %v271_v25  ;;  %v2042_v44 = vcombine.low %v514_v38, %v211_v8  ;;  %v526_v50 = vrot.slane %v2629_v13, 1  ;;  %v2526_v61 = vld [vmem:[%s2611_s26 + $0x2c] ss:$0 sps:$4 sm:$0x11]   ;;  %v2510_v7 = vld [vmem:[%s3375_s1 + $0x44] sm:$0xff]  }
  0x18   : > { %v288_v26 = vsel %vm260_vm2, %v283_v20, %v287_v16  ;;  %v296_v40 = vsel %vm260_vm2, %v291_v32, %v295_v33  ;;  %v299_v47 = vor.u32 %v297_v41, %v295_v33  ;;  %v303_v48 = vrot.slane %v301_v42, 1  ;;  %v2512_v8 = vld [vmem:[%s3375_s1 + $0x4c] ss:$0 sps:$4 sm:$0xff]   ;;  %v2761_v16 = vld [vmem:[%s2611_s26 + $0x8] sm:$0xf] }
  0x19   : > { %v267_v27 = vor.u32 %v266_v22, %v262_v17  ;;  %2235 = vmatmul.mubr.msk.bf16.vlgmr.msra.gmra.mrb[0].mxu1 %vm320_vm3, %v288_v26  ;;  %v280_v45 = vsel %vm260_vm2, %v275_v36, %v279_v15  ;;  %v525_v49 = vrot.slane %v2042_v44, 1  ;;  %v702_v56 = vrot.slane %v2694_v53, 1  ;;  %v652_v15 = vld [vmem:[%s2611_s26 + $0x4] sm:$0xe]  ;;  %v2766_v18 = vld [vmem:[%s2611_s26 + $0xc] sm:$0xff]  }
  0x1a   : > { %2247 = vmatpush3.bf16.msra.mxu1 %v2497_v21  ;;  %2238 = vmatprep.mubr.msk.bf16.mxu1 %vm2551_vm1, %v2550_v1  ;;  %v304_v51 = vsel %vm260_vm2, %v299_v47, %v303_v48  ;;  %v704_v57 = vrot.slane %v2698_v55, 1  ;;  %v528_v58 = vrot.slane %v2614_v5, 1  ;;  %v706_v0 = vrot.slane %v2526_v61, 1  ;;  %v2524_v41 = vld [vmem:[%s3375_s1 + $0x88] ss:$0 sps:$4 sm:$0xff]  }
  0x1b   : > { %v272_v31 = vsel %vm260_vm2, %v267_v27, %v271_v25  ;;  %2248 = vmatprep.subr.bf16.mxu1 %v2550_v1  ;;  %v527_v54 = vsel %vm524_vm4, %v525_v49, %v526_v50  ;;  %v530_v9 = vrot.slane %v2617_v6, 1  ;;  %v739_v10 = vsel %vm336_vm0, %v2512_v8, 0  ;;  %v2519_v49 = vld [vmem:[%s3375_s1 + $0x6c] sm:$0xff]  }
  0x1c   : > { %2227 = vmatmul.mubr.msk.bf16.vlgmr.msra.gmra.mrb[0].mxu0 %vm320_vm3, %v272_v31  ;;  %v2715_v60 = vsel %vm524_vm4, %v702_v56, %v704_v57  ;;  %v529_v2 = vsel %vm524_vm4, %v526_v50, %v528_v58  ;;  %v2727_v3 = vsel %vm524_vm4, %v704_v57, %v706_v0  ;;  %v534_v19 = vrot.slane %v2655_v34, 1  ;;  %v2523_v50 = vld [vmem:[%s3375_s1 + $0x74] ss:$0 sps:$4 sm:$0xff]  }
  0x1d   : > { %2273 = vmatpush3.bf16.msra.mxu0 %v2502_v28  ;;  %2230 = vmatprep.mubr.msk.bf16.mxu0 %vm2551_vm1, %v2550_v1  ;;  %v531_v11 = vsel %vm524_vm4, %v528_v58, %v530_v9  ;;  %v844_v22 = vshrl.u32 %v2766_v18, 16  ;;  %v847_v23 = vshll.u32 %v2766_v18, 16  ;;  %v2780_v28 = vld [vmem:[%s2611_s26 + $0x14] sm:$0xff]   ;;  %v862_v39 = vshrl.u32 %v2694_v53, 16 }
  0x1e   : > { %2274 = vmatprep.subr.bf16.mxu0 %v2550_v1  ;;  %2249 = vmatpush3.bf16.msra.mxu1 %v2501_v30  ;;  %v853_v31 = vshrl.u32 %v2780_v28, 16  ;;  %v856_v32 = vshll.u32 %v2780_v28, 16  ;;  %v1229_v47 = vsel %vm336_vm0, %v2524_v41, 0  ;;  %v700_v48 = vrot.slane %v2780_v28, 1 }
  0x1f   : > { %2250 = vmatprep.subr.bf16.mxu1 %v2550_v1  ;;  %v846_v26 = vrot.slane %v844_v22, 1  ;;  %v849_v27 = vrot.slane %v847_v23, 2  ;;  %v1057_v58 = vsel %vm336_vm0, %v2523_v50, 0  ;;  %v2539_v41 = vld [vmem:[%s2611_s26 + $0x30] ss:$0 sps:$4 sm:$0x33]  }
  0x20   : > { %v855_v34 = vrot.slane %v853_v31, 1  ;;  %v858_v35 = vrot.slane %v856_v32, 2  ;;  %v1018_v32 = vrot.slane %v2780_v28, 2 }
  0x21   : > { %2275 = vmatpush3.bf16.msra.mxu0 %v2505_v37  ;;  %2239 = vmatmul.mubr.msk.bf16.gmra.mrb[4].mxu1 %vm320_vm3, %v296_v40  ;;  %v850_v30 = vor.u32 %v849_v27, %v846_v26  ;;  %v698_v37 = vrot.slane %v2766_v18, 1  ;;  %v865_v40 = vshll.u32 %v2694_v53, 16  ;;  %v2535_v26 = vld [vmem:[%s3375_s1 + $0xa8] sm:$0xff]  }
  0x22   : > { %2276 = vmatprep.subr.bf16.mxu0 %v2550_v1  ;;  %2242 = vmatprep.mubr.msk.bf16.mxu1 %vm2551_vm1, %v2550_v1  ;;  %v859_v38 = vor.u32 %v858_v35, %v855_v34  ;;  %v2530_v27 = vld [vmem:[%s3375_s1 + $0x8c] sm:$0xff]  }
  0x23   : > { %2251 = vmatpush3.bf16.msra.mxu1 %v439_v43  ;;  %v2516_v43 = vld [vmem:[%s3375_s1 + $0x64] sm:$0xff]   ;;  %v701_v57 = vsel %vm524_vm4, %v698_v37, %v700_v48 }
  0x24   : > { %2231 = vmatmul.mubr.msk.bf16.gmra.mrb[4].mxu0 %vm320_vm3, %v280_v45  ;;  %2298 = vmatprep.subr.bf16.mxu1 %v2550_v1  ;;  %v860_v44 = vsel %vm834_vm5, %v850_v30, %v859_v38  ;;  %v864_v45 = vrot.slane %v862_v39, 1 }
  0x25   : > { %2277 = vmatpush3.bf16.msra.mxu0 %v567_v46  ;;  %2278 = vmatprep.mubr.msk.bf16.mxu0 %vm2551_vm1, %v2550_v1  ;;  %v867_v46 = vrot.slane %v865_v40, 2 }
  0x26   : > { %2324 = vmatprep.subr.bf16.mxu0 %v2550_v1 }
  0x29   : > { %2243 = vmatmul.mubr.msk.bf16.gmra.mrb[8].mxu1 %vm320_vm3, %v304_v51  ;;  %v868_v51 = vor.u32 %v867_v46, %v864_v45 }
  0x2a   : > { %2252 = vmatprep.mubr.msk.bf16.mxu1 %vm2551_vm1, %v2550_v1 }
  0x2c   : > { %2279 = vmatmul.mubr.msk.bf16.vlgmr.msra.gmra.mrb[8].mxu0 %vm320_vm3, %v527_v54  ;;  %v874_v54 = vshll.u32 %v2698_v55, 16 }
  0x2d   : > { %2325 = vmatpush3.bf16.msra.mxu0 %v2509_v52  ;;  %2282 = vmatprep.mubr.msk.bf16.mxu0 %vm2551_vm1, %v2550_v1  ;;  %v871_v52 = vshrl.u32 %v2698_v55, 16 }
  0x2e   : > { %2326 = vmatprep.subr.bf16.mxu0 %v2550_v1  ;;  %v876_v62 = vrot.slane %v874_v54, 2 }
  0x2f   : > { %v873_v61 = vrot.slane %v871_v52, 1 }
  0x31   : > { %2327 = vmatpush3.bf16.msra.mxu0 %v2511_v59  ;;  %2253 = vmatmul.mubr.msk.bf16.vlgmr.msra.gmra.mrb[12].mxu1 %vm320_vm3, %v2626_v12  ;;  %v532_v12 = vrot.slane %v2632_v14, 1  ;;  %v869_v59 = vsel %vm834_vm5, %v859_v38, %v868_v51  ;;  %v877_v0 = vor.u32 %v876_v62, %v873_v61  ;;  %v1020_v38 = vrot.slane %v2694_v53, 2 }
  0x32   : > { %2328 = vmatprep.subr.bf16.mxu0 %v2550_v1  ;;  %2299 = vmatpush3.bf16.msra.mxu1 %v2508_v63  ;;  %v2841_v63 = vld [vmem:[%s2611_s26 + $0x2c] ss:$0 sps:$4 sm:$0x33]   ;;  %v1022_v53 = vrot.slane %v2698_v55, 2 }
  0x33   : > { %2256 = vmatprep.mubr.msk.bf16.mxu1 %vm2551_vm1, %v2550_v1  ;;  %2300 = vmatprep.subr.bf16.mxu1 %v2550_v1  ;;  %v533_v17 = vsel %vm524_vm4, %v530_v9, %v532_v12  ;;  %v535_v24 = vsel %vm524_vm4, %v532_v12, %v534_v19  ;;  %v878_v8 = vsel %vm834_vm5, %v868_v51, %v877_v0  ;;  %v1142_v12 = vld [vmem:[%s2611_s26 + $0x8] sm:$0xc]  ;;  %v1004_v19 = vld [vmem:[%s2611_s26 + $0x4] sm:$0xc] }
  0x34   : > { %2283 = vmatmul.mubr.msk.bf16.gmra.mrb[12].mxu0 %vm320_vm3, %v529_v2  ;;  %v880_v2 = vshrl.u32 %v2841_v63, 16  ;;  %v2089_v22 = vcombine.low %v1004_v19, %v2761_v16  ;;  %v1021_v40 = vsel %vm1014_vm6, %v1018_v32, %v1020_v38 }
  0x35   : > { %2286 = vmatprep.mubr.msk.bf16.mxu0 %vm2551_vm1, %v2550_v1  ;;  %2329 = vmatpush3.bf16.msra.mxu0 %v919_v4  ;;  %v883_v4 = vshll.u32 %v2841_v63, 16 }
  0x36   : > { %2376 = vmatprep.subr.bf16.mxu0 %v2550_v1  ;;  %2301 = vmatpush3.bf16.msra.mxu1 %v2510_v7  ;;  %v703_v7 = vsel %vm524_vm4, %v700_v48, %v702_v56  ;;  %v882_v9 = vrot.slane %v880_v2, 1 }
  0x37   : > { %2302 = vmatprep.subr.bf16.mxu1 %v2550_v1 }
  0x39   : > { %2257 = vmatmul.mubr.msk.bf16.gmra.mrb[16].mxu1 %vm320_vm3, %v2629_v13  ;;  %v2056_v13 = vcombine.low %v652_v15, %v2761_v16  ;;  %v2864_v15 = vld [vmem:[%s2611_s26 + $0xc] sm:$0xf] }
  0x3a   : > { %2260 = vmatprep.mubr.msk.bf16.mxu1 %vm2551_vm1, %v2550_v1  ;;  %2303 = vmatpush3.bf16.msra.mxu1 %v739_v10  ;;  %v885_v10 = vrot.slane %v883_v4, 2 }
  0x3b   : > { %2350 = vmatprep.subr.bf16.mxu1 %v2550_v1  ;;  %v836_v20 = vshrl.u32 %v2056_v13, 16  ;;  %v839_v21 = vshll.u32 %v2056_v13, 16  ;;  %v697_v36 = vrot.slane %v2056_v13, 1  ;;  %v2871_v13 = vld [vmem:[%s2611_s26 + $0x10] sm:$0xff]  }
  0x3c   : > { %2287 = vmatmul.mubr.msk.bf16.gmra.mrb[16].mxu0 %vm320_vm3, %v531_v11  ;;  %v886_v11 = vor.u32 %v885_v10, %v882_v9  ;;  %v1337_v50 = vshll.u32 %v2871_v13, 16  ;;  %v1506_v52 = vrot.slane %v2871_v13, 3 }
  0x3d   : > { %2290 = vmatprep.mubr.msk.bf16.mxu0 %vm2551_vm1, %v2550_v1  ;;  %v838_v25 = vrot.slane %v836_v20, 1  ;;  %v699_v42 = vsel %vm524_vm4, %v697_v36, %v698_v37  ;;  %v2937_v37 = vld [vmem:[%s2611_s26 + $0x28] sm:$0xff]  }
  0x3e   : > { %v887_v56 = vsel %vm834_vm5, %v877_v0, %v886_v11  ;;  %v1194_v39 = vrot.slane %v2937_v37, 2  ;;  %v1339_v61 = vrot.slane %v1337_v50, 3 }
  0x41   : > { %2261 = vmatmul.mubr.msk.bf16.gmra.mrb[20].mxu1 %vm320_vm3, %v2614_v5  ;;  %v841_v5 = vrot.slane %v839_v21, 2  ;;  %v1188_v21 = vrot.slane %v2871_v13, 2 }
  0x42   : > { %2264 = vmatprep.mubr.msk.bf16.mxu1 %vm2551_vm1, %v2550_v1 }
  0x43   : > { %v842_v29 = vor.u32 %v841_v5, %v838_v25  ;;  %v1015_v25 = vrot.slane %v2089_v22, 2  ;;  %v1016_v5 = vrot.slane %v2766_v18, 2 }
  0x44   : > { %2291 = vmatmul.mubr.msk.bf16.gmra.mrb[20].mxu0 %vm320_vm3, %v533_v17  ;;  %v2868_v17 = vcombine.low %v1142_v12, %v2864_v15 }
  0x45   : > { %2294 = vmatprep.mubr.msk.bf16.mxu0 %vm2551_vm1, %v2550_v1  ;;  %v851_v33 = vsel %vm834_vm5, %v842_v29, %v850_v30  ;;  %v1017_v18 = vsel %vm1014_vm6, %v1015_v25, %v1016_v5  ;;  %v2913_v30 = vld [vmem:[%s2611_s26 + $0x20] sm:$0xff]   ;;  %v1019_v28 = vsel %vm1014_vm6, %v1016_v5, %v1018_v32 }
  0x46   : > { %v1187_v20 = vrot.slane %v2868_v17, 2  ;;  %v1192_v34 = vrot.slane %v2913_v30, 2  ;;  %v1326_v55 = vshrl.u32 %v2868_v17, 16  ;;  %v1329_v48 = vshll.u32 %v2868_v17, 16 }
  0x47   : > { %v1510_v17 = vrot.slane %v2913_v30, 3 }
  0x48   : > { %v1189_v23 = vsel %vm1014_vm6, %v1187_v20, %v1188_v21 }
  0x49   : > { %2265 = vmatmul.mubr.msk.bf16.gmra.mrb[24].mxu1 %vm320_vm3, %v2617_v6  ;;  %v2517_v6 = vld [vmem:[%s3375_s1 + $0x78] sm:$0xff]  }
  0x4a   : > { %2268 = vmatprep.mubr.msk.bf16.mxu1 %vm2551_vm1, %v2550_v1 }
  0x4c   : > { %2295 = vmatmul.mubr.msk.bf16.gmra.mrb[24].mxu0 %vm320_vm3, %v535_v24  ;;  %v2889_v24 = vld [vmem:[%s2611_s26 + $0x18] sm:$0xff]  }
  0x4d   : > { %2330 = vmatprep.mubr.msk.bf16.mxu0 %vm2551_vm1, %v2550_v1  ;;  %v1190_v16 = vrot.slane %v2889_v24, 2  ;;  %v1343_v2 = vshrl.u32 %v2889_v24, 16  ;;  %v1346_v4 = vshll.u32 %v2889_v24, 16 }
  0x4f   : > { %v1191_v29 = vsel %vm1014_vm6, %v1188_v21, %v1190_v16  ;;  %v1193_v36 = vsel %vm1014_vm6, %v1190_v16, %v1192_v34  ;;  %v1345_v9 = vrot.slane %v1343_v2, 2  ;;  %v1348_v10 = vrot.slane %v1346_v4, 3 }
  0x51   : > { %2269 = vmatmul.mubr.msk.bf16.gmra.mrb[28].mxu1 %vm320_vm3, %v2632_v14  ;;  %v2521_v14 = vld [vmem:[%s3375_s1 + $0x80] sm:$0xff]   ;;  %v1349_v12 = vor.u32 %v1348_v10, %v1345_v9 }
  0x52   : > { %2304 = vmatprep.mubr.msk.bf16.mxu1 %vm2551_vm1, %v2550_v1 }
  0x54   : > { %2331 = vmatmul.mubr.msk.bf16.vlgmr.msra.gmra.mrb[28].mxu0 %vm320_vm3, %v851_v33  ;;  %v2533_v33 = vld [vmem:[%s3375_s1 + $0x94] sm:$0xff]  }
  0x55   : > { %2377 = vmatpush3.bf16.msra.mxu0 %v2517_v6  ;;  %2334 = vmatprep.mubr.msk.bf16.mxu0 %vm2551_vm1, %v2550_v1  ;;  %v2537_v6 = vld [vmem:[%s3375_s1 + $0x9c] ss:$0 sps:$4 sm:$0xff]  }
  0x56   : > { %2378 = vmatprep.subr.bf16.mxu0 %v2550_v1  ;;  %v1409_v35 = vsel %vm336_vm0, %v2537_v6, 0 }
  0x59   : > { %2379 = vmatpush3.bf16.msra.mxu0 %v2521_v14  ;;  %2305 = vmatmul.mubr.msk.bf16.vlgmr.msra.gmra.mrb[32].mxu1 %vm320_vm3, %v699_v42  ;;  %v1195_v14 = vsel %vm1014_vm6, %v1192_v34, %v1194_v39  ;;  %v1196_v42 = vrot.slane %v2539_v41, 2 }
  0x5a   : > { %2380 = vmatprep.subr.bf16.mxu0 %v2550_v1  ;;  %2351 = vmatpush3.bf16.msra.mxu1 %v2516_v43  ;;  %v1494_v43 = vld [vmem:[%s2611_s26 + $0x8] sm:$0x8] }
  0x5b   : > { %2308 = vmatprep.mubr.msk.bf16.mxu1 %vm2551_vm1, %v2550_v1  ;;  %2352 = vmatprep.subr.bf16.mxu1 %v2550_v1  ;;  %v1197_v45 = vsel %vm1014_vm6, %v1194_v39, %v1196_v42  ;;  %v2136_v46 = vcombine.low %v1494_v43, %v2864_v15  ;;  %v1352_v15 = vshrl.u32 %v2913_v30, 16 }
  0x5c   : > { %2335 = vmatmul.mubr.msk.bf16.gmra.mrb[32].mxu0 %vm320_vm3, %v860_v44  ;;  %v1023_v44 = vsel %vm1014_vm6, %v1020_v38, %v1022_v53 }
  0x5d   : > { %2338 = vmatprep.mubr.msk.bf16.mxu0 %vm2551_vm1, %v2550_v1  ;;  %2381 = vmatpush3.bf16.msra.mxu0 %v1229_v47  ;;  %v1024_v47 = vrot.slane %v2841_v63, 2  ;;  %v1505_v51 = vrot.slane %v2136_v46, 3  ;;  %v1354_v19 = vrot.slane %v1352_v15, 2 }
  0x5e   : > { %2428 = vmatprep.subr.bf16.mxu0 %v2550_v1  ;;  %2353 = vmatpush3.bf16.msra.mxu1 %v2519_v49  ;;  %v1334_v49 = vshrl.u32 %v2871_v13, 16 }
  0x5f   : > { %2354 = vmatprep.subr.bf16.mxu1 %v2550_v1  ;;  %v1025_v54 = vsel %vm1014_vm6, %v1022_v53, %v1024_v47  ;;  %v1507_v62 = vsel %vm1504_vm7, %v1505_v51, %v1506_v52 }
  0x61   : > { %2309 = vmatmul.mubr.msk.bf16.gmra.mrb[36].mxu1 %vm320_vm3, %v701_v57  ;;  %v1328_v57 = vrot.slane %v1326_v55, 2 }
  0x62   : > { %2312 = vmatprep.mubr.msk.bf16.mxu1 %vm2551_vm1, %v2550_v1  ;;  %2355 = vmatpush3.bf16.msra.mxu1 %v1057_v58  ;;  %v1331_v58 = vrot.slane %v1329_v48, 3 }
  0x63   : > { %2402 = vmatprep.subr.bf16.mxu1 %v2550_v1 }
  0x64   : > { %2339 = vmatmul.mubr.msk.bf16.gmra.mrb[36].mxu0 %vm320_vm3, %v869_v59  ;;  %v1336_v59 = vrot.slane %v1334_v49, 2  ;;  %v1332_v63 = vor.u32 %v1331_v58, %v1328_v57 }
  0x65   : > { %2342 = vmatprep.mubr.msk.bf16.mxu0 %vm2551_vm1, %v2550_v1 }
  0x66   : > { %v1340_v0 = vor.u32 %v1339_v61, %v1336_v59 }
  0x68   : > { %v1350_v13 = vsel %vm1324_vm8, %v1340_v0, %v1349_v12 }
  0x69   : > { %2313 = vmatmul.mubr.msk.bf16.gmra.mrb[40].mxu1 %vm320_vm3, %v703_v7  ;;  %v1508_v7 = vrot.slane %v2889_v24, 3  ;;  %v1512_v24 = vrot.slane %v2937_v37, 3 }
  0x6a   : > { %2316 = vmatprep.mubr.msk.bf16.mxu1 %vm2551_vm1, %v2550_v1 }
  0x6b   : > { %v1509_v11 = vsel %vm1504_vm7, %v1506_v52, %v1508_v7  ;;  %v1511_v21 = vsel %vm1504_vm7, %v1508_v7, %v1510_v17 }
  0x6c   : > { %2343 = vmatmul.mubr.msk.bf16.gmra.mrb[40].mxu0 %vm320_vm3, %v878_v8  ;;  %v1341_v8 = vsel %vm1324_vm8, %v1332_v63, %v1340_v0 }
  0x6d   : > { %2346 = vmatprep.mubr.msk.bf16.mxu0 %vm2551_vm1, %v2550_v1 }
  0x71   : > { %2317 = vmatmul.mubr.msk.bf16.gmra.mrb[44].mxu1 %vm320_vm3, %v2715_v60  ;;  %v2531_v60 = vld [vmem:[%s3375_s1 + $0xa0] sm:$0xff]  }
  0x72   : > { %2320 = vmatprep.mubr.msk.bf16.mxu1 %vm2551_vm1, %v2550_v1 }
  0x74   : > { %2347 = vmatmul.mubr.msk.bf16.gmra.mrb[44].mxu0 %vm320_vm3, %v887_v56  ;;  %v1355_v56 = vshll.u32 %v2913_v30, 16 }
  0x75   : > { %2382 = vmatprep.mubr.msk.bf16.mxu0 %vm2551_vm1, %v2550_v1 }
  0x76   : > { %v1357_v20 = vrot.slane %v1355_v56, 3 }
  0x78   : > { %v1358_v22 = vor.u32 %v1357_v20, %v1354_v19 }
  0x79   : > { %2321 = vmatmul.mubr.msk.bf16.gmra.mrb[48].mxu1 %vm320_vm3, %v2727_v3  ;;  %v2538_v3 = vld [vmem:[%s3375_s1 + $0xb0] ss:$0 sps:$4 sm:$0xff]  }
  0x7a   : > { %2356 = vmatprep.mubr.msk.bf16.mxu1 %vm2551_vm1, %v2550_v1  ;;  %v1547_v31 = vsel %vm336_vm0, %v2538_v3, 0  ;;  %v1359_v25 = vsel %vm1324_vm8, %v1349_v12, %v1358_v22  ;;  %v1513_v3 = vsel %vm1504_vm7, %v1510_v17, %v1512_v24 }
  0x7c   : > { %2383 = vmatmul.mubr.msk.bf16.vlgmr.msra.gmra.mrb[48].mxu0 %vm320_vm3, %v1189_v23  ;;  %v1361_v23 = vshrl.u32 %v2937_v37, 16 }
  0x7d   : > { %2429 = vmatpush3.bf16.msra.mxu0 %v2531_v60  ;;  %2386 = vmatprep.mubr.msk.bf16.mxu0 %vm2551_vm1, %v2550_v1  ;;  %v1364_v60 = vshll.u32 %v2937_v37, 16 }
  0x7e   : > { %2430 = vmatprep.subr.bf16.mxu0 %v2550_v1  ;;  %v1363_v5 = vrot.slane %v1361_v23, 2 }
  0x7f   : > { %v1366_v16 = vrot.slane %v1364_v60, 3 }
  0x81   : > { %2431 = vmatpush3.bf16.msra.mxu0 %v2535_v26  ;;  %2357 = vmatmul.mubr.msk.bf16.vlgmr.msra.gmra.mrb[52].mxu1 %vm320_vm3, %v1017_v18  ;;  %v2541_v26 = vld [vmem:[%s2611_s26 + $0x30] ss:$0 sps:$4 sm:$0x77]   ;;  %v1367_v18 = vor.u32 %v1366_v16, %v1363_v5  ;;  %s2009_s26 = sshll.u32 %s3404_s16, 3 }
  0x82   : > { %2432 = vmatprep.subr.bf16.mxu0 %v2550_v1  ;;  %2403 = vmatpush3.bf16.msra.mxu1 %v2530_v27  ;;  %v1370_v27 = vshrl.u32 %v2541_v26, 16  ;;  %v1514_v30 = vrot.slane %v2541_v26, 3  ;;  %s3027_s5 = scalar_lea.vmem %s3378_s4, %s2009_s26 }
  0x83   : > { %2360 = vmatprep.mubr.msk.bf16.mxu1 %vm2551_vm1, %v2550_v1  ;;  %2404 = vmatprep.subr.bf16.mxu1 %v2550_v1  ;;  %1905 = vst.msk [vmem:[%s3027_s5 + $0x2] sm:$0x3f] %vm1904_vm9, %v2550_v1 }
  0x84   : > { %2387 = vmatmul.mubr.msk.bf16.gmra.mrb[52].mxu0 %vm320_vm3, %v1191_v29  ;;  %v1373_v29 = vshll.u32 %v2541_v26, 16  ;;  %v1372_v32 = vrot.slane %v1370_v27, 2  ;;  %v1515_v6 = vsel %vm1504_vm7, %v1512_v24, %v1514_v30 }
  0x85   : > { %2390 = vmatprep.mubr.msk.bf16.mxu0 %vm2551_vm1, %v2550_v1  ;;  %2433 = vmatpush3.bf16.msra.mxu0 %v1547_v31  ;;  %v1368_v31 = vsel %vm1324_vm8, %v1358_v22, %v1367_v18 }
  0x86   : > { %2405 = vmatpush3.bf16.msra.mxu1 %v2533_v33  ;;  %v1375_v33 = vrot.slane %v1373_v29, 3 }
  0x87   : > { %2406 = vmatprep.subr.bf16.mxu1 %v2550_v1 }
  0x88   : > { %v1376_v34 = vor.u32 %v1375_v33, %v1372_v32 }
  0x89   : > { %2361 = vmatmul.mubr.msk.bf16.gmra.mrb[56].mxu1 %vm320_vm3, %v1019_v28 }
  0x8a   : > { %2364 = vmatprep.mubr.msk.bf16.mxu1 %vm2551_vm1, %v2550_v1  ;;  %2407 = vmatpush3.bf16.msra.mxu1 %v1409_v35  ;;  %v1377_v28 = vsel %vm1324_vm8, %v1367_v18, %v1376_v34 }
  0x8c   : > { %2391 = vmatmul.mubr.msk.bf16.gmra.mrb[56].mxu0 %vm320_vm3, %v1193_v36 }
  0x8d   : > { %2394 = vmatprep.mubr.msk.bf16.mxu0 %vm2551_vm1, %v2550_v1 }
  0x91   : > { %2365 = vmatmul.mubr.msk.bf16.gmra.mrb[60].mxu1 %vm320_vm3, %v1021_v40 }
  0x92   : > { %2368 = vmatprep.mubr.msk.bf16.mxu1 %vm2551_vm1, %v2550_v1 }
  0x94   : > { %2395 = vmatmul.mubr.msk.bf16.gmra.mrb[60].mxu0 %vm320_vm3, %v1195_v14 }
  0x95   : > { %2398 = vmatprep.mubr.msk.bf16.mxu0 %vm2551_vm1, %v2550_v1 }
  0x99   : > { %2369 = vmatmul.mubr.msk.bf16.gmra.mrb[64].mxu1 %vm320_vm3, %v1023_v44 }
  0x9a   : > { %2372 = vmatprep.mubr.msk.bf16.mxu1 %vm2551_vm1, %v2550_v1 }
  0x9c   : > { %2399 = vmatmul.mubr.msk.bf16.gmra.mrb[64].mxu0 %vm320_vm3, %v1197_v45 }
  0x9d   : > { %2434 = vmatprep.mubr.msk.bf16.mxu0 %vm2551_vm1, %v2550_v1 }
  0xa1   : > { %2373 = vmatmul.mubr.msk.bf16.gmra.mrb[68].mxu1 %vm320_vm3, %v1025_v54 }
  0xa2   : > { %2408 = vmatprep.mubr.msk.bf16.mxu1 %vm2551_vm1, %v2550_v1 }
  0xa4   : > { %2435 = vmatmul.mubr.msk.bf16.vlgmr.msra.gmra.mrb[68].mxu0 %vm320_vm3, %v1507_v62 }
  0xa5   : > { %2438 = vmatprep.mubr.msk.bf16.mxu0 %vm2551_vm1, %v2550_v1 }
  0xa9   : > { %2409 = vmatmul.mubr.msk.bf16.vlgmr.msra.gmra.mrb[72].mxu1 %vm320_vm3, %v1341_v8 }
  0xaa   : > { %2412 = vmatprep.mubr.msk.bf16.mxu1 %vm2551_vm1, %v2550_v1 }
  0xac   : > { %2439 = vmatmul.mubr.msk.bf16.gmra.mrb[72].mxu0 %vm320_vm3, %v1509_v11 }
  0xad   : > { %2442 = vmatprep.mubr.msk.bf16.mxu0 %vm2551_vm1, %v2550_v1 }
  0xb1   : > { %2413 = vmatmul.mubr.msk.bf16.gmra.mrb[76].mxu1 %vm320_vm3, %v1350_v13 }
  0xb2   : > { %2416 = vmatprep.mubr.msk.bf16.mxu1 %vm2551_vm1, %v2550_v1 }
  0xb4   : > { %2443 = vmatmul.mubr.msk.bf16.gmra.mrb[76].mxu0 %vm320_vm3, %v1511_v21 }
  0xb5   : > { %2446 = vmatprep.mubr.msk.bf16.mxu0 %vm2551_vm1, %v2550_v1 }
  0xb9   : > { %2417 = vmatmul.mubr.msk.bf16.gmra.mrb[80].mxu1 %vm320_vm3, %v1359_v25 }
  0xba   : > { %2420 = vmatprep.mubr.msk.bf16.mxu1 %vm2551_vm1, %v2550_v1 }
  0xbc   : > { %2447 = vmatmul.mubr.msk.bf16.gmra.mrb[80].mxu0 %vm320_vm3, %v1513_v3 }
  0xbd   : > { %2450 = vmatprep.mubr.msk.bf16.mxu0 %vm2551_vm1, %v2550_v1 }
  0xc1   : > { %2421 = vmatmul.mubr.msk.bf16.gmra.mrb[84].mxu1 %vm320_vm3, %v1368_v31 }
  0xc2   : > { %2424 = vmatprep.mubr.msk.bf16.mxu1 %vm2551_vm1, %v2550_v1 }
  0xc4   : > { %2451 = vmatmul.mubr.msk.bf16.gmra.mrb[84].mxu0 %vm320_vm3, %v1515_v6 }
  0xc9   : > { %2425 = vmatmul.mubr.msk.bf16.gmra.mrb[88].mxu1 %vm320_vm3, %v1377_v28  ;;  %vm1840_vm3 = vcmask 523264  }
  0xec   : > { %v390_v35 = vpop.f32.mrb[0].mxu1 }
  0xed   : > { %v2236_v36 = vpop.f32.mrb[1].mxu1 }
  0xee   : > { %v393_v37 = vpop.f32.mrb[2].mxu1 }
  0xef   : > { %v374_v38 = vpop.f32.mrb[0].mxu0  ;;  %v2237_v39 = vpop.f32.mrb[3].mxu1 }
  0xf0   : > { %v2228_v40 = vpop.f32.mrb[1].mxu0 }
  0xf1   : > { %v377_v14 = vpop.f32.mrb[2].mxu0 }
  0xf2   : > { %v2229_v41 = vpop.f32.mrb[3].mxu0 }
  0xf4   : > { %v398_v53 = vpop.f32.mrb[4].mxu1 }
  0xf5   : > { %v2240_v42 = vpop.f32.mrb[5].mxu1 }
  0xf6   : > { %v401_v43 = vpop.f32.mrb[6].mxu1 }
  0xf7   : > { %v382_v44 = vpop.f32.mrb[4].mxu0  ;;  %v2241_v45 = vpop.f32.mrb[7].mxu1 }
  0xf8   : > { %v2232_v46 = vpop.f32.mrb[5].mxu0 }
  0xf9   : > { %v385_v47 = vpop.f32.mrb[6].mxu0 }
  0xfa   : > { %v2233_v55 = vpop.f32.mrb[7].mxu0 }
  0xfc   : > { %v406_v48 = vpop.f32.mrb[8].mxu1 }
  0xfd   : > { %v2244_v49 = vpop.f32.mrb[9].mxu1 }
  0xfe   : > { %v409_v50 = vpop.f32.mrb[10].mxu1 }
  0xff   : > { %v603_v51 = vpop.f32.mrb[8].mxu0  ;;  %v2245_v52 = vpop.f32.mrb[11].mxu1 }
 0x100   : > { %v2280_v54 = vpop.f32.mrb[9].mxu0 }
 0x101   : > { %v606_v57 = vpop.f32.mrb[10].mxu0 }
 0x102   : > { %v2281_v58 = vpop.f32.mrb[11].mxu0 }
 0x104   : > { %v475_v59 = vpop.f32.mrb[12].mxu1 }
 0x105   : > { %v476_v61 = vadd.f32 %v475_v59, %v374_v38  ;;  %v2254_v62 = vpop.f32.mrb[13].mxu1 }
 0x106   : > { %v478_v63 = vpop.f32.mrb[14].mxu1 }
 0x107   : > { %v611_v0 = vpop.f32.mrb[12].mxu0  ;;  %v479_v2 = vadd.f32 %v478_v63, %v377_v14  ;;  %v2255_v4 = vpop.f32.mrb[15].mxu1  ;;  %v642_v8 = vadd.f32 %v603_v51, %v476_v61 }
 0x108   : > { %v2284_v7 = vpop.f32.mrb[13].mxu0 }
 0x109   : > { %v614_v9 = vpop.f32.mrb[14].mxu0  ;;  %v643_v11 = vadd.f32 %v606_v57, %v479_v2 }
 0x10a   : > { %v2285_v10 = vpop.f32.mrb[15].mxu0 }
 0x10c   : > { %v483_v12 = vpop.f32.mrb[16].mxu1 }
 0x10d   : > { %v484_v15 = vadd.f32 %v483_v12, %v382_v44  ;;  %v2258_v56 = vpop.f32.mrb[17].mxu1 }
 0x10e   : > { %v486_v17 = vpop.f32.mrb[18].mxu1 }
 0x10f   : > { %v619_v13 = vpop.f32.mrb[16].mxu0  ;;  %v487_v19 = vadd.f32 %v486_v17, %v385_v47  ;;  %v2259_v20 = vpop.f32.mrb[19].mxu1  ;;  %v644_v22 = vadd.f32 %v611_v0, %v484_v15 }
 0x110   : > { %v2288_v21 = vpop.f32.mrb[17].mxu0 }
 0x111   : > { %v622_v23 = vpop.f32.mrb[18].mxu0  ;;  %v645_v24 = vadd.f32 %v614_v9, %v487_v19 }
 0x112   : > { %v2289_v60 = vpop.f32.mrb[19].mxu0 }
 0x114   : > { %v491_v25 = vpop.f32.mrb[20].mxu1 }
 0x115   : > { %v492_v5 = vadd.f32 %v491_v25, %v390_v35  ;;  %v2262_v16 = vpop.f32.mrb[21].mxu1 }
 0x116   : > { %v494_v26 = vpop.f32.mrb[22].mxu1 }
 0x117   : > { %v627_v3 = vpop.f32.mrb[20].mxu0  ;;  %v495_v18 = vadd.f32 %v494_v26, %v393_v37  ;;  %v2263_v27 = vpop.f32.mrb[23].mxu1  ;;  %v646_v30 = vadd.f32 %v619_v13, %v492_v5 }
 0x118   : > { %v2292_v29 = vpop.f32.mrb[21].mxu0 }
 0x119   : > { %v630_v31 = vpop.f32.mrb[22].mxu0  ;;  %v647_v33 = vadd.f32 %v622_v23, %v495_v18 }
 0x11a   : > { %v2293_v32 = vpop.f32.mrb[23].mxu0 }
 0x11c   : > { %v499_v6 = vpop.f32.mrb[24].mxu1 }
 0x11d   : > { %v500_v34 = vadd.f32 %v499_v6, %v398_v53  ;;  %v2266_v28 = vpop.f32.mrb[25].mxu1 }
 0x11e   : > { %v502_v36 = vpop.f32.mrb[26].mxu1 }
 0x11f   : > { %v635_v38 = vpop.f32.mrb[24].mxu0  ;;  %v503_v39 = vadd.f32 %v502_v36, %v401_v43  ;;  %v2267_v40 = vpop.f32.mrb[27].mxu1  ;;  %v648_v41 = vadd.f32 %v627_v3, %v500_v34 }
 0x120   : > { %v2296_v14 = vpop.f32.mrb[25].mxu0 }
 0x121   : > { %v638_v35 = vpop.f32.mrb[26].mxu0  ;;  %v649_v44 = vadd.f32 %v630_v31, %v503_v39 }
 0x122   : > { %v2297_v42 = vpop.f32.mrb[27].mxu0 }
 0x124   : > { %v507_v45 = vpop.f32.mrb[28].mxu1 }
 0x125   : > { %v508_v37 = vadd.f32 %v507_v45, %v406_v48  ;;  %v2270_v46 = vpop.f32.mrb[29].mxu1 }
 0x126   : > { %v510_v47 = vpop.f32.mrb[30].mxu1 }
 0x127   : > { %v955_v55 = vpop.f32.mrb[28].mxu0  ;;  %v511_v49 = vadd.f32 %v510_v47, %v409_v50  ;;  %v2271_v51 = vpop.f32.mrb[31].mxu1  ;;  %v650_v54 = vadd.f32 %v635_v38, %v508_v37 }
 0x128   : > { %v2332_v52 = vpop.f32.mrb[29].mxu0 }
 0x129   : > { %v958_v53 = vpop.f32.mrb[30].mxu0  ;;  %v651_v58 = vadd.f32 %v638_v35, %v511_v49 }
 0x12a   : > { %v2333_v57 = vpop.f32.mrb[31].mxu0 }
 0x12c   : > { %v775_v43 = vpop.f32.mrb[32].mxu1 }
 0x12d   : > { %v814_v59 = vadd.f32 %v775_v43, %v642_v8  ;;  %v2306_v61 = vpop.f32.mrb[33].mxu1 }
 0x12e   : > { %v778_v62 = vpop.f32.mrb[34].mxu1 }
 0x12f   : > { %v963_v63 = vpop.f32.mrb[32].mxu0  ;;  %v815_v0 = vadd.f32 %v778_v62, %v643_v11  ;;  %v2307_v2 = vpop.f32.mrb[35].mxu1  ;;  %v994_v48 = vadd.f32 %v955_v55, %v814_v59  ;;  %v1649_v59 = vlaneseq }
 0x130   : > { %v2336_v4 = vpop.f32.mrb[33].mxu0 }
 0x131   : > { %v966_v7 = vpop.f32.mrb[34].mxu0  ;;  %v995_v10 = vadd.f32 %v958_v53, %v815_v0 }
 0x132   : > { %v2337_v9 = vpop.f32.mrb[35].mxu0 }
 0x134   : > { %v783_v50 = vpop.f32.mrb[36].mxu1 }
 0x135   : > { %v816_v12 = vadd.f32 %v783_v50, %v644_v22  ;;  %v2310_v15 = vpop.f32.mrb[37].mxu1 }
 0x136   : > { %v786_v56 = vpop.f32.mrb[38].mxu1 }
 0x137   : > { %v971_v17 = vpop.f32.mrb[36].mxu0  ;;  %v817_v8 = vadd.f32 %v786_v56, %v645_v24  ;;  %v2311_v11 = vpop.f32.mrb[39].mxu1  ;;  %v996_v19 = vadd.f32 %v963_v63, %v816_v12 }
 0x138   : > { %v2340_v13 = vpop.f32.mrb[37].mxu0 }
 0x139   : > { %v974_v20 = vpop.f32.mrb[38].mxu0  ;;  %v997_v23 = vadd.f32 %v966_v7, %v817_v8  ;;  %v3043_v7 = vshrl.u32 %v1649_v59, 7 }
 0x13a   : > { %v2341_v21 = vpop.f32.mrb[39].mxu0 }
 0x13c   : > { %v791_v22 = vpop.f32.mrb[40].mxu1 }
 0x13d   : > { %v818_v60 = vadd.f32 %v791_v22, %v646_v30  ;;  %v2314_v25 = vpop.f32.mrb[41].mxu1  ;;  %v3051_v21 = vmul.u32.u64.low 3435973837, %v3043_v7  ;;  %v3052_v22 = vmul.u32.u64.high 3435973837, %v3043_v7, %v3051_v21 }
 0x13e   : > { %v794_v5 = vpop.f32.mrb[42].mxu1 }
 0x13f   : > { %v979_v16 = vpop.f32.mrb[40].mxu0  ;;  %v819_v26 = vadd.f32 %v794_v5, %v647_v33  ;;  %v2315_v3 = vpop.f32.mrb[43].mxu1  ;;  %v998_v27 = vadd.f32 %v971_v17, %v818_v60 }
 0x140   : > { %v2344_v18 = vpop.f32.mrb[41].mxu0 }
 0x141   : > { %v982_v29 = vpop.f32.mrb[42].mxu0  ;;  %v3031_v24 = vadd.f32 %v974_v20, %v819_v26 }
 0x142   : > { %v2345_v31 = vpop.f32.mrb[43].mxu0 }
 0x144   : > { %v799_v32 = vpop.f32.mrb[44].mxu1 }
 0x145   : > { %v820_v6 = vadd.f32 %v799_v32, %v648_v41  ;;  %v2318_v34 = vpop.f32.mrb[45].mxu1 }
 0x146   : > { %v802_v1 = vpop.f32.mrb[46].mxu1 }
 0x147   : > { %v987_v28 = vpop.f32.mrb[44].mxu0  ;;  %v821_v36 = vadd.f32 %v802_v1, %v649_v44  ;;  %v2319_v38 = vpop.f32.mrb[47].mxu1  ;;  %v3033_v30 = vadd.f32 %v979_v16, %v820_v6 }
 0x148   : > { %v2348_v39 = vpop.f32.mrb[45].mxu0  ;;  %v1666_v38 = vshrl.u32 %v3052_v22, 3 }
 0x149   : > { %v990_v40 = vpop.f32.mrb[46].mxu0  ;;  %v3035_v33 = vadd.f32 %v982_v29, %v821_v36  ;;  %v3068_v39 = vadd.s32 24, %v3043_v7 }
 0x14a   : > { %v2349_v14 = vpop.f32.mrb[47].mxu0 }
 0x14c   : > { %v807_v35 = vpop.f32.mrb[48].mxu1 }
 0x14d   : > { %v822_v42 = vadd.f32 %v807_v35, %v650_v54  ;;  %v2322_v45 = vpop.f32.mrb[49].mxu1  ;;  %v3074_v35 = vadd.s32 32, %v3043_v7 }
 0x14e   : > { %v810_v37 = vpop.f32.mrb[50].mxu1  ;;  %v1667_v45 = vmul.u32 10, %v1666_v38 }
 0x14f   : > { %v1265_v46 = vpop.f32.mrb[48].mxu0  ;;  %v823_v47 = vadd.f32 %v810_v37, %v651_v58  ;;  %v2323_v55 = vpop.f32.mrb[51].mxu1  ;;  %v3037_v49 = vadd.f32 %v987_v28, %v822_v42 }
 0x150   : > { %v2384_v41 = vpop.f32.mrb[49].mxu0 }
 0x151   : > { %v1268_v51 = vpop.f32.mrb[50].mxu0  ;;  %v3039_v52 = vadd.f32 %v990_v40, %v823_v47 }
 0x152   : > { %v2385_v44 = vpop.f32.mrb[51].mxu0 }
 0x154   : > { %v1093_v53 = vpop.f32.mrb[52].mxu1 }
 0x155   : > { %v1132_v57 = vadd.f32 %v1093_v53, %v994_v48  ;;  %v2358_v43 = vpop.f32.mrb[53].mxu1  ;;  %v1651_v48 = vadd.s32 8, %v3043_v7 }
 0x156   : > { %v1096_v61 = vpop.f32.mrb[54].mxu1 }
 0x157   : > { %v1273_v62 = vpop.f32.mrb[52].mxu0  ;;  %v1133_v63 = vadd.f32 %v1096_v61, %v995_v10  ;;  %v2359_v54 = vpop.f32.mrb[55].mxu1  ;;  %v3041_v2 = vadd.f32 %v1265_v46, %v1132_v57  ;;  %v3054_v25 = vmul.u32.u64.low 3435973837, %v1651_v48  ;;  %v3055_v5 = vmul.u32.u64.high 3435973837, %v1651_v48, %v3054_v25 }
 0x158   : > { %v2388_v0 = vpop.f32.mrb[53].mxu0  ;;  %v3080_v37 = vmul.u32.u64.low 3435973837, %v3068_v39  ;;  %v3081_v46 = vmul.u32.u64.high 3435973837, %v3068_v39, %v3080_v37  ;;  %v3086_v57 = vmul.u32.u64.low 3435973837, %v3074_v35  ;;  %v3087_v43 = vmul.u32.u64.high 3435973837, %v3074_v35, %v3086_v57 }
 0x159   : > { %v1276_v58 = vpop.f32.mrb[54].mxu0  ;;  %v3045_v9 = vadd.f32 %v1268_v51, %v1133_v63 }
 0x15a   : > { %v2389_v4 = vpop.f32.mrb[55].mxu0 }
 0x15c   : > { %v1101_v50 = vpop.f32.mrb[56].mxu1 }
 0x15d   : > { %v1134_v12 = vadd.f32 %v1101_v50, %v996_v19  ;;  %v2362_v15 = vpop.f32.mrb[57].mxu1  ;;  %v1652_v19 = vadd.s32 16, %v3043_v7 }
 0x15e   : > { %v1104_v56 = vpop.f32.mrb[58].mxu1 }
 0x15f   : > { %v1281_v17 = vpop.f32.mrb[56].mxu0  ;;  %v1135_v8 = vadd.f32 %v1104_v56, %v997_v23  ;;  %v2363_v11 = vpop.f32.mrb[59].mxu1  ;;  %v3048_v13 = vadd.f32 %v1273_v62, %v1134_v12  ;;  %v3060_v18 = vmul.u32.u64.low 3435973837, %v1652_v19  ;;  %v3061_v29 = vmul.u32.u64.high 3435973837, %v1652_v19, %v3060_v18 }
 0x160   : > { %v2392_v10 = vpop.f32.mrb[57].mxu0  ;;  %v3100_v56 = vadd.s32 48, %v3043_v7 }
 0x161   : > { %v1284_v20 = vpop.f32.mrb[58].mxu0  ;;  %v3058_v16 = vadd.f32 %v1276_v58, %v1135_v8  ;;  %v1688_v51 = vshrl.u32 %v3061_v29, 3  ;;  %v1668_v58 = vsub.s32 %v3043_v7, %v1667_v45  ;;  %v3104_v8 = vadd.s32 56, %v3043_v7 }
 0x162   : > { %v2393_v60 = vpop.f32.mrb[59].mxu0 }
 0x163   : > { %v1689_v12 = vmul.u32 10, %v1688_v51  ;;  %vm1770_vm10 = vcmp.ne.s32.totalorder %v1668_v58, 0  ;;  %vm1780_vm11 = vcmp.lt.s32.totalorder %v1668_v58, 0  ;;  %v1800_v22 = vadd.s32 10, %v1668_v58 }
 0x164   : > { %v1109_v26 = vpop.f32.mrb[60].mxu1  ;;  %v1710_v60 = vshrl.u32 %v3087_v43, 3  ;;  %vm3117_vm14 = vmand %vm1780_vm11, %vm1770_vm10 }
 0x165   : > { %v1136_v3 = vadd.f32 %v1109_v26, %v998_v27  ;;  %v2366_v23 = vpop.f32.mrb[61].mxu1  ;;  %v1677_v27 = vshrl.u32 %v3055_v5, 3  ;;  %v3111_v25 = vmul.u32.u64.low 3435973837, %v3100_v56  ;;  %v3112_v5 = vmul.u32.u64.high 3435973837, %v3100_v56, %v3111_v25 }
 0x166   : > { %v1112_v31 = vpop.f32.mrb[62].mxu1  ;;  %v1711_v38 = vmul.u32 10, %v1710_v60 }
 0x167   : > { %v1289_v32 = vpop.f32.mrb[60].mxu0  ;;  %v1137_v6 = vadd.f32 %v1112_v31, %v3031_v24  ;;  %v2367_v34 = vpop.f32.mrb[63].mxu1  ;;  %v3064_v28 = vadd.f32 %v1281_v17, %v1136_v3  ;;  %v3077_v24 = vadd.s32 40, %v3043_v7  ;;  %v1678_v41 = vmul.u32 10, %v1677_v27 }
 0x168   : > { %v2396_v1 = vpop.f32.mrb[61].mxu0  ;;  %v1699_v17 = vshrl.u32 %v3081_v46, 3  ;;  %v3171_v43 = vsub.s32 %v3074_v35, %v1711_v38 }
 0x169   : > { %v1292_v36 = vpop.f32.mrb[62].mxu0  ;;  %v3071_v14 = vadd.f32 %v1284_v20, %v1137_v6  ;;  %v3091_v63 = vmul.u32.u64.low 3435973837, %v3077_v24  ;;  %v3092_v54 = vmul.u32.u64.high 3435973837, %v3077_v24, %v3091_v63  ;;  %v1679_v50 = vsub.s32 %v1651_v48, %v1678_v41  ;;  %v3157_v41 = vld [vmem:[%s3376_s2] ss:$0 sm:$0xff] }
 0x16a   : > { %v2397_v40 = vpop.f32.mrb[63].mxu0  ;;  %v3107_v48 = vsub.s32 %v1652_v19, %v1689_v12  ;;  %v3131_v6 = vmul.u32.u64.low 3435973837, %v3104_v8  ;;  %v3132_v34 = vmul.u32.u64.high 3435973837, %v3104_v8, %v3131_v6  ;;  %vm1774_vm8 = vcmp.ne.s32.totalorder %v3171_v43, 0 }
 0x16b   : > { %vm1771_vm12 = vcmp.ne.s32.totalorder %v1679_v50, 0  ;;  %vm1781_vm13 = vcmp.lt.s32.totalorder %v1679_v50, 0  ;;  %v1801_v23 = vadd.s32 10, %v1679_v50  ;;  %v1721_v18 = vshrl.u32 %v3092_v54, 3 }
 0x16c   : > { %v1117_v42 = vpop.f32.mrb[64].mxu1  ;;  %vm3126_vm15 = vmand %vm1781_vm13, %vm1771_vm12  ;;  %vm1772_vm0 = vcmp.ne.s32.totalorder %v3107_v48, 0  ;;  %vm1782_vm1 = vcmp.lt.s32.totalorder %v3107_v48, 0  ;;  %v1810_v40 = vsel %vm3117_vm14, %v1800_v22, %v1668_v58  ;;  %vm1784_vm9 = vcmp.lt.s32.totalorder %v3171_v43, 0 }
 0x16d   : > { %v1138_v47 = vadd.f32 %v1117_v42, %v3033_v30  ;;  %v2370_v55 = vpop.f32.mrb[65].mxu1  ;;  %v1811_v27 = vsel %vm3126_vm15, %v1801_v23, %v1679_v50  ;;  %v3143_v42 = vadd.s32 10, %v3107_v48  ;;  %v1722_v45 = vmul.u32 10, %v1721_v18  ;;  %vm3146_vm2 = vmand %vm1782_vm1, %vm1772_vm0 }
 0x16e   : > { %v1120_v44 = vpop.f32.mrb[66].mxu1  ;;  %vm3162_vm4 = vcmp.lt.s32.totalorder %v1810_v40, 8  ;;  %vm3166_vm5 = vcmp.lt.s32.totalorder %v1811_v27, 8  ;;  %vm3235_vm13 = vmand %vm1784_vm9, %vm1774_vm8 }
 0x16f   : > { %v1297_v53 = vpop.f32.mrb[64].mxu0  ;;  %v1139_v59 = vadd.f32 %v1120_v44, %v3035_v33  ;;  %v2371_v61 = vpop.f32.mrb[67].mxu1  ;;  %v3094_v0 = vadd.f32 %v1289_v32, %v1138_v47  ;;  %v3160_v44 = vadd.s32 64, %v3043_v7  ;;  %v1812_v54 = vsel %vm3146_vm2, %v3143_v42, %v3107_v48 }
 0x170   : > { %v2400_v62 = vpop.f32.mrb[65].mxu0  ;;  %v3180_v58 = vsub.s32 %v3077_v24, %v1722_v45  ;;  %vm1822_vm15 = vcmp.lt.s32.totalorder %v1812_v54, 8 }
 0x171   : > { %v1300_v30 = vpop.f32.mrb[66].mxu0  ;;  %v3097_v15 = vadd.f32 %v1292_v36, %v1139_v59  ;;  %v1732_v59 = vshrl.u32 %v3112_v5, 3 }
 0x172   : > { %v2401_v4 = vpop.f32.mrb[67].mxu0  ;;  %vm1775_vm10 = vcmp.ne.s32.totalorder %v3180_v58, 0  ;;  %vm1785_vm11 = vcmp.lt.s32.totalorder %v3180_v58, 0  ;;  %v3227_v23 = vadd.s32 10, %v3180_v58 }
 0x173   : > { %v3191_v4 = vadd.s32 72, %v3043_v7  ;;  %vm3250_vm14 = vmand %vm1785_vm11, %vm1775_vm10 }
 0x174   : > { %v1125_v33 = vpop.f32.mrb[68].mxu1 }
 0x175   : > { %v1140_v11 = vadd.f32 %v1125_v33, %v3037_v49  ;;  %v2374_v10 = vpop.f32.mrb[69].mxu1  ;;  %v3217_v25 = vmul.u32.u64.low 3435973837, %v3191_v4  ;;  %v3218_v5 = vmul.u32.u64.high 3435973837, %v3191_v4, %v3217_v25 }
 0x176   : > { %v1128_v20 = vpop.f32.mrb[70].mxu1  ;;  %v1733_v10 = vmul.u32 10, %v1732_v59  ;;  %v1815_v59 = vsel %vm3250_vm14, %v3227_v23, %v3180_v58 }
 0x177   : > { %v1583_v21 = vpop.f32.mrb[68].mxu0  ;;  %v1141_v26 = vadd.f32 %v1128_v20, %v3039_v52  ;;  %v2375_v3 = vpop.f32.mrb[71].mxu1  ;;  %v3122_v29 = vadd.f32 %v1297_v53, %v1140_v11  ;;  %v1700_v52 = vmul.u32 10, %v1699_v17  ;;  %vm1825_vm9 = vcmp.lt.s32.totalorder %v1815_v59, 8 }
 0x178   : > { %v2436_v19 = vpop.f32.mrb[69].mxu0  ;;  %v3195_v33 = vmul.u32.u64.low 3435973837, %v3160_v44  ;;  %v3196_v17 = vmul.u32.u64.high 3435973837, %v3160_v44, %v3195_v33 }
 0x179   : > { %v1586_v31 = vpop.f32.mrb[70].mxu0  ;;  %v3136_v36 = vadd.f32 %v1300_v30, %v1141_v26  ;;  %v3151_v47 = vsub.s32 %v3068_v39, %v1700_v52  ;;  %v1804_v19 = vadd.s32 10, %v3171_v43 }
 0x17a   : > { %v2437_v1 = vpop.f32.mrb[71].mxu0  ;;  %v1754_v39 = vshrl.u32 %v3196_v17, 3 }
 0x17b   : > { %vm1773_vm6 = vcmp.ne.s32.totalorder %v3151_v47, 0  ;;  %vm1783_vm7 = vcmp.lt.s32.totalorder %v3151_v47, 0  ;;  %v1803_v11 = vadd.s32 10, %v3151_v47 }
 0x17c   : > { %v1445_v37 = vpop.f32.mrb[72].mxu1  ;;  %vm3212_vm12 = vmand %vm1783_vm7, %vm1773_vm6 }
 0x17d   : > { %v1484_v55 = vadd.f32 %v1445_v37, %v3041_v2  ;;  %v2410_v51 = vpop.f32.mrb[73].mxu1  ;;  %v1813_v27 = vsel %vm3212_vm12, %v1803_v11, %v3151_v47 }
 0x17e   : > { %v1448_v57 = vpop.f32.mrb[74].mxu1  ;;  %vm1823_vm0 = vcmp.lt.s32.totalorder %v1813_v27, 8 }
 0x17f   : > { %v1591_v2 = vpop.f32.mrb[72].mxu0  ;;  %v1622_v61 = vadd.f32 %v1583_v21, %v1484_v55  ;;  %v1485_v62 = vadd.f32 %v1448_v57, %v3045_v9  ;;  %v2411_v63 = vpop.f32.mrb[75].mxu1  ;;  %v1743_v9 = vshrl.u32 %v3132_v34, 3 }
 0x180   : > { %v2440_v30 = vpop.f32.mrb[73].mxu0 }
 0x181   : > { %v1594_v35 = vpop.f32.mrb[74].mxu0  ;;  %v1639_v50 = vadd.f32 %v3157_v41, %v1622_v61  ;;  %v1623_v24 = vadd.f32 %v1586_v31, %v1485_v62  ;;  %v1744_v60 = vmul.u32 10, %v1743_v9  ;;  %v1765_v30 = vshrl.u32 %v3218_v5, 3 }
 0x182   : > { %v2441_v12 = vpop.f32.mrb[75].mxu0 }
 0x183   : > { %v1830_v7 = vsel %vm3162_vm4, %v1639_v50, 0.0  ;;  %1906 = vst.msk [vmem:[%s3185_s10] sm:$0xff] %vm1840_vm3, %v1639_v50  ;;  %v1640_v48 = vadd.f32 %v3157_v41, %v1623_v24  ;;  %v3257_v55 = vsub.s32 %v3104_v8, %v1744_v60  ;;  %v1755_v24 = vmul.u32 10, %v1754_v39 }
 0x184   : > { %v1868_v20 = vmul.f32 %v1830_v7, %v1830_v7  ;;  %v1453_v21 = vpop.f32.mrb[76].mxu1  ;;  %v1841_v18 = vsel %vm1840_vm3, %v1830_v7, 0.0 }
 0x185   : > { %v1831_v26 = vsel %vm3166_vm5, %v1640_v48, 0.0  ;;  %1907 = vst.msk [vmem:[%s3185_s10 + $0x8] sm:$0xff] %vm1840_vm3, %v1640_v48  ;;  %v1486_v3 = vadd.f32 %v1453_v21, %v3048_v13  ;;  %v2414_v49 = vpop.f32.mrb[77].mxu1  ;;  %v3240_v13 = vsub.s32 %v3100_v56, %v1733_v10  ;;  %vm1777_vm4 = vcmp.ne.s32.totalorder %v3257_v55, 0 }
 0x186   : > { %v1842_v31 = vsel %vm1840_vm3, %v1831_v26, 0.0  ;;  %v1869_v32 = vmul.f32 %v1831_v26, %v1831_v26  ;;  %v1456_v52 = vpop.f32.mrb[78].mxu1  ;;  %v1878_v56 = vsel %vm1840_vm3, %v1868_v20, 0.0  ;;  %vm1787_vm5 = vcmp.lt.s32.totalorder %v3257_v55, 0 }
 0x187   : > { %v1599_v6 = vpop.f32.mrb[76].mxu0  ;;  %v1843_v1 = vadd.f32 %v1842_v31, %v1841_v18  ;;  %v1624_v38 = vadd.f32 %v1591_v2, %v1486_v3  ;;  %v1487_v40 = vadd.f32 %v1456_v52, %v3058_v16  ;;  %v2415_v42 = vpop.f32.mrb[79].mxu1  ;;  %v1814_v2 = vsel %vm3235_vm13, %v1804_v19, %v3171_v43  ;;  %vm3301_vm8 = vmand %vm1787_vm5, %vm1777_vm4 }
 0x188   : > { %v2444_v45 = vpop.f32.mrb[77].mxu0  ;;  %v1879_v46 = vsel %vm1840_vm3, %v1869_v32, 0.0  ;;  %vm1776_vm1 = vcmp.ne.s32.totalorder %v3240_v13, 0  ;;  %vm1786_vm2 = vcmp.lt.s32.totalorder %v3240_v13, 0  ;;  %v3274_v62 = vadd.s32 10, %v3240_v13 }
 0x189   : > { %v1602_v16 = vpop.f32.mrb[78].mxu0  ;;  %v1880_v47 = vadd.f32 %v1879_v46, %v1878_v56  ;;  %v1641_v51 = vadd.f32 %v3157_v41, %v1624_v38  ;;  %v1625_v53 = vadd.f32 %v1594_v35, %v1487_v40  ;;  %vm1824_vm6 = vcmp.lt.s32.totalorder %v1814_v2, 8  ;;  %vm3291_vm7 = vmand %vm1786_vm2, %vm1776_vm1 }
 0x18a   : > { %v2445_v57 = vpop.f32.mrb[79].mxu0  ;;  %v1807_v26 = vadd.s32 10, %v3257_v55  ;;  %v1766_v3 = vmul.u32 10, %v1765_v30  ;;  %v3306_v31 = vsub.s32 %v3160_v44, %v1755_v24  ;;  %vm1866_vm5 = vcmask 516096  }
 0x18b   : > { %v1832_v8 = vsel %vm1822_vm15, %v1641_v51, 0.0  ;;  %1908 = vst.msk [vmem:[%s3185_s10 + $0x10] sm:$0xff] %vm1840_vm3, %v1641_v51  ;;  %v1642_v61 = vadd.f32 %v3157_v41, %v1625_v53 }
 0x18c   : > { %v1844_v63 = vsel %vm1840_vm3, %v1832_v8, 0.0  ;;  %v1870_v43 = vmul.f32 %v1832_v8, %v1832_v8  ;;  %v1461_v54 = vpop.f32.mrb[80].mxu1  ;;  %v1817_v44 = vsel %vm3301_vm8, %v1807_v26, %v3257_v55  ;;  %v1767_v40 = vsub.s32 %v3191_v4, %v1766_v3 }
 0x18d   : > { %v1845_v58 = vadd.f32 %v1844_v63, %v1843_v1  ;;  %v1833_v35 = vsel %vm1823_vm0, %v1642_v61, 0.0  ;;  %1909 = vst.msk [vmem:[%s3185_s10 + $0x18] sm:$0xff] %vm1840_vm3, %v1642_v61  ;;  %v1488_v9 = vadd.f32 %v1461_v54, %v3064_v28  ;;  %v2418_v50 = vpop.f32.mrb[81].mxu1  ;;  %vm1778_vm10 = vcmp.ne.s32.totalorder %v3306_v31, 0 }
 0x18e   : > { %v1881_v12 = vsel %vm1840_vm3, %v1870_v43, 0.0  ;;  %v1846_v33 = vsel %vm1840_vm3, %v1833_v35, 0.0  ;;  %v1871_v17 = vmul.f32 %v1833_v35, %v1833_v35  ;;  %v1464_v11 = vpop.f32.mrb[82].mxu1  ;;  %vm1788_vm11 = vcmp.lt.s32.totalorder %v3306_v31, 0 }
 0x18f   : > { %v1607_v10 = vpop.f32.mrb[80].mxu0  ;;  %v1882_v7 = vadd.f32 %v1881_v12, %v1880_v47  ;;  %v1847_v48 = vadd.f32 %v1846_v33, %v1845_v58  ;;  %v1626_v20 = vadd.f32 %v1599_v6, %v1488_v9  ;;  %v1489_v21 = vadd.f32 %v1464_v11, %v3071_v14  ;;  %v2419_v22 = vpop.f32.mrb[83].mxu1  ;;  %vm3335_vm0 = vmand %vm1788_vm11, %vm1778_vm10 }
 0x190   : > { %v2448_v60 = vpop.f32.mrb[81].mxu0  ;;  %v1883_v28 = vsel %vm1840_vm3, %v1871_v17, 0.0  ;;  %v1816_v6 = vsel %vm3291_vm7, %v3274_v62, %v3240_v13  ;;  %vm1779_vm13 = vcmp.ne.s32.totalorder %v1767_v40, 0  ;;  %vm1789_vm14 = vcmp.lt.s32.totalorder %v1767_v40, 0 }
 0x191   : > { %v1610_v5 = vpop.f32.mrb[82].mxu0  ;;  %v1884_v49 = vadd.f32 %v1883_v28, %v1882_v7  ;;  %v1643_v14 = vadd.f32 %v3157_v41, %v1626_v20  ;;  %v1627_v19 = vadd.f32 %v1602_v16, %v1489_v21  ;;  %vm1826_vm12 = vcmp.lt.s32.totalorder %v1816_v6, 8  ;;  %vm3342_vm1 = vmand %vm1789_vm14, %vm1779_vm13 }
 0x192   : > { %v2449_v18 = vpop.f32.mrb[83].mxu0  ;;  %v1808_v62 = vadd.s32 10, %v3306_v31  ;;  %vm1827_vm15 = vcmp.lt.s32.totalorder %v1817_v44, 8  ;;  %v1809_v43 = vadd.s32 10, %v1767_v40 }
 0x193   : > { %v1834_v32 = vsel %vm1824_vm6, %v1643_v14, 0.0  ;;  %1910 = vst.msk [vmem:[%s3185_s10 + $0x20] sm:$0xff] %vm1840_vm3, %v1643_v14  ;;  %v1644_v52 = vadd.f32 %v3157_v41, %v1627_v19 }
 0x194   : > { %v1848_v34 = vsel %vm1840_vm3, %v1834_v32, 0.0  ;;  %v1872_v1 = vmul.f32 %v1834_v32, %v1834_v32  ;;  %v1469_v38 = vpop.f32.mrb[84].mxu1  ;;  %v1818_v17 = vsel %vm3335_vm0, %v1808_v62, %v3306_v31  ;;  %v1819_v21 = vsel %vm3342_vm1, %v1809_v43, %v1767_v40 }
 0x195   : > { %v1849_v27 = vadd.f32 %v1848_v34, %v1847_v48  ;;  %v1835_v42 = vsel %vm1825_vm9, %v1644_v52, 0.0  ;;  %1911 = vst.msk [vmem:[%s3185_s10 + $0x28] sm:$0xff] %vm1840_vm3, %v1644_v52  ;;  %v1490_v45 = vadd.f32 %v1469_v38, %v3094_v0  ;;  %v2422_v37 = vpop.f32.mrb[85].mxu1  ;;  %vm1828_vm2 = vcmp.lt.s32.totalorder %v1818_v17, 8 }
 0x196   : > { %v1885_v13 = vsel %vm1840_vm3, %v1872_v1, 0.0  ;;  %v1850_v56 = vsel %vm1840_vm3, %v1835_v42, 0.0  ;;  %v1873_v46 = vmul.f32 %v1835_v42, %v1835_v42  ;;  %v1472_v16 = vpop.f32.mrb[86].mxu1  ;;  %vm1829_vm4 = vcmp.lt.s32.totalorder %v1819_v21, 8 }
 0x197   : > { %v1615_v47 = vpop.f32.mrb[84].mxu0  ;;  %v1886_v55 = vadd.f32 %v1885_v13, %v1884_v49  ;;  %v1851_v4 = vadd.f32 %v1850_v56, %v1849_v27  ;;  %v1628_v51 = vadd.f32 %v1607_v10, %v1490_v45  ;;  %v1491_v53 = vadd.f32 %v1472_v16, %v3097_v15  ;;  %v2423_v57 = vpop.f32.mrb[87].mxu1 }
 0x198   : > { %v2452_v0 = vpop.f32.mrb[85].mxu0  ;;  %v1887_v39 = vsel %vm1840_vm3, %v1873_v46, 0.0 }
 0x199   : > { %v1618_v2 = vpop.f32.mrb[86].mxu0  ;;  %v1888_v59 = vadd.f32 %v1887_v39, %v1886_v55  ;;  %v1645_v8 = vadd.f32 %v3157_v41, %v1628_v51  ;;  %v1629_v61 = vadd.f32 %v1610_v5, %v1491_v53 }
 0x19a   : > { %v2453_v63 = vpop.f32.mrb[87].mxu0 }
 0x19b   : > { %v1836_v54 = vsel %vm1826_vm12, %v1645_v8, 0.0  ;;  %1912 = vst.msk [vmem:[%s3185_s10 + $0x30] sm:$0xff] %vm1840_vm3, %v1645_v8  ;;  %v1646_v30 = vadd.f32 %v3157_v41, %v1629_v61 }
 0x19c   : > { %v1852_v35 = vsel %vm1840_vm3, %v1836_v54, 0.0  ;;  %v1874_v9 = vmul.f32 %v1836_v54, %v1836_v54  ;;  %v1477_v50 = vpop.f32.mrb[88].mxu1 }
 0x19d   : > { %v1853_v24 = vadd.f32 %v1852_v35, %v1851_v4  ;;  %v1837_v12 = vsel %vm1827_vm15, %v1646_v30, 0.0  ;;  %1913 = vst.msk [vmem:[%s3185_s10 + $0x38] sm:$0xff] %vm1840_vm3, %v1646_v30  ;;  %v1492_v33 = vadd.f32 %v1477_v50, %v3122_v29  ;;  %v2426_v11 = vpop.f32.mrb[89].mxu1 }
 0x19e   : > { %v1889_v10 = vsel %vm1840_vm3, %v1874_v9, 0.0  ;;  %v1854_v7 = vsel %vm1840_vm3, %v1837_v12, 0.0  ;;  %v1875_v48 = vmul.f32 %v1837_v12, %v1837_v12  ;;  %v1480_v20 = vpop.f32.mrb[90].mxu1 }
 0x19f   : > { %v1890_v22 = vadd.f32 %v1889_v10, %v1888_v59  ;;  %v1855_v60 = vadd.f32 %v1854_v7, %v1853_v24  ;;  %v1630_v28 = vadd.f32 %v1615_v47, %v1492_v33  ;;  %v1493_v29 = vadd.f32 %v1480_v20, %v3136_v36  ;;  %v2427_v25 = vpop.f32.mrb[91].mxu1 }
 0x1a0   : > { %v1891_v5 = vsel %vm1840_vm3, %v1875_v48, 0.0 }
 0x1a1   : > { %v1892_v26 = vadd.f32 %v1891_v5, %v1890_v22  ;;  %v1647_v3 = vadd.f32 %v3157_v41, %v1630_v28  ;;  %v1631_v49 = vadd.f32 %v1618_v2, %v1493_v29 }
 0x1a3   : > { %v1838_v14 = vsel %vm1828_vm2, %v1647_v3, 0.0  ;;  %1914 = vst.msk [vmem:[%s3185_s10 + $0x40] sm:$0xff] %vm1840_vm3, %v1647_v3  ;;  %v1648_v19 = vadd.f32 %v3157_v41, %v1631_v49 }
 0x1a4   : > { %v1856_v23 = vsel %vm1840_vm3, %v1838_v14, 0.0  ;;  %v1876_v18 = vmul.f32 %v1838_v14, %v1838_v14 }
 0x1a5   : > { %v1857_v31 = vadd.f32 %v1856_v23, %v1855_v60  ;;  %v1839_v32 = vsel %vm1829_vm4, %v1648_v19, 0.0  ;;  %1915 = vst.msk [vmem:[%s3185_s10 + $0x48] sm:$0xff] %vm1840_vm3, %v1648_v19 }
 0x1a6   : > { %v1893_v36 = vsel %vm1840_vm3, %v1876_v18, 0.0  ;;  %v1858_v52 = vsel %vm1840_vm3, %v1839_v32, 0.0  ;;  %v1877_v6 = vmul.f32 %v1839_v32, %v1839_v32 }
 0x1a7   : > { %v1894_v34 = vadd.f32 %v1893_v36, %v1892_v26  ;;  %v1859_v1 = vadd.f32 %v1858_v52, %v1857_v31 }
 0x1a8   : > { %v1895_v38 = vsel %vm1840_vm3, %v1877_v6, 0.0 }
 0x1a9   : > { %v1860_v44 = vrot.slane %v1859_v1, 4  ;;  %v1896_v41 = vadd.f32 %v1895_v38, %v1894_v34 }
 0x1ab   : > { %v1861_v40 = vadd.f32 %v1860_v44, %v1859_v1  ;;  %v1897_v27 = vrot.slane %v1896_v41, 4 }
 0x1ad   : > { %v1862_v42 = vrot.slane %v1861_v40, 2  ;;  %v1898_v45 = vadd.f32 %v1897_v27, %v1896_v41 }
 0x1af   : > { %v1863_v37 = vadd.f32 %v1862_v42, %v1861_v40  ;;  %v1899_v13 = vrot.slane %v1898_v45, 2 }
 0x1b1   : > { %v1864_v56 = vrot.slane %v1863_v37, 1  ;;  %v1900_v46 = vadd.f32 %v1899_v13, %v1898_v45 }
 0x1b3   : > { %v1865_v16 = vadd.f32 %v1864_v56, %v1863_v37  ;;  %v1901_v47 = vrot.slane %v1900_v46, 1 }
 0x1b5   : > { %1867 = vst.msk [vmem:[%s3027_s5] sm:$0x1] %vm1866_vm5, %v1865_v16  ;;  %v1902_v55 = vadd.f32 %v1901_v47, %v1900_v46 }
 0x1b7   : > { %1903 = vst.msk [vmem:[%s3027_s5 + $0x1] sm:$0x1] %vm1866_vm5, %v1902_v55 }
 0x1b8 PF: > { %s15_s15 = sadd.s32 1, %s2548_s15  }
 0x1b9   : > { %p12_p4 = scmp.ge.s32.totalorder %s15_s15, 4  }
 0x1bb   :  { %14 = sbr.rel (!%p12_p4) target bundleno = 1 (0x1), region = 82 }

// kernel: down3d_forward.9
= control target key start
LH: loop header
LB: loop body
LE: loop exit
PB: predicated region body
PF: predicated region fallthrough
CT: control target
= control target key end

     0   :  { %vm108_vm0 = vcmask 523264   ;;  %s345_s0 = inlined_call_operand.vmem [shape: f32[160,64], index: 0, kind: input, shape index: {}]   ;;  %s346_s1 = inlined_call_operand.vmem [shape: f32[1,64], index: 1, kind: input, shape index: {}]   ;;  %s347_s2 = inlined_call_operand.vmem [shape: f32[1,64], index: 2, kind: input, shape index: {}]   ;;  %s348_s3 = inlined_call_operand.vmem [shape: f32[160,64], index: 3, kind: output, shape index: {}]  }
   0x1   :  { %v14_v0 = vld [vmem:[%s345_s0] sm:$0xff]  ;;  %v15_v4 = vld [vmem:[%s345_s0 + $0x8] sm:$0xff]  ;;  %v16_v5 = vld [vmem:[%s345_s0 + $0x10] sm:$0xff] }
   0x2   :  { %v161_v1 = vld [vmem:[%s346_s1] ss:$0 sm:$0xff]  ;;  %v17_v6 = vld [vmem:[%s345_s0 + $0x18] sm:$0xff]  ;;  %v19_v11 = vld [vmem:[%s345_s0 + $0x28] sm:$0xff] }
   0x3   :  { %v166_v2 = vld [vmem:[%s347_s2] ss:$0 sm:$0xff]  ;;  %v41_v3 = vmul.f32 %v161_v1, %v14_v0  ;;  %v42_v7 = vmul.f32 %v161_v1, %v15_v4  ;;  %v43_v8 = vmul.f32 %v161_v1, %v16_v5  ;;  %v44_v9 = vmul.f32 %v161_v1, %v17_v6  ;;  %v20_v12 = vld [vmem:[%s345_s0 + $0x30] sm:$0xff]  ;;  %v21_v17 = vld [vmem:[%s345_s0 + $0x38] sm:$0xff] }
   0x4   :  { %v18_v10 = vld [vmem:[%s345_s0 + $0x20] sm:$0xff]  ;;  %v46_v15 = vmul.f32 %v161_v1, %v19_v11  ;;  %v47_v16 = vmul.f32 %v161_v1, %v20_v12  ;;  %v48_v21 = vmul.f32 %v161_v1, %v21_v17  ;;  %v23_v27 = vld [vmem:[%s345_s0 + $0x48] sm:$0xff]  ;;  %v24_v28 = vld [vmem:[%s345_s0 + $0x50] sm:$0xff] }
   0x5   :  { %v68_v13 = vadd.f32 %v166_v2, %v41_v3  ;;  %v45_v14 = vmul.f32 %v161_v1, %v18_v10  ;;  %v69_v18 = vadd.f32 %v166_v2, %v42_v7  ;;  %v70_v19 = vadd.f32 %v166_v2, %v43_v8  ;;  %v22_v22 = vld [vmem:[%s345_s0 + $0x40] sm:$0xff]  ;;  %v25_v29 = vld [vmem:[%s345_s0 + $0x58] sm:$0xff]  ;;  %v27_v35 = vld [vmem:[%s345_s0 + $0x68] sm:$0xff] }
   0x6   :  { %v71_v20 = vadd.f32 %v166_v2, %v44_v9  ;;  %v73_v25 = vadd.f32 %v166_v2, %v46_v15  ;;  %v74_v26 = vadd.f32 %v166_v2, %v47_v16  ;;  %v75_v33 = vadd.f32 %v166_v2, %v48_v21  ;;  %v26_v34 = vld [vmem:[%s345_s0 + $0x60] sm:$0xff]  ;;  %v28_v36 = vld [vmem:[%s345_s0 + $0x70] sm:$0xff]  ;;  %v29_v41 = vld [vmem:[%s345_s0 + $0x78] sm:$0xff] }
   0x7   :  { %v88_v23 = vmax.f32 %v68_v13, 0.0  ;;  %v72_v24 = vadd.f32 %v166_v2, %v45_v14  ;;  %v89_v30 = vmax.f32 %v69_v18, 0.0  ;;  %v90_v31 = vmax.f32 %v70_v19, 0.0  ;;  %v30_v54 = vld [vmem:[%s345_s0 + $0x80] sm:$0xff]  ;;  %v31_v59 = vld [vmem:[%s345_s0 + $0x88] sm:$0xff]  ;;  %v32_v60 = vld [vmem:[%s345_s0 + $0x90] sm:$0xff] }
   0x8   :  { %v91_v32 = vmax.f32 %v71_v20, 0.0  ;;  %v93_v38 = vmax.f32 %v73_v25, 0.0  ;;  %v94_v39 = vmax.f32 %v74_v26, 0.0  ;;  %v49_v40 = vmul.f32 %v161_v1, %v22_v22  ;;  %v33_v61 = vld [vmem:[%s345_s0 + $0x98] sm:$0xff] }
   0x9   :  { %109 = vst.msk [vmem:[%s348_s3] sm:$0xff] %vm108_vm0, %v88_v23  ;;  %v92_v37 = vmax.f32 %v72_v24, 0.0  ;;  %110 = vst.msk [vmem:[%s348_s3 + $0x8] sm:$0xff] %vm108_vm0, %v89_v30  ;;  %v95_v42 = vmax.f32 %v75_v33, 0.0  ;;  %v50_v43 = vmul.f32 %v161_v1, %v23_v27  ;;  %v51_v44 = vmul.f32 %v161_v1, %v24_v28 }
   0xa   :  { %111 = vst.msk [vmem:[%s348_s3 + $0x10] sm:$0xff] %vm108_vm0, %v90_v31  ;;  %112 = vst.msk [vmem:[%s348_s3 + $0x18] sm:$0xff] %vm108_vm0, %v91_v32  ;;  %v52_v45 = vmul.f32 %v161_v1, %v25_v29  ;;  %v76_v46 = vadd.f32 %v166_v2, %v49_v40  ;;  %v53_v47 = vmul.f32 %v161_v1, %v26_v34 }
   0xb   :  { %113 = vst.msk [vmem:[%s348_s3 + $0x20] sm:$0xff] %vm108_vm0, %v92_v37  ;;  %114 = vst.msk [vmem:[%s348_s3 + $0x28] sm:$0xff] %vm108_vm0, %v93_v38  ;;  %v54_v48 = vmul.f32 %v161_v1, %v27_v35  ;;  %v55_v49 = vmul.f32 %v161_v1, %v28_v36  ;;  %v77_v50 = vadd.f32 %v166_v2, %v50_v43 }
   0xc   :  { %115 = vst.msk [vmem:[%s348_s3 + $0x30] sm:$0xff] %vm108_vm0, %v94_v39  ;;  %116 = vst.msk [vmem:[%s348_s3 + $0x38] sm:$0xff] %vm108_vm0, %v95_v42  ;;  %v78_v51 = vadd.f32 %v166_v2, %v51_v44  ;;  %v79_v52 = vadd.f32 %v166_v2, %v52_v45  ;;  %v56_v53 = vmul.f32 %v161_v1, %v29_v41  ;;  %v96_v55 = vmax.f32 %v76_v46, 0.0 }
   0xd   :  { %v80_v56 = vadd.f32 %v166_v2, %v53_v47  ;;  %v81_v57 = vadd.f32 %v166_v2, %v54_v48  ;;  %v82_v58 = vadd.f32 %v166_v2, %v55_v49  ;;  %v97_v62 = vmax.f32 %v77_v50, 0.0 }
   0xe   :  { %v98_v63 = vmax.f32 %v78_v51, 0.0  ;;  %v99_v0 = vmax.f32 %v79_v52, 0.0  ;;  %v83_v3 = vadd.f32 %v166_v2, %v56_v53  ;;  %117 = vst.msk [vmem:[%s348_s3 + $0x40] sm:$0xff] %vm108_vm0, %v96_v55  ;;  %v57_v7 = vmul.f32 %v161_v1, %v30_v54 }
   0xf   :  { %v100_v4 = vmax.f32 %v80_v56, 0.0  ;;  %v101_v5 = vmax.f32 %v81_v57, 0.0  ;;  %v102_v6 = vmax.f32 %v82_v58, 0.0  ;;  %118 = vst.msk [vmem:[%s348_s3 + $0x48] sm:$0xff] %vm108_vm0, %v97_v62  ;;  %v58_v9 = vmul.f32 %v161_v1, %v31_v59 }
  0x10   :  { %119 = vst.msk [vmem:[%s348_s3 + $0x50] sm:$0xff] %vm108_vm0, %v98_v63  ;;  %120 = vst.msk [vmem:[%s348_s3 + $0x58] sm:$0xff] %vm108_vm0, %v99_v0  ;;  %v103_v8 = vmax.f32 %v83_v3, 0.0  ;;  %v59_v10 = vmul.f32 %v161_v1, %v32_v60  ;;  %v60_v11 = vmul.f32 %v161_v1, %v33_v61  ;;  %v84_v12 = vadd.f32 %v166_v2, %v57_v7 }
  0x11   :  { %121 = vst.msk [vmem:[%s348_s3 + $0x60] sm:$0xff] %vm108_vm0, %v100_v4  ;;  %122 = vst.msk [vmem:[%s348_s3 + $0x68] sm:$0xff] %vm108_vm0, %v101_v5  ;;  %v85_v1 = vadd.f32 %v166_v2, %v58_v9 }
  0x12   :  { %123 = vst.msk [vmem:[%s348_s3 + $0x70] sm:$0xff] %vm108_vm0, %v102_v6  ;;  %124 = vst.msk [vmem:[%s348_s3 + $0x78] sm:$0xff] %vm108_vm0, %v103_v8  ;;  %v86_v13 = vadd.f32 %v166_v2, %v59_v10  ;;  %v87_v14 = vadd.f32 %v166_v2, %v60_v11  ;;  %v104_v15 = vmax.f32 %v84_v12, 0.0 }
  0x13   :  { %v105_v16 = vmax.f32 %v85_v1, 0.0 }
  0x14   :  { %v106_v17 = vmax.f32 %v86_v13, 0.0  ;;  %v107_v18 = vmax.f32 %v87_v14, 0.0  ;;  %125 = vst.msk [vmem:[%s348_s3 + $0x80] sm:$0xff] %vm108_vm0, %v104_v15 }
  0x15   :  { %126 = vst.msk [vmem:[%s348_s3 + $0x88] sm:$0xff] %vm108_vm0, %v105_v16 }
  0x16   :  { %127 = vst.msk [vmem:[%s348_s3 + $0x90] sm:$0xff] %vm108_vm0, %v106_v17  ;;  %128 = vst.msk [vmem:[%s348_s3 + $0x98] sm:$0xff] %vm108_vm0, %v107_v18 }

// kernel: down3d_forward.8
= control target key start
LH: loop header
LB: loop body
LE: loop exit
PB: predicated region body
PF: predicated region fallthrough
CT: control target
= control target key end

     0   :  { %s2863_s15 = smov 0   ;;  %s3722_s0 = inlined_call_operand.vmem [shape: bf16[2,102,80], index: 0, kind: input, shape index: {}]   ;;  %s3723_s1 = inlined_call_operand.vmem [shape: bf16[9,80,64], index: 1, kind: input, shape index: {}]   ;;  %s3724_s2 = inlined_call_operand.vmem [shape: f32[1,64], index: 2, kind: input, shape index: {}]   ;;  %s3725_s3 = inlined_call_operand.vmem [shape: f32[2,80,64], index: 3, kind: output, shape index: {0}]   ;;  %s3726_s4 = inlined_call_operand.vmem [shape: f32[2,8,64], index: 4, kind: output, shape index: {1}]  }
   0x1 LB: > { %s2154_s16 = sadd.s32 4294967295, %s2834_s15   ;;  %p2158_p0 = scmp.ge.s32.totalorder %s2834_s15, 1  ;;  %s2834_s15 = sphi %s2863_s15, %s15_s15  }
   0x2   : > { %p165_p1 = scmp.lt.s32.totalorder %s2834_s15, 3 }
   0x4   : > { %p166_p2 = pnand %p2158_p0, %p165_p1 }
   0x5   : > { %v2760_v0 = vld [vmem:[%s3723_s1 + $0x28] sm:$0xff] (!%p166_p2)   ;;  %v2836_v1 = vmov (!%p166_p2), 0.0   ;;  %v2761_v2 = vld [vmem:[%s3723_s1 + $0x30] sm:$0xff] (!%p166_p2)   ;;  %p195_p3 = scmp.lt.s32.totalorder (!%p166_p2), %s2154_s16, 1  ;;  %vm2837_vm0 = vmmov (!%p166_p2), 0   ;;  %v2762_v3 = vld [vmem:[%s3723_s1 + $0x38] sm:$0xff] (!%p166_p2)  }
   0x6   : > { %169 = sbr.rel (%p166_p2) target bundleno = 440 (0x1b8), region = 32  ;;  %2448 = vmatprep.subr.bf16.mxu0 (!%p166_p2), %v2836_v1  ;;  %2718 = vmatprep.subr.bf16.mxu1 (!%p166_p2), %v2836_v1  ;;  %v2763_v4 = vld [vmem:[%s3723_s1 + $0x40] sm:$0xff] (!%p166_p2)   ;;  %v2764_v9 = vld [vmem:[%s3723_s1 + $0x48] sm:$0xff] (!%p166_p2)   ;;  %vm270_vm1 = vsmask.f32 (!%p166_p2), 7424  ;;  %vm345_vm2 = vcmask (!%p166_p2), 654336  }
   0x7   : > { %2449 = vmatpush3.bf16.msra.mxu0 (!%p166_p2), %v2760_v0  ;;  %2723 = vmatpush3.bf16.msra.mxu1 (!%p166_p2), %v2760_v0  ;;  %v2769_v23 = vld [vmem:[%s3723_s1] sm:$0xff] (!%p166_p2)   ;;  %v2770_v24 = vld [vmem:[%s3723_s1 + $0x50] sm:$0xff] (!%p166_p2)   ;;  %v2771_v33 = vld [vmem:[%s3723_s1 + $0x8] sm:$0xff] (!%p166_p2)   ;;  %vm562_vm3 = vcmask (!%p166_p2), 1046528   ;;  %vm906_vm4 = vsmask.f32 (!%p166_p2), 6400 }
   0x8   : > { %2450 = vmatprep.subr.bf16.mxu0 (!%p166_p2), %v2836_v1  ;;  %2719 = vmatprep.subr.bf16.mxu1 (!%p166_p2), %v2836_v1  ;;  %v2772_v35 = vld [vmem:[%s3723_s1 + $0x58] sm:$0xff] (!%p166_p2)   ;;  %v2774_v40 = vld [vmem:[%s3723_s1 + $0x10] sm:$0xff] (!%p166_p2)   ;;  %v2775_v42 = vld [vmem:[%s3723_s1 + $0x60] sm:$0xff] (!%p166_p2)   ;;  %vm1103_vm5 = vcmask (!%p166_p2), 1045504   ;;  %vm1447_vm6 = vsmask.f32 (!%p166_p2), 5376 }
   0x9   : > { %2458 = vmatprep.mubr.msk.bf16.mxu0 (!%p166_p2), %vm2837_vm0, %v2836_v1  ;;  %2470 = vmatprep.mubr.msk.bf16.mxu1 (!%p166_p2), %vm2837_vm0, %v2836_v1  ;;  %v2777_v45 = vld [vmem:[%s3723_s1 + $0x18] sm:$0xff] (!%p166_p2)   ;;  %v2778_v47 = vld [vmem:[%s3723_s1 + $0x68] sm:$0xff] (!%p166_p2)   ;;  %v2779_v49 = vld [vmem:[%s3723_s1 + $0x20] sm:$0xff] (!%p166_p2)   ;;  %vm1644_vm7 = vcmask (!%p166_p2), 1044480   ;;  %vm2056_vm8 = vcmask (!%p166_p2), 521216  }
   0xa   : > { %v2780_v51 = vld [vmem:[%s3723_s1 + $0x70] sm:$0xff] (!%p166_p2)   ;;  %v2781_v53 = vld [vmem:[%s3723_s1 + $0x78] sm:$0xff] (!%p166_p2)   ;;  %v2783_v57 = vld [vmem:[%s3723_s1 + $0xa0] sm:$0xff] (!%p166_p2)  }
   0xb   : > { %2451 = vmatpush3.bf16.msra.mxu0 (!%p166_p2), %v2761_v2  ;;  %2724 = vmatpush3.bf16.msra.mxu1 (!%p166_p2), %v2761_v2  ;;  %v2784_v58 = vld [vmem:[%s3723_s1 + $0x80] sm:$0xff] (!%p166_p2)   ;;  %v2785_v60 = vld [vmem:[%s3723_s1 + $0xa8] sm:$0xff] (!%p166_p2)   ;;  %v2787_v63 = vld [vmem:[%s3723_s1 + $0xb0] sm:$0xff] (!%p166_p2)  }
   0xc   : > { %2452 = vmatprep.subr.bf16.mxu0 (!%p166_p2), %v2836_v1  ;;  %2720 = vmatprep.subr.bf16.mxu1 (!%p166_p2), %v2836_v1  ;;  %v2786_v61 = vld [vmem:[%s3723_s1 + $0x88] sm:$0xff] (!%p166_p2)  }
   0xd   : > { %s3754_s16 = smov (!%p195_p3, %s2154_s16), 1 }
   0xe   : > { %s2728_s23 = smul.u32 52, %s3754_s16 }
   0xf   : > { %2453 = vmatpush3.bf16.msra.mxu0 %v2762_v3  ;;  %2725 = vmatpush3.bf16.msra.mxu1 %v2762_v3  ;;  %v2788_v3 = vld [vmem:[%s3723_s1 + $0x90] sm:$0xff]   ;;  %s2729_s21 = smul.u32 80, %s3754_s16 }
  0x10   : > { %s2899_s28 = scalar_lea.vmem %s3722_s0, %s2728_s23  ;;  %2454 = vmatprep.subr.bf16.mxu0 %v2836_v1  ;;  %2721 = vmatprep.subr.bf16.mxu1 %v2836_v1 }
  0x11   : > { %v210_v5 = vld [vmem:[%s2899_s28] sm:$0xf]  ;;  %v2903_v6 = vld [vmem:[%s2899_s28 + $0x4] sm:$0xf]  ;;  %v2909_v8 = vld [vmem:[%s2899_s28 + $0x8] sm:$0xff]   ;;  %s3536_s25 = scalar_lea.vmem %s3725_s3, %s2729_s21 }
  0x12   : > { %v2906_v7 = vcombine.low %v210_v5, %v2903_v6  ;;  %v279_v12 = vshll.u32 %v2909_v8, 16  ;;  %v2920_v13 = vld [vmem:[%s2899_s28 + $0x18] sm:$0xff]   ;;  %v2923_v14 = vld [vmem:[%s2899_s28 + $0x20] sm:$0xff]   ;;  %v2926_v15 = vld [vmem:[%s2899_s28 + $0x10] sm:$0xff]   ;;  %v283_v25 = vshrl.u32 %v2909_v8, 16  ;;  %v564_v55 = vrot.slane %v2909_v8, 1 }
  0x13   : > { %2455 = vmatpush3.bf16.msra.mxu0 %v2763_v4  ;;  %2726 = vmatpush3.bf16.msra.mxu1 %v2763_v4  ;;  %v295_v18 = vshll.u32 %v2920_v13, 16  ;;  %v299_v19 = vshrl.u32 %v2920_v13, 16  ;;  %v303_v20 = vshll.u32 %v2923_v14, 16  ;;  %v287_v27 = vshll.u32 %v2926_v15, 16  ;;  %v547_v48 = vld [vmem:[%s2899_s28] sm:$0xe] }
  0x14   : > { %v272_v10 = vshrl.u32 %v2906_v7, 16  ;;  %v274_v11 = vshll.u32 %v2906_v7, 16  ;;  %v281_v17 = vrot.slane %v279_v12, 1  ;;  %2456 = vmatprep.subr.bf16.mxu0 %v2836_v1  ;;  %2722 = vmatprep.subr.bf16.mxu1 %v2836_v1  ;;  %v2943_v30 = vld [vmem:[%s2899_s28 + $0x28] ss:$0 sps:$4 sm:$0x11]   ;;  %v2208_v52 = vcombine.low %v547_v48, %v2903_v6 }
  0x15   : > { %v297_v22 = vrot.slane %v295_v18, 1  ;;  %v305_v26 = vrot.slane %v303_v20, 1  ;;  %v307_v31 = vshrl.u32 %v2923_v14, 16  ;;  %v311_v34 = vshll.u32 %v2943_v30, 16  ;;  %v3033_v62 = vld [vmem:[%s2899_s28 + $0x24] sm:$0xff]  }
  0x16   : > { %v276_v16 = vrot.slane %v274_v11, 1  ;;  %v285_v36 = vor.u32 %v283_v25, %v281_v17  ;;  %v289_v37 = vrot.slane %v287_v27, 1  ;;  %v291_v44 = vshrl.u32 %v2926_v15, 16  ;;  %v2805_v0 = vld [vmem:[%s2899_s28 + $0x2c] ss:$0 sps:$4 sm:$0x11]  }
  0x17   : > { %2457 = vmatpush3.bf16.msra.mxu0 %v2764_v9  ;;  %2727 = vmatpush3.bf16.msra.mxu1 %v2764_v9  ;;  %v301_v29 = vor.u32 %v299_v19, %v297_v22  ;;  %v309_v38 = vor.u32 %v307_v31, %v305_v26  ;;  %v313_v39 = vrot.slane %v311_v34, 1  ;;  %v563_v54 = vrot.slane %v2208_v52, 1  ;;  %v2790_v9 = vld [vmem:[%s3723_s1 + $0x98] sm:$0xff]   ;;  %v3094_v19 = vld [vmem:[%s2899_s28 + $0xc] sm:$0xff]  }
  0x18   : > { %v277_v21 = vor.u32 %v276_v16, %v272_v10  ;;  %2478 = vmatprep.subr.bf16.mxu1 %v2836_v1  ;;  %2508 = vmatprep.subr.bf16.mxu0 %v2836_v1  ;;  %v290_v41 = vsel %vm270_vm1, %v285_v36, %v289_v37  ;;  %v293_v46 = vor.u32 %v291_v44, %v289_v37  ;;  %v566_v59 = vrot.slane %v2926_v15, 1  ;;  %v2791_v10 = vld [vmem:[%s3723_s1 + $0xc0] sm:$0xff]   ;;  %v3084_v16 = vld [vmem:[%s2899_s28 + $0x8] sm:$0xf]  ;;  %v3109_v31 = vld [vmem:[%s2899_s28 + $0x14] sm:$0xff]  }
  0x19   : > { %v306_v32 = vsel %vm270_vm1, %v301_v29, %v305_v26  ;;  %v314_v43 = vsel %vm270_vm1, %v309_v38, %v313_v39  ;;  %v565_v56 = vsel %vm562_vm3, %v563_v54, %v564_v55  ;;  %v759_v4 = vrot.slane %v3033_v62, 1  ;;  %v2795_v38 = vld [vmem:[%s3723_s1 + $0xf0] sm:$0xff]   ;;  %v2801_v54 = vld [vmem:[%s3723_s1 + $0x100] sm:$0xff]  }
  0x1a   : > { %v282_v28 = vsel %vm270_vm1, %v277_v21, %v281_v17  ;;  %2471 = vmatmul.mubr.msk.bf16.vlgmr.msra.gmra.mrb[0].mxu1 %vm345_vm2, %v306_v32  ;;  %v298_v50 = vsel %vm270_vm1, %v293_v46, %v297_v22  ;;  %v567_v2 = vsel %vm562_vm3, %v564_v55, %v566_v59  ;;  %v761_v5 = vrot.slane %v2805_v0, 1  ;;  %v2798_v46 = vld [vmem:[%s3723_s1 + $0xf8] sm:$0xff]   ;;  %v2803_v55 = vld [vmem:[%s3723_s1 + $0xe0] sm:$0xff]  }
  0x1b   : > { %2459 = vmatmul.mubr.msk.bf16.vlgmr.msra.gmra.mrb[0].mxu0 %vm345_vm2, %v282_v28  ;;  %2479 = vmatpush3.bf16.msra.mxu1 %v2769_v23  ;;  %v570_v12 = vrot.slane %v2923_v14, 1  ;;  %v572_v20 = vrot.slane %v2943_v30, 1  ;;  %v919_v23 = vshll.u32 %v3094_v19, 16  ;;  %v753_v26 = vrot.slane %v3094_v19, 1 }
  0x1c   : > { %2509 = vmatpush3.bf16.msra.mxu0 %v2770_v24  ;;  %2480 = vmatprep.subr.bf16.mxu1 %v2836_v1  ;;  %v3055_v6 = vsel %vm562_vm3, %v759_v4, %v761_v5  ;;  %v928_v36 = vshll.u32 %v3109_v31, 16  ;;  %v755_v39 = vrot.slane %v3109_v31, 1  ;;  %v2808_v5 = vld [vmem:[%s3723_s1 + $0x110] sm:$0xff]  }
  0x1d   : > { %2510 = vmatprep.subr.bf16.mxu0 %v2836_v1  ;;  %2462 = vmatprep.mubr.msk.bf16.mxu0 %vm2837_vm0, %v2836_v1  ;;  %v573_v24 = vsel %vm562_vm3, %v570_v12, %v572_v20  ;;  %v921_v30 = vrot.slane %v919_v23, 2  ;;  %v1243_v20 = vld [vmem:[%s2899_s28 + $0x8] sm:$0xc]  ;;  %v1105_v23 = vrot.slane %v3094_v19, 2 }
  0x1e   : > { %2474 = vmatprep.mubr.msk.bf16.mxu1 %vm2837_vm0, %v2836_v1  ;;  %v756_v44 = vsel %vm562_vm3, %v753_v26, %v755_v39 }
  0x1f   : > { %2481 = vmatpush3.bf16.msra.mxu1 %v2771_v33 }
  0x20   : > { %2511 = vmatpush3.bf16.msra.mxu0 %v2772_v35  ;;  %2482 = vmatprep.subr.bf16.mxu1 %v2836_v1  ;;  %v925_v35 = vshrl.u32 %v3109_v31, 16 }
  0x21   : > { %2512 = vmatprep.subr.bf16.mxu0 %v2836_v1 }
  0x22   : > { %2475 = vmatmul.mubr.msk.bf16.gmra.mrb[4].mxu1 %vm345_vm2, %v314_v43  ;;  %v2797_v43 = vld [vmem:[%s3723_s1 + $0xd0] sm:$0xff]  }
  0x23   : > { %2463 = vmatmul.mubr.msk.bf16.gmra.mrb[4].mxu0 %vm345_vm2, %v290_v41  ;;  %2483 = vmatpush3.bf16.msra.mxu1 %v2774_v40  ;;  %v927_v40 = vrot.slane %v925_v35, 1  ;;  %v930_v41 = vrot.slane %v928_v36, 2 }
  0x24   : > { %2513 = vmatpush3.bf16.msra.mxu0 %v2775_v42  ;;  %2484 = vmatprep.subr.bf16.mxu1 %v2836_v1  ;;  %v3129_v42 = vld [vmem:[%s2899_s28 + $0x1c] sm:$0xff]  }
  0x25   : > { %2466 = vmatprep.mubr.msk.bf16.mxu0 %vm2837_vm0, %v2836_v1  ;;  %2514 = vmatprep.subr.bf16.mxu0 %v2836_v1  ;;  %v937_v48 = vshll.u32 %v3129_v42, 16  ;;  %v1109_v36 = vrot.slane %v3129_v42, 2 }
  0x26   : > { %2488 = vmatprep.mubr.msk.bf16.mxu1 %vm2837_vm0, %v2836_v1 }
  0x27   : > { %2485 = vmatpush3.bf16.msra.mxu1 %v2777_v45  ;;  %v931_v45 = vor.u32 %v930_v41, %v927_v40 }
  0x28   : > { %2515 = vmatpush3.bf16.msra.mxu0 %v2778_v47  ;;  %2486 = vmatprep.subr.bf16.mxu1 %v2836_v1  ;;  %v934_v47 = vshrl.u32 %v3129_v42, 16 }
  0x29   : > { %2516 = vmatprep.subr.bf16.mxu0 %v2836_v1 }
  0x2a   : > { %v936_v52 = vrot.slane %v934_v47, 1  ;;  %v2825_v47 = vld [vmem:[%s3723_s1 + $0x160] sm:$0xff]  }
  0x2b   : > { %2467 = vmatmul.mubr.msk.bf16.gmra.mrb[8].mxu0 %vm345_vm2, %v298_v50  ;;  %2487 = vmatpush3.bf16.msra.mxu1 %v2779_v49  ;;  %v2800_v49 = vld [vmem:[%s3723_s1 + $0xd8] sm:$0xff]  }
  0x2c   : > { %2517 = vmatpush3.bf16.msra.mxu0 %v2780_v51  ;;  %2538 = vmatprep.subr.bf16.mxu1 %v2836_v1  ;;  %v757_v51 = vrot.slane %v3129_v42, 1  ;;  %v2822_v42 = vld [vmem:[%s3723_s1 + $0x158] sm:$0xff]  }
  0x2d   : > { %2518 = vmatprep.mubr.msk.bf16.mxu0 %vm2837_vm0, %v2836_v1  ;;  %2568 = vmatprep.subr.bf16.mxu0 %v2836_v1 }
  0x2e   : > { %2489 = vmatmul.mubr.msk.bf16.vlgmr.msra.gmra.mrb[8].mxu1 %vm345_vm2, %v2906_v7  ;;  %v568_v7 = vrot.slane %v2920_v13, 1 }
  0x2f   : > { %2539 = vmatpush3.bf16.msra.mxu1 %v2781_v53  ;;  %2492 = vmatprep.mubr.msk.bf16.mxu1 %vm2837_vm0, %v2836_v1  ;;  %v939_v53 = vrot.slane %v937_v48, 2 }
  0x30   : > { %2540 = vmatprep.subr.bf16.mxu1 %v2836_v1  ;;  %v569_v11 = vsel %vm562_vm3, %v566_v59, %v568_v7  ;;  %v571_v17 = vsel %vm562_vm3, %v568_v7, %v570_v12  ;;  %v946_v59 = vshll.u32 %v3033_v62, 16  ;;  %v760_v7 = vsel %vm562_vm3, %v757_v51, %v759_v4 }
  0x33   : > { %2519 = vmatmul.mubr.msk.bf16.vlgmr.msra.gmra.mrb[12].mxu0 %vm345_vm2, %v565_v56  ;;  %2541 = vmatpush3.bf16.msra.mxu1 %v2784_v58  ;;  %v758_v56 = vsel %vm562_vm3, %v755_v39, %v757_v51  ;;  %v943_v58 = vshrl.u32 %v3033_v62, 16  ;;  %v2820_v39 = vld [vmem:[%s3723_s1 + $0x130] sm:$0xff]  }
  0x34   : > { %2569 = vmatpush3.bf16.msra.mxu0 %v2783_v57  ;;  %2522 = vmatprep.mubr.msk.bf16.mxu0 %vm2837_vm0, %v2836_v1  ;;  %v940_v57 = vor.u32 %v939_v53, %v936_v52  ;;  %v2824_v53 = vld [vmem:[%s2899_s28 + $0x30] ss:$0 sps:$4 sm:$0x33]  }
  0x35   : > { %2570 = vmatprep.subr.bf16.mxu0 %v2836_v1  ;;  %2542 = vmatprep.subr.bf16.mxu1 %v2836_v1  ;;  %v945_v0 = vrot.slane %v943_v58, 1 }
  0x36   : > { %2493 = vmatmul.mubr.msk.bf16.gmra.mrb[12].mxu1 %vm345_vm2, %v2909_v8  ;;  %v2789_v8 = vld [vmem:[%s3723_s1 + $0xb8] sm:$0xff]  }
  0x37   : > { %2496 = vmatprep.mubr.msk.bf16.mxu1 %vm2837_vm0, %v2836_v1  ;;  %2543 = vmatpush3.bf16.msra.mxu1 %v2786_v61  ;;  %v2806_v61 = vld [vmem:[%s3723_s1 + $0xe8] sm:$0xff]  }
  0x38   : > { %2571 = vmatpush3.bf16.msra.mxu0 %v2785_v60  ;;  %2544 = vmatprep.subr.bf16.mxu1 %v2836_v1  ;;  %v2804_v60 = vld [vmem:[%s3723_s1 + $0x108] sm:$0xff]  }
  0x39   : > { %2572 = vmatprep.subr.bf16.mxu0 %v2836_v1 }
  0x3b   : > { %2523 = vmatmul.mubr.msk.bf16.gmra.mrb[16].mxu0 %vm345_vm2, %v567_v2  ;;  %2545 = vmatpush3.bf16.msra.mxu1 %v2788_v3  ;;  %v948_v2 = vrot.slane %v946_v59, 2  ;;  %v3181_v3 = vld [vmem:[%s2899_s28 + $0x2c] ss:$0 sps:$4 sm:$0x33]   ;;  %v1302_v59 = vrot.slane %v2824_v53, 2 }
  0x3c   : > { %2526 = vmatprep.mubr.msk.bf16.mxu0 %vm2837_vm0, %v2836_v1  ;;  %2573 = vmatpush3.bf16.msra.mxu0 %v2787_v63  ;;  %v941_v63 = vsel %vm906_vm4, %v931_v45, %v940_v57  ;;  %v1113_v52 = vrot.slane %v3181_v3, 2 }
  0x3d   : > { %2574 = vmatprep.subr.bf16.mxu0 %v2836_v1  ;;  %2546 = vmatprep.subr.bf16.mxu1 %v2836_v1 }
  0x3e   : > { %2497 = vmatmul.mubr.msk.bf16.gmra.mrb[16].mxu1 %vm345_vm2, %v2926_v15  ;;  %v702_v15 = vld [vmem:[%s2899_s28 + $0x4] sm:$0xe] }
  0x3f   : > { %2500 = vmatprep.mubr.msk.bf16.mxu1 %vm2837_vm0, %v2836_v1  ;;  %2547 = vmatpush3.bf16.msra.mxu1 %v2790_v9  ;;  %v2229_v18 = vcombine.low %v702_v15, %v3084_v16  ;;  %v952_v9 = vshrl.u32 %v3181_v3, 16  ;;  %v1088_v15 = vld [vmem:[%s2899_s28 + $0x4] sm:$0xc] }
  0x40   : > { %2575 = vmatpush3.bf16.msra.mxu0 %v2789_v8  ;;  %2598 = vmatprep.subr.bf16.mxu1 %v2836_v1  ;;  %v949_v8 = vor.u32 %v948_v2, %v945_v0 }
  0x41   : > { %2576 = vmatprep.subr.bf16.mxu0 %v2836_v1  ;;  %v908_v21 = vshrl.u32 %v2229_v18, 16  ;;  %v911_v22 = vshll.u32 %v2229_v18, 16  ;;  %v752_v25 = vrot.slane %v2229_v18, 1  ;;  %v954_v4 = vrot.slane %v952_v9, 1 }
  0x42   : > { %v2276_v18 = vcombine.low %v1088_v15, %v3084_v16 }
  0x43   : > { %2527 = vmatmul.mubr.msk.bf16.gmra.mrb[20].mxu0 %vm345_vm2, %v569_v11  ;;  %v910_v27 = vrot.slane %v908_v21, 1  ;;  %v913_v28 = vrot.slane %v911_v22, 2  ;;  %v754_v32 = vsel %vm562_vm3, %v752_v25, %v753_v26  ;;  %v950_v11 = vsel %vm906_vm4, %v940_v57, %v949_v8  ;;  %v3208_v21 = vld [vmem:[%s2899_s28 + $0xc] sm:$0xf]  ;;  %v3220_v25 = vld [vmem:[%s2899_s28 + $0x10] sm:$0xff]  }
  0x44   : > { %2530 = vmatprep.mubr.msk.bf16.mxu0 %vm2837_vm0, %v2836_v1  ;;  %2577 = vmatpush3.bf16.msra.mxu0 %v2791_v10  ;;  %v955_v10 = vshll.u32 %v3181_v3, 16  ;;  %v1294_v26 = vrot.slane %v3220_v25, 2  ;;  %v1646_v9 = vrot.slane %v3220_v25, 3  ;;  %vm1992_vm3 = vcmask 523264  }
  0x45   : > { %2628 = vmatprep.subr.bf16.mxu0 %v2836_v1  ;;  %v914_v33 = vor.u32 %v913_v28, %v910_v27  ;;  %v2813_v28 = vld [vmem:[%s3723_s1 + $0x140] sm:$0xff]  }
  0x46   : > { %2501 = vmatmul.mubr.msk.bf16.gmra.mrb[20].mxu1 %vm345_vm2, %v2920_v13  ;;  %v916_v13 = vshrl.u32 %v3094_v19, 16  ;;  %v957_v12 = vrot.slane %v955_v10, 2 }
  0x47   : > { %2504 = vmatprep.mubr.msk.bf16.mxu1 %vm2837_vm0, %v2836_v1 }
  0x48   : > { %v918_v29 = vrot.slane %v916_v13, 1  ;;  %v1104_v13 = vrot.slane %v2276_v18, 2 }
  0x4a   : > { %v922_v34 = vor.u32 %v921_v30, %v918_v29  ;;  %v1106_v16 = vsel %vm1103_vm5, %v1104_v13, %v1105_v23  ;;  %v1107_v29 = vrot.slane %v3109_v31, 2  ;;  %v3240_v30 = vld [vmem:[%s2899_s28 + $0x18] sm:$0xff]   ;;  %v2816_v31 = vld [vmem:[%s3723_s1 + $0x148] sm:$0xff]  }
  0x4b   : > { %2531 = vmatmul.mubr.msk.bf16.gmra.mrb[24].mxu0 %vm345_vm2, %v571_v17  ;;  %v958_v17 = vor.u32 %v957_v12, %v954_v4 }
  0x4c   : > { %2534 = vmatprep.mubr.msk.bf16.mxu0 %vm2837_vm0, %v2836_v1  ;;  %v923_v37 = vsel %vm906_vm4, %v914_v33, %v922_v34  ;;  %v932_v50 = vsel %vm906_vm4, %v922_v34, %v931_v45  ;;  %v1296_v33 = vrot.slane %v3240_v30, 2  ;;  %v2817_v34 = vld [vmem:[%s3723_s1 + $0x128] sm:$0xff]   ;;  %v1110_v40 = vsel %vm1103_vm5, %v1107_v29, %v1109_v36 }
  0x4d   : > { %v959_v22 = vsel %vm906_vm4, %v949_v8, %v958_v17  ;;  %v1111_v45 = vrot.slane %v3033_v62, 2  ;;  %v1469_v8 = vshll.u32 %v3240_v30, 16 }
  0x4e   : > { %2505 = vmatmul.mubr.msk.bf16.gmra.mrb[24].mxu1 %vm345_vm2, %v2923_v14  ;;  %v2794_v14 = vld [vmem:[%s3723_s1 + $0xc8] sm:$0xff]   ;;  %v1297_v35 = vsel %vm1103_vm5, %v1294_v26, %v1296_v33 }
  0x4f   : > { %2548 = vmatprep.mubr.msk.bf16.mxu1 %vm2837_vm0, %v2836_v1  ;;  %v1112_v48 = vsel %vm1103_vm5, %v1109_v36, %v1111_v45  ;;  %v1114_v58 = vsel %vm1103_vm5, %v1111_v45, %v1113_v52  ;;  %v1471_v12 = vrot.slane %v1469_v8, 3 }
  0x53   : > { %2535 = vmatmul.mubr.msk.bf16.gmra.mrb[28].mxu0 %vm345_vm2, %v573_v24  ;;  %v3217_v24 = vcombine.low %v1243_v20, %v3208_v21 }
  0x54   : > { %2578 = vmatprep.mubr.msk.bf16.mxu0 %vm2837_vm0, %v2836_v1 }
  0x55   : > { %v1293_v19 = vrot.slane %v3217_v24, 2 }
  0x56   : > { %2549 = vmatmul.mubr.msk.bf16.vlgmr.msra.gmra.mrb[28].mxu1 %vm345_vm2, %v754_v32  ;;  %v2814_v32 = vld [vmem:[%s3723_s1 + $0x120] sm:$0xff]  }
  0x57   : > { %2599 = vmatpush3.bf16.msra.mxu1 %v2794_v14  ;;  %2552 = vmatprep.mubr.msk.bf16.mxu1 %vm2837_vm0, %v2836_v1  ;;  %v1295_v27 = vsel %vm1103_vm5, %v1293_v19, %v1294_v26  ;;  %v1108_v14 = vsel %vm1103_vm5, %v1105_v23, %v1107_v29  ;;  %v2827_v29 = vld [vmem:[%s2899_s28 + $0x30] ss:$0 sps:$4 sm:$0x77]  }
  0x58   : > { %2600 = vmatprep.subr.bf16.mxu1 %v2836_v1 }
  0x5b   : > { %2579 = vmatmul.mubr.msk.bf16.vlgmr.msra.gmra.mrb[32].mxu0 %vm345_vm2, %v923_v37  ;;  %2601 = vmatpush3.bf16.msra.mxu1 %v2797_v43  ;;  %v3265_v37 = vld [vmem:[%s2899_s28 + $0x20] sm:$0xff]   ;;  %v2823_v43 = vld [vmem:[%s3723_s1 + $0x138] sm:$0xff]  }
  0x5c   : > { %2629 = vmatpush3.bf16.msra.mxu0 %v2795_v38  ;;  %2582 = vmatprep.mubr.msk.bf16.mxu0 %vm2837_vm0, %v2836_v1  ;;  %v2819_v38 = vld [vmem:[%s3723_s1 + $0x150] sm:$0xff]   ;;  %v1298_v41 = vrot.slane %v3265_v37, 2  ;;  %v1475_v18 = vshrl.u32 %v3265_v37, 16  ;;  %v1478_v20 = vshll.u32 %v3265_v37, 16  ;;  %v1650_v26 = vrot.slane %v3265_v37, 3 }
  0x5d   : > { %2630 = vmatprep.subr.bf16.mxu0 %v2836_v1  ;;  %2602 = vmatprep.subr.bf16.mxu1 %v2836_v1 }
  0x5e   : > { %2553 = vmatmul.mubr.msk.bf16.gmra.mrb[32].mxu1 %vm345_vm2, %v756_v44  ;;  %v1299_v44 = vsel %vm1103_vm5, %v1296_v33, %v1298_v41  ;;  %v1477_v13 = vrot.slane %v1475_v18, 2  ;;  %v1480_v23 = vrot.slane %v1478_v20, 3  ;;  %v1496_v33 = vshll.u32 %v2827_v29, 16 }
  0x5f   : > { %2556 = vmatprep.mubr.msk.bf16.mxu1 %vm2837_vm0, %v2836_v1  ;;  %2603 = vmatpush3.bf16.msra.mxu1 %v2800_v49  ;;  %v1449_v49 = vshrl.u32 %v3217_v24, 16 }
  0x60   : > { %2631 = vmatpush3.bf16.msra.mxu0 %v2798_v46  ;;  %2604 = vmatprep.subr.bf16.mxu1 %v2836_v1  ;;  %v3294_v46 = vld [vmem:[%s2899_s28 + $0x28] sm:$0xff]   ;;  %v1498_v36 = vrot.slane %v1496_v33, 3 }
  0x61   : > { %2632 = vmatprep.subr.bf16.mxu0 %v2836_v1  ;;  %v1300_v62 = vrot.slane %v3294_v46, 2 }
  0x63   : > { %2583 = vmatmul.mubr.msk.bf16.gmra.mrb[36].mxu0 %vm345_vm2, %v932_v50  ;;  %2605 = vmatpush3.bf16.msra.mxu1 %v2803_v55  ;;  %v1452_v50 = vshll.u32 %v3217_v24, 16  ;;  %v1301_v51 = vsel %vm1103_vm5, %v1298_v41, %v1300_v62  ;;  %v1460_v55 = vshll.u32 %v3220_v25, 16  ;;  %v1303_v3 = vsel %vm1103_vm5, %v1300_v62, %v1302_v59 }
  0x64   : > { %2586 = vmatprep.mubr.msk.bf16.mxu0 %vm2837_vm0, %v2836_v1  ;;  %2633 = vmatpush3.bf16.msra.mxu0 %v2801_v54  ;;  %v1457_v54 = vshrl.u32 %v3220_v25, 16  ;;  %v1481_v25 = vor.u32 %v1480_v23, %v1477_v13 }
  0x65   : > { %2634 = vmatprep.subr.bf16.mxu0 %v2836_v1  ;;  %2606 = vmatprep.subr.bf16.mxu1 %v2836_v1  ;;  %v1454_v57 = vrot.slane %v1452_v50, 3 }
  0x66   : > { %2557 = vmatmul.mubr.msk.bf16.gmra.mrb[36].mxu1 %vm345_vm2, %v758_v56  ;;  %v1451_v56 = vrot.slane %v1449_v49, 2 }
  0x67   : > { %2560 = vmatprep.mubr.msk.bf16.mxu1 %vm2837_vm0, %v2836_v1  ;;  %2607 = vmatpush3.bf16.msra.mxu1 %v2806_v61  ;;  %v1462_v61 = vrot.slane %v1460_v55, 3 }
  0x68   : > { %2635 = vmatpush3.bf16.msra.mxu0 %v2804_v60  ;;  %2658 = vmatprep.subr.bf16.mxu1 %v2836_v1  ;;  %v1459_v60 = vrot.slane %v1457_v54, 2  ;;  %v1455_v0 = vor.u32 %v1454_v57, %v1451_v56 }
  0x69   : > { %2636 = vmatprep.subr.bf16.mxu0 %v2836_v1 }
  0x6b   : > { %2587 = vmatmul.mubr.msk.bf16.gmra.mrb[40].mxu0 %vm345_vm2, %v941_v63  ;;  %v1629_v63 = vld [vmem:[%s2899_s28 + $0x8] sm:$0x8]  ;;  %s2161_s28 = sshll.u32 %s3754_s16, 3 }
  0x6c   : > { %2590 = vmatprep.mubr.msk.bf16.mxu0 %vm2837_vm0, %v2836_v1  ;;  %2637 = vmatpush3.bf16.msra.mxu0 %v2808_v5  ;;  %v2344_v2 = vcombine.low %v1629_v63, %v3208_v21  ;;  %v1463_v5 = vor.u32 %v1462_v61, %v1459_v60  ;;  %s3379_s20 = scalar_lea.vmem %s3726_s4, %s2161_s28 }
  0x6d   : > { %2688 = vmatprep.subr.bf16.mxu0 %v2836_v1  ;;  %2057 = vst.msk [vmem:[%s3379_s20 + $0x2] sm:$0x3f] %vm2056_vm8, %v2836_v1 }
  0x6e   : > { %2561 = vmatmul.mubr.msk.bf16.gmra.mrb[40].mxu1 %vm345_vm2, %v760_v7  ;;  %v1466_v7 = vshrl.u32 %v3240_v30, 16  ;;  %v1464_v10 = vsel %vm1447_vm6, %v1455_v0, %v1463_v5 }
  0x6f   : > { %2564 = vmatprep.mubr.msk.bf16.mxu1 %vm2837_vm0, %v2836_v1 }
  0x70   : > { %v1468_v4 = vrot.slane %v1466_v7, 2 }
  0x72   : > { %v1472_v17 = vor.u32 %v1471_v12, %v1468_v4 }
  0x73   : > { %2591 = vmatmul.mubr.msk.bf16.gmra.mrb[44].mxu0 %vm345_vm2, %v950_v11  ;;  %v1645_v11 = vrot.slane %v2344_v2, 3 }
  0x74   : > { %2594 = vmatprep.mubr.msk.bf16.mxu0 %vm2837_vm0, %v2836_v1  ;;  %v1473_v21 = vsel %vm1447_vm6, %v1463_v5, %v1472_v17  ;;  %v1482_v19 = vsel %vm1447_vm6, %v1472_v17, %v1481_v25 }
  0x75   : > { %v1647_v15 = vsel %vm1644_vm7, %v1645_v11, %v1646_v9 }
  0x76   : > { %2565 = vmatmul.mubr.msk.bf16.gmra.mrb[44].mxu1 %vm345_vm2, %v3055_v6  ;;  %v2810_v6 = vld [vmem:[%s3723_s1 + $0x118] sm:$0xff]  }
  0x77   : > { %2608 = vmatprep.mubr.msk.bf16.mxu1 %vm2837_vm0, %v2836_v1 }
  0x7b   : > { %2595 = vmatmul.mubr.msk.bf16.gmra.mrb[48].mxu0 %vm345_vm2, %v959_v22  ;;  %v1648_v22 = vrot.slane %v3240_v30, 3 }
  0x7c   : > { %2638 = vmatprep.mubr.msk.bf16.mxu0 %vm2837_vm0, %v2836_v1 }
  0x7d   : > { %v1649_v24 = vsel %vm1644_vm7, %v1646_v9, %v1648_v22  ;;  %v1651_v30 = vsel %vm1644_vm7, %v1648_v22, %v1650_v26 }
  0x7e   : > { %2609 = vmatmul.mubr.msk.bf16.vlgmr.msra.gmra.mrb[48].mxu1 %vm345_vm2, %v1106_v16  ;;  %v1484_v16 = vshrl.u32 %v3294_v46, 16 }
  0x7f   : > { %2659 = vmatpush3.bf16.msra.mxu1 %v2810_v6  ;;  %2612 = vmatprep.mubr.msk.bf16.mxu1 %vm2837_vm0, %v2836_v1  ;;  %v1487_v6 = vshll.u32 %v3294_v46, 16 }
  0x80   : > { %2660 = vmatprep.subr.bf16.mxu1 %v2836_v1 }
  0x83   : > { %2639 = vmatmul.mubr.msk.bf16.vlgmr.msra.gmra.mrb[52].mxu0 %vm345_vm2, %v1295_v27  ;;  %2661 = vmatpush3.bf16.msra.mxu1 %v2814_v32  ;;  %v1486_v27 = vrot.slane %v1484_v16, 2 }
  0x84   : > { %2689 = vmatpush3.bf16.msra.mxu0 %v2813_v28  ;;  %2642 = vmatprep.mubr.msk.bf16.mxu0 %vm2837_vm0, %v2836_v1  ;;  %v1489_v28 = vrot.slane %v1487_v6, 3 }
  0x85   : > { %2690 = vmatprep.subr.bf16.mxu0 %v2836_v1  ;;  %2662 = vmatprep.subr.bf16.mxu1 %v2836_v1 }
  0x86   : > { %2613 = vmatmul.mubr.msk.bf16.gmra.mrb[52].mxu1 %vm345_vm2, %v1108_v14  ;;  %v1490_v32 = vor.u32 %v1489_v28, %v1486_v27  ;;  %v1493_v14 = vshrl.u32 %v2827_v29, 16 }
  0x87   : > { %2616 = vmatprep.mubr.msk.bf16.mxu1 %vm2837_vm0, %v2836_v1  ;;  %2663 = vmatpush3.bf16.msra.mxu1 %v2817_v34  ;;  %v1652_v34 = vrot.slane %v3294_v46, 3 }
  0x88   : > { %2691 = vmatpush3.bf16.msra.mxu0 %v2816_v31  ;;  %2664 = vmatprep.subr.bf16.mxu1 %v2836_v1  ;;  %v1491_v31 = vsel %vm1447_vm6, %v1481_v25, %v1490_v32 }
  0x89   : > { %2692 = vmatprep.subr.bf16.mxu0 %v2836_v1  ;;  %v1653_v37 = vsel %vm1644_vm7, %v1650_v26, %v1652_v34 }
  0x8b   : > { %2643 = vmatmul.mubr.msk.bf16.gmra.mrb[56].mxu0 %vm345_vm2, %v1297_v35  ;;  %2665 = vmatpush3.bf16.msra.mxu1 %v2820_v39  ;;  %v1495_v35 = vrot.slane %v1493_v14, 2 }
  0x8c   : > { %2646 = vmatprep.mubr.msk.bf16.mxu0 %vm2837_vm0, %v2836_v1  ;;  %2693 = vmatpush3.bf16.msra.mxu0 %v2819_v38 }
  0x8d   : > { %2694 = vmatprep.subr.bf16.mxu0 %v2836_v1  ;;  %2666 = vmatprep.subr.bf16.mxu1 %v2836_v1  ;;  %v1499_v38 = vor.u32 %v1498_v36, %v1495_v35 }
  0x8e   : > { %2617 = vmatmul.mubr.msk.bf16.gmra.mrb[56].mxu1 %vm345_vm2, %v1110_v40  ;;  %v1654_v40 = vrot.slane %v2827_v29, 3 }
  0x8f   : > { %2620 = vmatprep.mubr.msk.bf16.mxu1 %vm2837_vm0, %v2836_v1  ;;  %2667 = vmatpush3.bf16.msra.mxu1 %v2823_v43  ;;  %v1500_v39 = vsel %vm1447_vm6, %v1490_v32, %v1499_v38 }
  0x90   : > { %2695 = vmatpush3.bf16.msra.mxu0 %v2822_v42  ;;  %v1655_v41 = vsel %vm1644_vm7, %v1652_v34, %v1654_v40 }
  0x91   : > { %2696 = vmatprep.subr.bf16.mxu0 %v2836_v1 }
  0x93   : > { %2647 = vmatmul.mubr.msk.bf16.gmra.mrb[60].mxu0 %vm345_vm2, %v1299_v44 }
  0x94   : > { %2650 = vmatprep.mubr.msk.bf16.mxu0 %vm2837_vm0, %v2836_v1  ;;  %2697 = vmatpush3.bf16.msra.mxu0 %v2825_v47 }
  0x96   : > { %2621 = vmatmul.mubr.msk.bf16.gmra.mrb[60].mxu1 %vm345_vm2, %v1112_v48 }
  0x97   : > { %2624 = vmatprep.mubr.msk.bf16.mxu1 %vm2837_vm0, %v2836_v1 }
  0x9b   : > { %2651 = vmatmul.mubr.msk.bf16.gmra.mrb[64].mxu0 %vm345_vm2, %v1301_v51 }
  0x9c   : > { %2654 = vmatprep.mubr.msk.bf16.mxu0 %vm2837_vm0, %v2836_v1 }
  0x9e   : > { %2625 = vmatmul.mubr.msk.bf16.gmra.mrb[64].mxu1 %vm345_vm2, %v1114_v58 }
  0x9f   : > { %2668 = vmatprep.mubr.msk.bf16.mxu1 %vm2837_vm0, %v2836_v1 }
  0xa3   : > { %2655 = vmatmul.mubr.msk.bf16.gmra.mrb[68].mxu0 %vm345_vm2, %v1303_v3 }
  0xa4   : > { %2698 = vmatprep.mubr.msk.bf16.mxu0 %vm2837_vm0, %v2836_v1 }
  0xa6   : > { %2669 = vmatmul.mubr.msk.bf16.vlgmr.msra.gmra.mrb[68].mxu1 %vm345_vm2, %v1464_v10 }
  0xa7   : > { %2672 = vmatprep.mubr.msk.bf16.mxu1 %vm2837_vm0, %v2836_v1 }
  0xab   : > { %2699 = vmatmul.mubr.msk.bf16.vlgmr.msra.gmra.mrb[72].mxu0 %vm345_vm2, %v1647_v15 }
  0xac   : > { %2702 = vmatprep.mubr.msk.bf16.mxu0 %vm2837_vm0, %v2836_v1 }
  0xae   : > { %2673 = vmatmul.mubr.msk.bf16.gmra.mrb[72].mxu1 %vm345_vm2, %v1473_v21 }
  0xaf   : > { %2676 = vmatprep.mubr.msk.bf16.mxu1 %vm2837_vm0, %v2836_v1 }
  0xb3   : > { %2703 = vmatmul.mubr.msk.bf16.gmra.mrb[76].mxu0 %vm345_vm2, %v1649_v24 }
  0xb4   : > { %2706 = vmatprep.mubr.msk.bf16.mxu0 %vm2837_vm0, %v2836_v1 }
  0xb6   : > { %2677 = vmatmul.mubr.msk.bf16.gmra.mrb[76].mxu1 %vm345_vm2, %v1482_v19 }
  0xb7   : > { %2680 = vmatprep.mubr.msk.bf16.mxu1 %vm2837_vm0, %v2836_v1 }
  0xbb   : > { %2707 = vmatmul.mubr.msk.bf16.gmra.mrb[80].mxu0 %vm345_vm2, %v1651_v30 }
  0xbc   : > { %2710 = vmatprep.mubr.msk.bf16.mxu0 %vm2837_vm0, %v2836_v1 }
  0xbe   : > { %2681 = vmatmul.mubr.msk.bf16.gmra.mrb[80].mxu1 %vm345_vm2, %v1491_v31 }
  0xbf   : > { %2684 = vmatprep.mubr.msk.bf16.mxu1 %vm2837_vm0, %v2836_v1 }
  0xc3   : > { %2711 = vmatmul.mubr.msk.bf16.gmra.mrb[84].mxu0 %vm345_vm2, %v1653_v37 }
  0xc4   : > { %2714 = vmatprep.mubr.msk.bf16.mxu0 %vm2837_vm0, %v2836_v1 }
  0xc6   : > { %2685 = vmatmul.mubr.msk.bf16.gmra.mrb[84].mxu1 %vm345_vm2, %v1500_v39 }
  0xcb   : > { %2715 = vmatmul.mubr.msk.bf16.gmra.mrb[88].mxu0 %vm345_vm2, %v1655_v41 }
  0xed   : > { %v419_v43 = vpop.f32.mrb[0].mxu1 }
  0xee   : > { %v395_v42 = vpop.f32.mrb[0].mxu0  ;;  %v2472_v45 = vpop.f32.mrb[1].mxu1 }
  0xef   : > { %v2460_v44 = vpop.f32.mrb[1].mxu0  ;;  %v422_v47 = vpop.f32.mrb[2].mxu1 }
  0xf0   : > { %v398_v46 = vpop.f32.mrb[2].mxu0  ;;  %v2473_v62 = vpop.f32.mrb[3].mxu1 }
  0xf1   : > { %v2461_v48 = vpop.f32.mrb[3].mxu0 }
  0xf5   : > { %v427_v50 = vpop.f32.mrb[4].mxu1 }
  0xf6   : > { %v403_v49 = vpop.f32.mrb[4].mxu0  ;;  %v2476_v52 = vpop.f32.mrb[5].mxu1 }
  0xf7   : > { %v2464_v51 = vpop.f32.mrb[5].mxu0  ;;  %v430_v54 = vpop.f32.mrb[6].mxu1 }
  0xf8   : > { %v406_v53 = vpop.f32.mrb[6].mxu0  ;;  %v2477_v56 = vpop.f32.mrb[7].mxu1 }
  0xf9   : > { %v2465_v55 = vpop.f32.mrb[7].mxu0 }
  0xfe   : > { %v411_v57 = vpop.f32.mrb[8].mxu0 }
  0xff   : > { %v2468_v58 = vpop.f32.mrb[9].mxu0 }
 0x100   : > { %v414_v59 = vpop.f32.mrb[10].mxu0 }
 0x101   : > { %v2469_v60 = vpop.f32.mrb[11].mxu0  ;;  %v508_v61 = vpop.f32.mrb[8].mxu1 }
 0x102   : > { %v509_v63 = vadd.f32 %v508_v61, %v395_v42  ;;  %v2490_v0 = vpop.f32.mrb[9].mxu1 }
 0x103   : > { %v511_v2 = vpop.f32.mrb[10].mxu1 }
 0x104   : > { %v512_v3 = vadd.f32 %v511_v2, %v398_v46  ;;  %v2491_v5 = vpop.f32.mrb[11].mxu1 }
 0x106   : > { %v653_v7 = vpop.f32.mrb[12].mxu0 }
 0x107   : > { %v692_v8 = vadd.f32 %v653_v7, %v509_v63  ;;  %v2520_v9 = vpop.f32.mrb[13].mxu0 }
 0x108   : > { %v656_v10 = vpop.f32.mrb[14].mxu0 }
 0x109   : > { %v693_v11 = vadd.f32 %v656_v10, %v512_v3  ;;  %v2521_v4 = vpop.f32.mrb[15].mxu0  ;;  %v516_v12 = vpop.f32.mrb[12].mxu1 }
 0x10a   : > { %v517_v15 = vadd.f32 %v516_v12, %v403_v49  ;;  %v2494_v17 = vpop.f32.mrb[13].mxu1 }
 0x10b   : > { %v519_v18 = vpop.f32.mrb[14].mxu1 }
 0x10c   : > { %v520_v20 = vadd.f32 %v519_v18, %v406_v53  ;;  %v2495_v21 = vpop.f32.mrb[15].mxu1 }
 0x10e   : > { %v661_v22 = vpop.f32.mrb[16].mxu0 }
 0x10f   : > { %v694_v13 = vadd.f32 %v661_v22, %v517_v15  ;;  %v2524_v23 = vpop.f32.mrb[17].mxu0 }
 0x110   : > { %v664_v24 = vpop.f32.mrb[18].mxu0 }
 0x111   : > { %v695_v25 = vadd.f32 %v664_v24, %v520_v20  ;;  %v2525_v16 = vpop.f32.mrb[19].mxu0  ;;  %v524_v6 = vpop.f32.mrb[16].mxu1 }
 0x112   : > { %v525_v19 = vadd.f32 %v524_v6, %v411_v57  ;;  %v2498_v26 = vpop.f32.mrb[17].mxu1 }
 0x113   : > { %v527_v27 = vpop.f32.mrb[18].mxu1 }
 0x114   : > { %v528_v28 = vadd.f32 %v527_v27, %v414_v59  ;;  %v2499_v29 = vpop.f32.mrb[19].mxu1 }
 0x116   : > { %v669_v30 = vpop.f32.mrb[20].mxu0 }
 0x117   : > { %v696_v32 = vadd.f32 %v669_v30, %v525_v19  ;;  %v2528_v14 = vpop.f32.mrb[21].mxu0 }
 0x118   : > { %v672_v33 = vpop.f32.mrb[22].mxu0 }
 0x119   : > { %v697_v31 = vadd.f32 %v672_v33, %v528_v28  ;;  %v2529_v34 = vpop.f32.mrb[23].mxu0  ;;  %v532_v35 = vpop.f32.mrb[20].mxu1 }
 0x11a   : > { %v533_v36 = vadd.f32 %v532_v35, %v419_v43  ;;  %v2502_v37 = vpop.f32.mrb[21].mxu1 }
 0x11b   : > { %v535_v38 = vpop.f32.mrb[22].mxu1 }
 0x11c   : > { %v536_v39 = vadd.f32 %v535_v38, %v422_v47  ;;  %v2503_v40 = vpop.f32.mrb[23].mxu1 }
 0x11e   : > { %v677_v41 = vpop.f32.mrb[24].mxu0 }
 0x11f   : > { %v698_v42 = vadd.f32 %v677_v41, %v533_v36  ;;  %v2532_v44 = vpop.f32.mrb[25].mxu0 }
 0x120   : > { %v680_v45 = vpop.f32.mrb[26].mxu0 }
 0x121   : > { %v699_v46 = vadd.f32 %v680_v45, %v536_v39  ;;  %v2533_v48 = vpop.f32.mrb[27].mxu0  ;;  %v540_v62 = vpop.f32.mrb[24].mxu1 }
 0x122   : > { %v541_v49 = vadd.f32 %v540_v62, %v427_v50  ;;  %v2506_v51 = vpop.f32.mrb[25].mxu1 }
 0x123   : > { %v543_v52 = vpop.f32.mrb[26].mxu1 }
 0x124   : > { %v544_v53 = vadd.f32 %v543_v52, %v430_v54  ;;  %v2507_v55 = vpop.f32.mrb[27].mxu1 }
 0x126   : > { %v685_v56 = vpop.f32.mrb[28].mxu0 }
 0x127   : > { %v700_v57 = vadd.f32 %v685_v56, %v541_v49  ;;  %v2536_v58 = vpop.f32.mrb[29].mxu0 }
 0x128   : > { %v688_v43 = vpop.f32.mrb[30].mxu0 }
 0x129   : > { %v701_v59 = vadd.f32 %v688_v43, %v544_v53  ;;  %v2537_v60 = vpop.f32.mrb[31].mxu0  ;;  %v842_v47 = vpop.f32.mrb[28].mxu1 }
 0x12a   : > { %v881_v61 = vadd.f32 %v842_v47, %v692_v8  ;;  %v2550_v63 = vpop.f32.mrb[29].mxu1 }
 0x12b   : > { %v845_v0 = vpop.f32.mrb[30].mxu1 }
 0x12c   : > { %v882_v2 = vadd.f32 %v845_v0, %v693_v11  ;;  %v2551_v3 = vpop.f32.mrb[31].mxu1 }
 0x12e   : > { %v1039_v5 = vpop.f32.mrb[32].mxu0 }
 0x12f   : > { %v1078_v7 = vadd.f32 %v1039_v5, %v881_v61  ;;  %v2580_v50 = vpop.f32.mrb[33].mxu0 }
 0x130   : > { %v1042_v9 = vpop.f32.mrb[34].mxu0 }
 0x131   : > { %v1079_v10 = vadd.f32 %v1042_v9, %v882_v2  ;;  %v2581_v54 = vpop.f32.mrb[35].mxu0  ;;  %v850_v4 = vpop.f32.mrb[32].mxu1 }
 0x132   : > { %v883_v12 = vadd.f32 %v850_v4, %v694_v13  ;;  %v2554_v15 = vpop.f32.mrb[33].mxu1 }
 0x133   : > { %v853_v17 = vpop.f32.mrb[34].mxu1 }
 0x134   : > { %v884_v18 = vadd.f32 %v853_v17, %v695_v25  ;;  %v2555_v20 = vpop.f32.mrb[35].mxu1 }
 0x136   : > { %v1047_v21 = vpop.f32.mrb[36].mxu0 }
 0x137   : > { %v1080_v8 = vadd.f32 %v1047_v21, %v883_v12  ;;  %v2584_v11 = vpop.f32.mrb[37].mxu0 }
 0x138   : > { %v1050_v22 = vpop.f32.mrb[38].mxu0 }
 0x139   : > { %v1081_v23 = vadd.f32 %v1050_v22, %v884_v18  ;;  %v2585_v13 = vpop.f32.mrb[39].mxu0  ;;  %v858_v24 = vpop.f32.mrb[36].mxu1 }
 0x13a   : > { %v885_v16 = vadd.f32 %v858_v24, %v696_v32  ;;  %v2558_v6 = vpop.f32.mrb[37].mxu1 }
 0x13b   : > { %v861_v25 = vpop.f32.mrb[38].mxu1 }
 0x13c   : > { %v886_v19 = vadd.f32 %v861_v25, %v697_v31  ;;  %v2559_v26 = vpop.f32.mrb[39].mxu1 }
 0x13e   : > { %v1055_v27 = vpop.f32.mrb[40].mxu0 }
 0x13f   : > { %v1082_v28 = vadd.f32 %v1055_v27, %v885_v16  ;;  %v2588_v29 = vpop.f32.mrb[41].mxu0 }
 0x140   : > { %v1058_v30 = vpop.f32.mrb[42].mxu0 }
 0x141   : > { %v1083_v14 = vadd.f32 %v1058_v30, %v886_v19  ;;  %v2589_v33 = vpop.f32.mrb[43].mxu0  ;;  %v866_v34 = vpop.f32.mrb[40].mxu1 }
 0x142   : > { %v887_v35 = vadd.f32 %v866_v34, %v698_v42  ;;  %v2562_v36 = vpop.f32.mrb[41].mxu1 }
 0x143   : > { %v869_v37 = vpop.f32.mrb[42].mxu1 }
 0x144   : > { %v888_v1 = vadd.f32 %v869_v37, %v699_v46  ;;  %v2563_v38 = vpop.f32.mrb[43].mxu1 }
 0x146   : > { %v1063_v39 = vpop.f32.mrb[44].mxu0 }
 0x147   : > { %v3383_v40 = vadd.f32 %v1063_v39, %v887_v35  ;;  %v2592_v32 = vpop.f32.mrb[45].mxu0 }
 0x148   : > { %v1066_v41 = vpop.f32.mrb[46].mxu0 }
 0x149   : > { %v3385_v44 = vadd.f32 %v1066_v41, %v888_v1  ;;  %v2593_v31 = vpop.f32.mrb[47].mxu0  ;;  %v874_v45 = vpop.f32.mrb[44].mxu1 }
 0x14a   : > { %v889_v48 = vadd.f32 %v874_v45, %v700_v57  ;;  %v2566_v62 = vpop.f32.mrb[45].mxu1  ;;  %v1801_v57 = vlaneseq }
 0x14b   : > { %v877_v49 = vpop.f32.mrb[46].mxu1 }
 0x14c   : > { %v890_v51 = vadd.f32 %v877_v49, %v701_v59  ;;  %v2567_v52 = vpop.f32.mrb[47].mxu1  ;;  %v3395_v4 = vshrl.u32 %v1801_v57, 7 }
 0x14e   : > { %v1071_v53 = vpop.f32.mrb[48].mxu0  ;;  %v3401_v13 = vmul.u32.u64.low 3435973837, %v3395_v4  ;;  %v3402_v24 = vmul.u32.u64.high 3435973837, %v3395_v4, %v3401_v13  ;;  %v1804_v16 = vadd.s32 16, %v3395_v4  ;;  %v3417_v32 = vadd.s32 24, %v3395_v4 }
 0x14f   : > { %v3387_v42 = vadd.f32 %v1071_v53, %v889_v48  ;;  %v2596_v55 = vpop.f32.mrb[49].mxu0  ;;  %v3422_v31 = vadd.s32 32, %v3395_v4  ;;  %v3426_v48 = vadd.s32 40, %v3395_v4 }
 0x150   : > { %v1074_v46 = vpop.f32.mrb[50].mxu0  ;;  %v3410_v30 = vmul.u32.u64.low 3435973837, %v1804_v16  ;;  %v3411_v33 = vmul.u32.u64.high 3435973837, %v1804_v16, %v3410_v30  ;;  %v1818_v39 = vshrl.u32 %v3402_v24, 3 }
 0x151   : > { %v3389_v56 = vadd.f32 %v1074_v46, %v890_v51  ;;  %v2597_v58 = vpop.f32.mrb[51].mxu0  ;;  %v1194_v43 = vpop.f32.mrb[48].mxu1  ;;  %v3431_v55 = vmul.u32.u64.low 3435973837, %v3417_v32  ;;  %v3432_v46 = vmul.u32.u64.high 3435973837, %v3417_v32, %v3431_v55 }
 0x152   : > { %v1233_v60 = vadd.f32 %v1194_v43, %v1078_v7  ;;  %v2610_v47 = vpop.f32.mrb[49].mxu1  ;;  %v1819_v52 = vmul.u32 10, %v1818_v39  ;;  %v1840_v53 = vshrl.u32 %v3411_v33, 3 }
 0x153   : > { %v1197_v61 = vpop.f32.mrb[50].mxu1 }
 0x154   : > { %v1234_v63 = vadd.f32 %v1197_v61, %v1079_v10  ;;  %v2611_v0 = vpop.f32.mrb[51].mxu1  ;;  %v1803_v10 = vadd.s32 8, %v3395_v4 }
 0x156   : > { %v1383_v2 = vpop.f32.mrb[52].mxu0 }
 0x157   : > { %v3391_v3 = vadd.f32 %v1383_v2, %v1233_v60  ;;  %v2640_v59 = vpop.f32.mrb[53].mxu0  ;;  %v3436_v60 = vmul.u32.u64.low 3435973837, %v3422_v31  ;;  %v3437_v47 = vmul.u32.u64.high 3435973837, %v3422_v31, %v3436_v60 }
 0x158   : > { %v1386_v5 = vpop.f32.mrb[54].mxu0 }
 0x159   : > { %v3393_v50 = vadd.f32 %v1386_v5, %v1234_v63  ;;  %v2641_v9 = vpop.f32.mrb[55].mxu0  ;;  %v1202_v54 = vpop.f32.mrb[52].mxu1  ;;  %v1820_v5 = vsub.s32 %v3395_v4, %v1819_v52 }
 0x15a   : > { %v1235_v12 = vadd.f32 %v1202_v54, %v1080_v8  ;;  %v2614_v15 = vpop.f32.mrb[53].mxu1  ;;  %v1841_v9 = vmul.u32 10, %v1840_v53 }
 0x15b   : > { %v1205_v17 = vpop.f32.mrb[54].mxu1  ;;  %vm1922_vm9 = vcmp.ne.s32.totalorder %v1820_v5, 0  ;;  %vm1932_vm10 = vcmp.lt.s32.totalorder %v1820_v5, 0 }
 0x15c   : > { %v1236_v7 = vadd.f32 %v1205_v17, %v1081_v23  ;;  %v2615_v18 = vpop.f32.mrb[55].mxu1  ;;  %v3407_v19 = vmul.u32.u64.low 3435973837, %v1803_v10  ;;  %v3408_v23 = vmul.u32.u64.high 3435973837, %v1803_v10, %v3407_v19  ;;  %vm3468_vm13 = vmand %vm1932_vm10, %vm1922_vm9 }
 0x15d   : > { %v3450_v18 = vadd.s32 48, %v3395_v4 }
 0x15e   : > { %v1391_v20 = vpop.f32.mrb[56].mxu0 }
 0x15f   : > { %v3398_v21 = vadd.f32 %v1391_v20, %v1235_v12  ;;  %v2644_v11 = vpop.f32.mrb[57].mxu0 }
 0x160   : > { %v1394_v22 = vpop.f32.mrb[58].mxu0  ;;  %v3452_v11 = vsub.s32 %v1804_v16, %v1841_v9 }
 0x161   : > { %v3405_v6 = vadd.f32 %v1394_v22, %v1236_v7  ;;  %v2645_v8 = vpop.f32.mrb[59].mxu0  ;;  %v1210_v25 = vpop.f32.mrb[56].mxu1  ;;  %v1851_v22 = vshrl.u32 %v3432_v46, 3 }
 0x162   : > { %v1237_v26 = vadd.f32 %v1210_v25, %v1082_v28  ;;  %v2618_v27 = vpop.f32.mrb[57].mxu1  ;;  %v1862_v8 = vshrl.u32 %v3437_v47, 3  ;;  %vm1924_vm14 = vcmp.ne.s32.totalorder %v3452_v11, 0  ;;  %vm1934_vm15 = vcmp.lt.s32.totalorder %v3452_v11, 0  ;;  %v3512_v47 = vld [vmem:[%s3724_s2] ss:$0 sm:$0xff] }
 0x163   : > { %v1213_v29 = vpop.f32.mrb[58].mxu1  ;;  %v1852_v33 = vmul.u32 10, %v1851_v22  ;;  %vm3498_vm1 = vmand %vm1934_vm15, %vm1924_vm14 }
 0x164   : > { %v1238_v34 = vadd.f32 %v1213_v29, %v1083_v14  ;;  %v2619_v35 = vpop.f32.mrb[59].mxu1  ;;  %v1829_v14 = vshrl.u32 %v3408_v23, 3  ;;  %v1952_v23 = vadd.s32 10, %v1820_v5 }
 0x166   : > { %v1399_v36 = vpop.f32.mrb[60].mxu0  ;;  %v1830_v63 = vmul.u32 10, %v1829_v14 }
 0x167   : > { %v3413_v37 = vadd.f32 %v1399_v36, %v1237_v26  ;;  %v2648_v1 = vpop.f32.mrb[61].mxu0  ;;  %v3464_v26 = vmul.u32.u64.low 3435973837, %v3450_v18  ;;  %v3465_v27 = vmul.u32.u64.high 3435973837, %v3450_v18, %v3464_v26 }
 0x168   : > { %v1402_v38 = vpop.f32.mrb[62].mxu0  ;;  %v1831_v15 = vsub.s32 %v1803_v10, %v1830_v63  ;;  %v3458_v10 = vadd.s32 56, %v3395_v4  ;;  %v1863_v1 = vmul.u32 10, %v1862_v8 }
 0x169   : > { %v3419_v41 = vadd.f32 %v1402_v38, %v1238_v34  ;;  %v2649_v28 = vpop.f32.mrb[63].mxu0  ;;  %v1218_v45 = vpop.f32.mrb[60].mxu1 }
 0x16a   : > { %v1239_v62 = vadd.f32 %v1218_v45, %v3383_v40  ;;  %v2622_v49 = vpop.f32.mrb[61].mxu1  ;;  %v3440_v40 = vmul.u32.u64.low 3435973837, %v3426_v48  ;;  %v3441_v0 = vmul.u32.u64.high 3435973837, %v3426_v48, %v3440_v40  ;;  %vm1923_vm11 = vcmp.ne.s32.totalorder %v1831_v15, 0 }
 0x16b   : > { %v1221_v51 = vpop.f32.mrb[62].mxu1  ;;  %vm1933_vm12 = vcmp.lt.s32.totalorder %v1831_v15, 0  ;;  %v1953_v30 = vadd.s32 10, %v1831_v15  ;;  %v3482_v38 = vmul.u32.u64.low 3435973837, %v3458_v10  ;;  %v3483_v39 = vmul.u32.u64.high 3435973837, %v3458_v10, %v3482_v38 }
 0x16c   : > { %v1240_v58 = vadd.f32 %v1221_v51, %v3385_v44  ;;  %v2623_v43 = vpop.f32.mrb[63].mxu1  ;;  %v1873_v25 = vshrl.u32 %v3441_v0, 3  ;;  %vm3477_vm0 = vmand %vm1933_vm12, %vm1923_vm11  ;;  %v1962_v49 = vsel %vm3468_vm13, %v1952_v23, %v1820_v5  ;;  %v3489_v51 = vadd.s32 10, %v3452_v11 }
 0x16d   : > { %v1963_v53 = vsel %vm3477_vm0, %v1953_v30, %v1831_v15  ;;  %v3507_v43 = vsub.s32 %v3422_v31, %v1863_v1  ;;  %vm3514_vm2 = vcmp.lt.s32.totalorder %v1962_v49, 8  ;;  %v3542_v5 = vadd.s32 72, %v3395_v4 }
 0x16e   : > { %v1407_v61 = vpop.f32.mrb[64].mxu0  ;;  %v1874_v45 = vmul.u32 10, %v1873_v25  ;;  %vm3524_vm4 = vcmp.lt.s32.totalorder %v1963_v53, 8  ;;  %v1964_v0 = vsel %vm3498_vm1, %v3489_v51, %v3452_v11  ;;  %v1895_v15 = vshrl.u32 %v3483_v39, 3 }
 0x16f   : > { %v3443_v2 = vadd.f32 %v1407_v61, %v1239_v62  ;;  %v2652_v57 = vpop.f32.mrb[65].mxu0  ;;  %vm1926_vm7 = vcmp.ne.s32.totalorder %v3507_v43, 0  ;;  %vm1936_vm8 = vcmp.lt.s32.totalorder %v3507_v43, 0  ;;  %vm1974_vm14 = vcmp.lt.s32.totalorder %v1964_v0, 8 }
 0x170   : > { %v1410_v59 = vpop.f32.mrb[66].mxu0  ;;  %v1884_v57 = vshrl.u32 %v3465_v27, 3  ;;  %v1896_v29 = vmul.u32 10, %v1895_v15  ;;  %vm3584_vm12 = vmand %vm1936_vm8, %vm1926_vm7 }
 0x171   : > { %v3446_v54 = vadd.f32 %v1410_v59, %v1240_v58  ;;  %v2653_v44 = vpop.f32.mrb[67].mxu0  ;;  %v1226_v12 = vpop.f32.mrb[64].mxu1 }
 0x172   : > { %v1241_v17 = vadd.f32 %v1226_v12, %v3387_v42  ;;  %v2626_v7 = vpop.f32.mrb[65].mxu1 }
 0x173   : > { %v1229_v20 = vpop.f32.mrb[66].mxu1 }
 0x174   : > { %v1242_v13 = vadd.f32 %v1229_v20, %v3389_v56  ;;  %v2627_v24 = vpop.f32.mrb[67].mxu1 }
 0x175   : > { %v1885_v24 = vmul.u32 10, %v1884_v57 }
 0x176   : > { %v1415_v42 = vpop.f32.mrb[68].mxu0 }
 0x177   : > { %v3461_v19 = vadd.f32 %v1415_v42, %v1241_v17  ;;  %v2656_v16 = vpop.f32.mrb[69].mxu0 }
 0x178   : > { %v1418_v56 = vpop.f32.mrb[70].mxu0  ;;  %v3569_v16 = vmul.u32.u64.low 3435973837, %v3542_v5  ;;  %v3570_v23 = vmul.u32.u64.high 3435973837, %v3542_v5, %v3569_v16 }
 0x179   : > { %v3474_v34 = vadd.f32 %v1418_v56, %v1242_v13  ;;  %v2657_v35 = vpop.f32.mrb[71].mxu0  ;;  %v1580_v28 = vpop.f32.mrb[68].mxu1  ;;  %v1956_v56 = vadd.s32 10, %v3507_v43 }
 0x17a   : > { %v1619_v14 = vadd.f32 %v1580_v28, %v3391_v3  ;;  %v2670_v62 = vpop.f32.mrb[69].mxu1  ;;  %v3503_v3 = vsub.s32 %v3417_v32, %v1852_v33  ;;  %v3519_v32 = vsub.s32 %v3426_v48, %v1874_v45 }
 0x17b   : > { %v1583_v52 = vpop.f32.mrb[70].mxu1  ;;  %v3601_v62 = vsub.s32 %v3450_v18, %v1885_v24  ;;  %v1966_v61 = vsel %vm3584_vm12, %v1956_v56, %v3507_v43 }
 0x17c   : > { %v1620_v46 = vadd.f32 %v1583_v52, %v3393_v50  ;;  %v2671_v58 = vpop.f32.mrb[71].mxu1  ;;  %v3522_v50 = vadd.s32 64, %v3395_v4  ;;  %vm1925_vm5 = vcmp.ne.s32.totalorder %v3503_v3, 0  ;;  %vm1935_vm6 = vcmp.lt.s32.totalorder %v3503_v3, 0 }
 0x17d   : > { %v1955_v59 = vadd.s32 10, %v3503_v3  ;;  %vm1927_vm9 = vcmp.ne.s32.totalorder %v3519_v32, 0  ;;  %vm3563_vm10 = vmand %vm1935_vm6, %vm1925_vm5  ;;  %vm1937_vm11 = vcmp.lt.s32.totalorder %v3519_v32, 0  ;;  %v3607_v58 = vsub.s32 %v3458_v10, %v1896_v29 }
 0x17e   : > { %v1735_v60 = vpop.f32.mrb[72].mxu0  ;;  %v3550_v7 = vmul.u32.u64.low 3435973837, %v3522_v50  ;;  %v3551_v20 = vmul.u32.u64.high 3435973837, %v3522_v50, %v3550_v7  ;;  %vm3596_vm13 = vmand %vm1937_vm11, %vm1927_vm9  ;;  %vm1928_vm0 = vcmp.ne.s32.totalorder %v3601_v62, 0  ;;  %vm1938_vm1 = vcmp.lt.s32.totalorder %v3601_v62, 0 }
 0x17f   : > { %v1774_v63 = vadd.f32 %v1735_v60, %v1619_v14  ;;  %v2700_v31 = vpop.f32.mrb[73].mxu0  ;;  %v1965_v45 = vsel %vm3563_vm10, %v1955_v59, %v3503_v3  ;;  %vm1976_vm5 = vcmp.lt.s32.totalorder %v1966_v61, 8  ;;  %vm3644_vm6 = vmand %vm1938_vm1, %vm1928_vm0  ;;  %v1959_v56 = vadd.s32 10, %v3607_v58 }
 0x180   : > { %v1738_v48 = vpop.f32.mrb[74].mxu0  ;;  %vm3609_vm15 = vcmp.lt.s32.totalorder %v1965_v45, 8  ;;  %v1906_v31 = vshrl.u32 %v3551_v20, 3 }
 0x181   : > { %v1791_v9 = vadd.f32 %v3512_v47, %v1774_v63  ;;  %v1775_v44 = vadd.f32 %v1738_v48, %v1620_v46  ;;  %v2701_v12 = vpop.f32.mrb[75].mxu0  ;;  %v1588_v17 = vpop.f32.mrb[72].mxu1 }
 0x182   : > { %v1621_v22 = vadd.f32 %v1588_v17, %v3398_v21  ;;  %v2674_v13 = vpop.f32.mrb[73].mxu1 }
 0x183   : > { %v1982_v4 = vsel %vm3514_vm2, %v1791_v9, 0.0  ;;  %2058 = vst.msk [vmem:[%s3536_s25] sm:$0xff] %vm1992_vm3, %v1791_v9  ;;  %v1792_v11 = vadd.f32 %v3512_v47, %v1775_v44  ;;  %v1591_v42 = vpop.f32.mrb[74].mxu1  ;;  %vm1929_vm2 = vcmp.ne.s32.totalorder %v3607_v58, 0 }
 0x184   : > { %v2020_v8 = vmul.f32 %v1982_v4, %v1982_v4  ;;  %v1622_v26 = vadd.f32 %v1591_v42, %v3405_v6  ;;  %v2675_v27 = vpop.f32.mrb[75].mxu1  ;;  %v1993_v30 = vsel %vm1992_vm3, %v1982_v4, 0.0  ;;  %v1957_v6 = vadd.s32 10, %v3519_v32 }
 0x185   : > { %v1983_v21 = vsel %vm3524_vm4, %v1792_v11, 0.0  ;;  %2059 = vst.msk [vmem:[%s3536_s25 + $0x8] sm:$0xff] %vm1992_vm3, %v1792_v11  ;;  %v1907_v4 = vmul.u32 10, %v1906_v31  ;;  %vm1939_vm4 = vcmp.lt.s32.totalorder %v3607_v58, 0  ;;  %v1958_v42 = vadd.s32 10, %v3601_v62 }
 0x186   : > { %v1994_v33 = vsel %vm1992_vm3, %v1983_v21, 0.0  ;;  %v2021_v35 = vmul.f32 %v1983_v21, %v1983_v21  ;;  %v1743_v36 = vpop.f32.mrb[76].mxu0  ;;  %v2030_v49 = vsel %vm1992_vm3, %v2020_v8, 0.0  ;;  %v1967_v63 = vsel %vm3596_vm13, %v1957_v6, %v3519_v32  ;;  %vm3651_vm8 = vmand %vm1939_vm4, %vm1929_vm2 }
 0x187   : > { %v1995_v38 = vadd.f32 %v1994_v33, %v1993_v30  ;;  %v1776_v39 = vadd.f32 %v1743_v36, %v1621_v22  ;;  %v2704_v28 = vpop.f32.mrb[77].mxu0  ;;  %v1917_v32 = vshrl.u32 %v3570_v23, 3  ;;  %vm1977_vm7 = vcmp.lt.s32.totalorder %v1967_v63, 8 }
 0x188   : > { %v2031_v51 = vsel %vm1992_vm3, %v2021_v35, 0.0  ;;  %v1746_v52 = vpop.f32.mrb[78].mxu0  ;;  %v3656_v33 = vsub.s32 %v3522_v50, %v1907_v4  ;;  %v1968_v45 = vsel %vm3644_vm6, %v1958_v42, %v3601_v62  ;;  %vm2018_vm4 = vcmask 516096  }
 0x189   : > { %v2032_v53 = vadd.f32 %v2031_v51, %v2030_v49  ;;  %v1793_v55 = vadd.f32 %v3512_v47, %v1776_v39  ;;  %v1777_v3 = vadd.f32 %v1746_v52, %v1622_v26  ;;  %v2705_v46 = vpop.f32.mrb[79].mxu0  ;;  %v1596_v18 = vpop.f32.mrb[76].mxu1  ;;  %v1918_v25 = vmul.u32 10, %v1917_v32 }
 0x18a   : > { %v1623_v0 = vadd.f32 %v1596_v18, %v3413_v37  ;;  %v2678_v57 = vpop.f32.mrb[77].mxu1  ;;  %vm1930_vm9 = vcmp.ne.s32.totalorder %v3656_v33, 0  ;;  %vm1940_vm10 = vcmp.lt.s32.totalorder %v3656_v33, 0  ;;  %vm1978_vm11 = vcmp.lt.s32.totalorder %v1968_v45, 8 }
 0x18b   : > { %v1984_v40 = vsel %vm1974_vm14, %v1793_v55, 0.0  ;;  %2060 = vst.msk [vmem:[%s3536_s25 + $0x10] sm:$0xff] %vm1992_vm3, %v1793_v55  ;;  %v1794_v10 = vadd.f32 %v3512_v47, %v1777_v3  ;;  %v1599_v59 = vpop.f32.mrb[78].mxu1  ;;  %v1919_v14 = vsub.s32 %v3542_v5, %v1918_v25 }
 0x18c   : > { %v1996_v48 = vsel %vm1992_vm3, %v1984_v40, 0.0  ;;  %v2022_v43 = vmul.f32 %v1984_v40, %v1984_v40  ;;  %v1624_v12 = vadd.f32 %v1599_v59, %v3419_v41  ;;  %v2679_v37 = vpop.f32.mrb[79].mxu1 }
 0x18d   : > { %v1997_v9 = vadd.f32 %v1996_v48, %v1995_v38  ;;  %v1985_v44 = vsel %vm3609_vm15, %v1794_v10, 0.0  ;;  %2061 = vst.msk [vmem:[%s3536_s25 + $0x18] sm:$0xff] %vm1992_vm3, %v1794_v10  ;;  %vm1931_vm12 = vcmp.ne.s32.totalorder %v1919_v14, 0  ;;  %vm1941_vm13 = vcmp.lt.s32.totalorder %v1919_v14, 0  ;;  %vm3682_vm15 = vmand %vm1940_vm10, %vm1930_vm9 }
 0x18e   : > { %v2033_v15 = vsel %vm1992_vm3, %v2022_v43, 0.0  ;;  %v1998_v17 = vsel %vm1992_vm3, %v1985_v44, 0.0  ;;  %v2023_v7 = vmul.f32 %v1985_v44, %v1985_v44  ;;  %v1751_v20 = vpop.f32.mrb[80].mxu0  ;;  %vm3692_vm0 = vmand %vm1941_vm13, %vm1931_vm12 }
 0x18f   : > { %v2034_v11 = vadd.f32 %v2033_v15, %v2032_v53  ;;  %v1999_v22 = vadd.f32 %v1998_v17, %v1997_v9  ;;  %v1778_v13 = vadd.f32 %v1751_v20, %v1623_v0  ;;  %v2708_v24 = vpop.f32.mrb[81].mxu0  ;;  %v1961_v9 = vadd.s32 10, %v1919_v14 }
 0x190   : > { %v2035_v8 = vsel %vm1992_vm3, %v2023_v7, 0.0  ;;  %v1754_v41 = vpop.f32.mrb[82].mxu0 }
 0x191   : > { %v2036_v16 = vadd.f32 %v2035_v8, %v2034_v11  ;;  %v1795_v23 = vadd.f32 %v3512_v47, %v1778_v13  ;;  %v1779_v21 = vadd.f32 %v1754_v41, %v1624_v12  ;;  %v2709_v26 = vpop.f32.mrb[83].mxu0  ;;  %v1604_v29 = vpop.f32.mrb[80].mxu1 }
 0x192   : > { %v1625_v1 = vadd.f32 %v1604_v29, %v3443_v2  ;;  %v2682_v6 = vpop.f32.mrb[81].mxu1  ;;  %v1969_v2 = vsel %vm3651_vm8, %v1959_v56, %v3607_v58  ;;  %v1960_v58 = vadd.s32 10, %v3656_v33 }
 0x193   : > { %v1986_v35 = vsel %vm1976_vm5, %v1795_v23, 0.0  ;;  %2062 = vst.msk [vmem:[%s3536_s25 + $0x20] sm:$0xff] %vm1992_vm3, %v1795_v23  ;;  %v1796_v36 = vadd.f32 %v3512_v47, %v1779_v21  ;;  %v1607_v28 = vpop.f32.mrb[82].mxu1  ;;  %vm1979_vm14 = vcmp.lt.s32.totalorder %v1969_v2, 8 }
 0x194   : > { %v2000_v38 = vsel %vm1992_vm3, %v1986_v35, 0.0  ;;  %v2024_v39 = vmul.f32 %v1986_v35, %v1986_v35  ;;  %v1626_v51 = vadd.f32 %v1607_v28, %v3446_v54  ;;  %v2683_v52 = vpop.f32.mrb[83].mxu1 }
 0x195   : > { %v2001_v50 = vadd.f32 %v2000_v38, %v1999_v22  ;;  %v1987_v49 = vsel %vm1977_vm7, %v1796_v36, 0.0  ;;  %2063 = vst.msk [vmem:[%s3536_s25 + $0x28] sm:$0xff] %vm1992_vm3, %v1796_v36 }
 0x196   : > { %v2037_v53 = vsel %vm1992_vm3, %v2024_v39, 0.0  ;;  %v2002_v55 = vsel %vm1992_vm3, %v1987_v49, 0.0  ;;  %v2025_v3 = vmul.f32 %v1987_v49, %v1987_v49  ;;  %v1759_v46 = vpop.f32.mrb[84].mxu0 }
 0x197   : > { %v2038_v5 = vadd.f32 %v2037_v53, %v2036_v16  ;;  %v2003_v62 = vadd.f32 %v2002_v55, %v2001_v50  ;;  %v1780_v60 = vadd.f32 %v1759_v46, %v1625_v1  ;;  %v2712_v18 = vpop.f32.mrb[85].mxu0  ;;  %v1971_v16 = vsel %vm3692_vm0, %v1961_v9, %v1919_v14 }
 0x198   : > { %v2039_v54 = vsel %vm1992_vm3, %v2025_v3, 0.0  ;;  %v1762_v61 = vpop.f32.mrb[86].mxu0  ;;  %vm1981_vm2 = vcmp.lt.s32.totalorder %v1971_v16, 8 }
 0x199   : > { %v2040_v63 = vadd.f32 %v2039_v54, %v2038_v5  ;;  %v1797_v31 = vadd.f32 %v3512_v47, %v1780_v60  ;;  %v1781_v40 = vadd.f32 %v1762_v61, %v1626_v51  ;;  %v2713_v10 = vpop.f32.mrb[87].mxu0  ;;  %v1612_v0 = vpop.f32.mrb[84].mxu1 }
 0x19a   : > { %v1627_v59 = vadd.f32 %v1612_v0, %v3461_v19  ;;  %v2686_v32 = vpop.f32.mrb[85].mxu1  ;;  %v1970_v19 = vsel %vm3682_vm15, %v1960_v58, %v3656_v33 }
 0x19b   : > { %v1988_v48 = vsel %vm1978_vm11, %v1797_v31, 0.0  ;;  %2064 = vst.msk [vmem:[%s3536_s25 + $0x30] sm:$0xff] %vm1992_vm3, %v1797_v31  ;;  %v1798_v43 = vadd.f32 %v3512_v47, %v1781_v40  ;;  %v1615_v37 = vpop.f32.mrb[86].mxu1  ;;  %vm1980_vm1 = vcmp.lt.s32.totalorder %v1970_v19, 8 }
 0x19c   : > { %v2004_v44 = vsel %vm1992_vm3, %v1988_v48, 0.0  ;;  %v2026_v12 = vmul.f32 %v1988_v48, %v1988_v48  ;;  %v1628_v20 = vadd.f32 %v1615_v37, %v3474_v34  ;;  %v2687_v4 = vpop.f32.mrb[87].mxu1 }
 0x19d   : > { %v2005_v17 = vadd.f32 %v2004_v44, %v2003_v62  ;;  %v1989_v7 = vsel %vm1979_vm14, %v1798_v43, 0.0  ;;  %2065 = vst.msk [vmem:[%s3536_s25 + $0x38] sm:$0xff] %vm1992_vm3, %v1798_v43 }
 0x19e   : > { %v2041_v11 = vsel %vm1992_vm3, %v2026_v12, 0.0  ;;  %v2006_v22 = vsel %vm1992_vm3, %v1989_v7, 0.0  ;;  %v2027_v13 = vmul.f32 %v1989_v7, %v1989_v7  ;;  %v1767_v24 = vpop.f32.mrb[88].mxu0 }
 0x19f   : > { %v2042_v8 = vadd.f32 %v2041_v11, %v2040_v63  ;;  %v2007_v41 = vadd.f32 %v2006_v22, %v2005_v17  ;;  %v1782_v42 = vadd.f32 %v1767_v24, %v1627_v59  ;;  %v2716_v25 = vpop.f32.mrb[89].mxu0 }
 0x1a0   : > { %v2043_v34 = vsel %vm1992_vm3, %v2027_v13, 0.0  ;;  %v1770_v23 = vpop.f32.mrb[90].mxu0 }
 0x1a1   : > { %v2044_v21 = vadd.f32 %v2043_v34, %v2042_v8  ;;  %v1799_v26 = vadd.f32 %v3512_v47, %v1782_v42  ;;  %v1783_v27 = vadd.f32 %v1770_v23, %v1628_v20  ;;  %v2717_v56 = vpop.f32.mrb[91].mxu0 }
 0x1a3   : > { %v1990_v29 = vsel %vm1980_vm1, %v1799_v26, 0.0  ;;  %2066 = vst.msk [vmem:[%s3536_s25 + $0x40] sm:$0xff] %vm1992_vm3, %v1799_v26  ;;  %v1800_v30 = vadd.f32 %v3512_v47, %v1783_v27 }
 0x1a4   : > { %v2008_v33 = vsel %vm1992_vm3, %v1990_v29, 0.0  ;;  %v2028_v35 = vmul.f32 %v1990_v29, %v1990_v29 }
 0x1a5   : > { %v2009_v36 = vadd.f32 %v2008_v33, %v2007_v41  ;;  %v1991_v1 = vsel %vm1981_vm2, %v1800_v30, 0.0  ;;  %2067 = vst.msk [vmem:[%s3536_s25 + $0x48] sm:$0xff] %vm1992_vm3, %v1800_v30 }
 0x1a6   : > { %v2045_v6 = vsel %vm1992_vm3, %v2028_v35, 0.0  ;;  %v2010_v38 = vsel %vm1992_vm3, %v1991_v1, 0.0  ;;  %v2029_v39 = vmul.f32 %v1991_v1, %v1991_v1 }
 0x1a7   : > { %v2046_v28 = vadd.f32 %v2045_v6, %v2044_v21  ;;  %v2011_v45 = vadd.f32 %v2010_v38, %v2009_v36 }
 0x1a8   : > { %v2047_v14 = vsel %vm1992_vm3, %v2029_v39, 0.0 }
 0x1a9   : > { %v2012_v50 = vrot.slane %v2011_v45, 4  ;;  %v2048_v47 = vadd.f32 %v2047_v14, %v2046_v28 }
 0x1ab   : > { %v2013_v49 = vadd.f32 %v2012_v50, %v2011_v45  ;;  %v2049_v51 = vrot.slane %v2048_v47, 4 }
 0x1ad   : > { %v2014_v52 = vrot.slane %v2013_v49, 2  ;;  %v2050_v2 = vadd.f32 %v2049_v51, %v2048_v47 }
 0x1af   : > { %v2015_v53 = vadd.f32 %v2014_v52, %v2013_v49  ;;  %v2051_v55 = vrot.slane %v2050_v2, 2 }
 0x1b1   : > { %v2016_v3 = vrot.slane %v2015_v53, 1  ;;  %v2052_v46 = vadd.f32 %v2051_v55, %v2050_v2 }
 0x1b3   : > { %v2017_v5 = vadd.f32 %v2016_v3, %v2015_v53  ;;  %v2053_v62 = vrot.slane %v2052_v46, 1 }
 0x1b5   : > { %2019 = vst.msk [vmem:[%s3379_s20] sm:$0x1] %vm2018_vm4, %v2017_v5  ;;  %v2054_v60 = vadd.f32 %v2053_v62, %v2052_v46 }
 0x1b7   : > { %2055 = vst.msk [vmem:[%s3379_s20 + $0x1] sm:$0x1] %vm2018_vm4, %v2054_v60 }
 0x1b8 PF: > { %s15_s15 = sadd.s32 1, %s2834_s15  }
 0x1b9   : > { %p12_p4 = scmp.ge.s32.totalorder %s15_s15, 4  }
 0x1bb   :  { %14 = sbr.rel (!%p12_p4) target bundleno = 1 (0x1), region = 82 }

</bundles_post_ra>
